<compile_context>
chip_gen: v5e
topology: v5e:2x2
jax: 0.10.0
libtpu: 0.0.40
codegen_flags: <defaults>
</compile_context>

<pallas_src>
import functools
import math

import jax
import jax.numpy as jnp
from jax.experimental import pallas as pl
from jax.experimental.pallas import tpu as pltpu


# -----------------------------------------------------------------------------
# Fused Pallas kernel: depth x encoder layer + MLP head, per batch tile
# -----------------------------------------------------------------------------
def fused_transformer_kernel(x_ref, *refs, depth, n_heads, n_mlp):
    """refs = [16 weight refs per encoder layer] + [2 refs per MLP layer] + [o_ref]."""
    o_ref = refs[-1]
    wr = refs[:-1]

    Bt, S, E = x_ref.shape
    hd = E // n_heads
    scale = 1.0 / math.sqrt(hd)
    bf16 = jnp.bfloat16
    f32 = jnp.float32

    def layer_norm(y, w, b):
        mu = jnp.mean(y, axis=-1, keepdims=True)
        var = jnp.mean((y - mu) ** 2, axis=-1, keepdims=True)
        return (y - mu) * jax.lax.rsqrt(var + 1e-5) * w + b

    def ffn_ln(y, w1, b1, w2, b2, ln2w, ln2b):
        # bf16 matmul operands, f32 accumulation / residual / LayerNorm.
        f = jnp.maximum(
            jnp.dot(y.astype(bf16), w1, preferred_element_type=f32) + b1, 0.0)
        f = jnp.dot(f.astype(bf16), w2, preferred_element_type=f32) + b2
        return layer_norm(y + f, ln2w, ln2b)

    # keep activations 2-D (lane-dense rows) for all linear layers / layernorms
    h2d = x_ref[...].astype(f32).reshape(Bt * S, E)            # (Bt*S, E), f32

    cls = None
    idx = 0
    for li in range(depth):                                    # static layer loop
        (wqh, bqh, wkh, bkh, wvh, bvh, woh, bo,
         ln1w, ln1b, w1, b1, w2, b2, ln2w, ln2b) = [wr[idx + j] for j in range(16)]
        idx += 16

        x_bf = h2d.astype(bf16)                                # (Bt*S, E) bf16

        # --- multi-head self attention --------------------------------------
        # Per-head weights are pre-split in the wrapper: no lane slicing of the
        # fused projections and no lane concatenate; the output projection is
        # accumulated head-by-head (concat(heads) @ Wo == sum_h head_h @ Wo_h).
        attn = jnp.zeros((Bt * S, E), f32)
        for hh in range(n_heads):                              # static head loop
            q = (jnp.dot(x_bf, wqh[hh], preferred_element_type=f32)
                 + bqh[hh]) * scale
            k = jnp.dot(x_bf, wkh[hh], preferred_element_type=f32) + bkh[hh]
            v = jnp.dot(x_bf, wvh[hh], preferred_element_type=f32) + bvh[hh]
            q3 = q.reshape(Bt, S, hd).astype(bf16)
            k3 = k.reshape(Bt, S, hd).astype(bf16)
            v3 = v.reshape(Bt, S, hd).astype(bf16)

            s = jnp.einsum('bqd,bkd->bqk', q3, k3,
                           preferred_element_type=f32)         # (Bt, S, S), f32
            s = s - jnp.max(s, axis=-1, keepdims=True)
            p = jnp.exp(s)
            p = p * pl.reciprocal(jnp.sum(p, axis=-1, keepdims=True), approx=True)
            o_h = jnp.einsum('bqk,bkd->bqd', p.astype(bf16), v3,
                             preferred_element_type=f32)       # (Bt, S, hd)
            attn = attn + jnp.dot(o_h.reshape(Bt * S, hd).astype(bf16), woh[hh],
                                  preferred_element_type=f32)
        attn = attn + bo[...]

        # post-norm residual blocks (PyTorch default norm_first=False)
        x1 = layer_norm(h2d + attn, ln1w[...], ln1b[...])

        if li < depth - 1:
            # --- feed forward (ReLU) on all tokens --------------------------
            h2d = ffn_ln(x1, w1[...], b1[...], w2[...], b2[...],
                         ln2w[...], ln2b[...])
        else:
            # Only the CLS token feeds the head: last layer's FFN + LN2 run on
            # the CLS rows only.
            cls_in = x1.reshape(Bt, S, E)[:, 0, :]             # (Bt, E)
            cls = ffn_ln(cls_in, w1[...], b1[...], w2[...], b2[...],
                         ln2w[...], ln2b[...])

    # --- MLP classification head ---------------------------------------------
    hm = cls                                                   # (Bt, E), f32
    for i in range(n_mlp):
        w = wr[idx + 2 * i][...]
        b = wr[idx + 2 * i + 1][...]
        hm = jnp.dot(hm.astype(bf16), w, preferred_element_type=f32) + b
        if i < n_mlp - 1:
            hm = jnp.maximum(hm, 0.0)                          # mlp_act = ReLU

    o_ref[...] = hm.reshape(Bt, 1, -1)                         # (Bt, 1, C_pad)


# -----------------------------------------------------------------------------
# pallas_call wrapper (single launch for the whole forward pass)
# -----------------------------------------------------------------------------
def fused_forward(h, layer_params, mlp_params, n_heads):
    B, S, E = h.shape
    assert E % n_heads == 0, "emb_size must be divisible by n_heads"
    hd = E // n_heads
    depth = len(layer_params)
    n_mlp = len(mlp_params)
    bf16 = jnp.bfloat16

    # pad the final head layer to a lane-dense (multiple-of-128) output width
    w_last, b_last = mlp_params[-1]
    C = w_last.shape[1]
    C_pad = ((C + 127) // 128) * 128
    w_pad = jnp.zeros((w_last.shape[0], C_pad), w_last.dtype).at[:, :C].set(w_last)
    b_pad = jnp.zeros((1, C_pad), b_last.dtype).at[:, :C].set(b_last)
    mlp_padded = list(mlp_params[:-1]) + [(w_pad, b_pad)]

    # per-head splits, done once in the wrapper (no in-kernel slicing/concat)
    def col_heads(w):    # (E, E) -> (H, E, hd)   column blocks of W (in, out)
        return jnp.transpose(w.reshape(E, n_heads, hd), (1, 0, 2))

    def col_heads_b(b):  # (1, E) -> (H, 1, hd)
        return jnp.transpose(b.reshape(1, n_heads, hd), (1, 0, 2))

    def row_heads(w):    # (E, E) -> (H, hd, E)   row blocks of W_out (in, out)
        return w.reshape(n_heads, hd, E)

    flat = []
    for p in layer_params:
        flat += [
            col_heads(p["wq"]).astype(bf16), col_heads_b(p["bq"]),
            col_heads(p["wk"]).astype(bf16), col_heads_b(p["bk"]),
            col_heads(p["wv"]).astype(bf16), col_heads_b(p["bv"]),
            row_heads(p["wo"]).astype(bf16), p["bo"],
            p["ln1w"], p["ln1b"],
            p["w1"].astype(bf16), p["b1"],
            p["w2"].astype(bf16), p["b2"],
            p["ln2w"], p["ln2b"],
        ]
    for (w, b) in mlp_padded:
        flat += [w.astype(bf16), b]

    # Whole batch in one grid step (grid is a serial loop on v5e/v6e; the old
    # 2-step grid just doubled fixed overhead).  Split into 2 "parallel" tiles
    # only when per-tile work is big enough to hide the per-step overhead
    # (then v7x's two TensorCores each get a tile).
    if B % 2 == 0 and (B // 2) * S * E >= (1 << 18):
        bt = B // 2
    else:
        bt = B
    grid = (B // bt,)

    def const_spec(arr):
        nd = arr.ndim
        return pl.BlockSpec(arr.shape, lambda i, _nd=nd: (0,) * _nd)

    in_specs = [pl.BlockSpec((bt, S, E), lambda i: (i, 0, 0))]
    in_specs += [const_spec(a) for a in flat]
    out_specs = pl.BlockSpec((bt, 1, C_pad), lambda i: (i, 0, 0))

    # rough cost estimate so XLA schedules the surrounding glue sensibly
    dim_ff = layer_params[0]["w1"].shape[1]
    flops = depth * (2 * B * S * E * (4 * E + 2 * dim_ff) + 4 * B * S * S * E)
    for (w, _) in mlp_padded:
        flops += 2 * B * int(w.shape[0]) * int(w.shape[1])
    transcendentals = depth * B * n_heads * S * S
    weight_bytes = sum(int(a.size) * a.dtype.itemsize for a in flat)
    io_bytes = int(h.size) * h.dtype.itemsize + B * C_pad * 4
    bytes_accessed = weight_bytes + io_bytes

    # explicit VMEM budget: resident weights (x2 for pipeline buffering) +
    # activation tile + generous headroom for in-kernel temporaries.
    vmem_limit = int(min(64 * 1024 * 1024,
                         2 * (weight_bytes + io_bytes) + 16 * 1024 * 1024))

    kernel = functools.partial(fused_transformer_kernel,
                               depth=depth, n_heads=n_heads, n_mlp=n_mlp)
    out = pl.pallas_call(
        kernel,
        out_shape=jax.ShapeDtypeStruct((B, 1, C_pad), jnp.float32),
        grid=grid,
        in_specs=in_specs,
        out_specs=out_specs,
        compiler_params=pltpu.CompilerParams(
            dimension_semantics=("parallel",),
            vmem_limit_bytes=vmem_limit),
        cost_estimate=pl.CostEstimate(
            flops=int(flops),
            transcendentals=int(transcendentals),
            bytes_accessed=int(bytes_accessed)),
    )(h, *flat)

    return out[:, 0, :C]                                       # (B, num_classes)


# -----------------------------------------------------------------------------
# Model: parameter init + forward
# -----------------------------------------------------------------------------
def init_params(key, emb_size, n_heads, depth, num_classes, scaler, mlp_num_layers):
    dim_ff = scaler * emb_size
    n_keys = 2 + depth * 12 + mlp_num_layers * 2
    keys = iter(jax.random.split(key, n_keys))

    def nrm(shape, s=0.1):
        return (s * jax.random.normal(next(keys), shape)).astype(jnp.float32)

    params = {"cls_token": nrm((1, 1, emb_size), 1.0)}   # torch.randn(1,1,emb)

    # NOTE: all Linear weights are stored PRE-TRANSPOSED as (in, out): y = x @ W + b
    layers = []
    for _ in range(depth):
        layers.append(dict(
            wq=nrm((emb_size, emb_size)), bq=nrm((1, emb_size)),
            wk=nrm((emb_size, emb_size)), bk=nrm((1, emb_size)),
            wv=nrm((emb_size, emb_size)), bv=nrm((1, emb_size)),
            wo=nrm((emb_size, emb_size)), bo=nrm((1, emb_size)),
            ln1w=jnp.ones((1, emb_size), jnp.float32),
            ln1b=jnp.zeros((1, emb_size), jnp.float32),
            w1=nrm((emb_size, dim_ff)), b1=nrm((1, dim_ff)),
            w2=nrm((dim_ff, emb_size)), b2=nrm((1, emb_size)),
            ln2w=jnp.ones((1, emb_size), jnp.float32),
            ln2b=jnp.zeros((1, emb_size), jnp.float32),
        ))
    params["layers"] = layers

    # MLP head: [emb] -> [emb]*(L-1) -> [num_classes]
    dims = [emb_size] * mlp_num_layers + [num_classes]
    mlp = []
    for i in range(mlp_num_layers):
        mlp.append((nrm((dims[i], dims[i + 1])), nrm((1, dims[i + 1]))))
    params["mlp"] = mlp
    return params


def concept_graph_transformer(x, params, n_heads):
    """x: (batch, num_concepts, emb_size) -> (batch, n_classes)."""
    B, N, E = x.shape
    # PrependClassToken (glue: broadcast + concat, done outside the kernel)
    cls = jnp.broadcast_to(params["cls_token"], (B, 1, E)).astype(jnp.float32)
    h = jnp.concatenate([cls, x.astype(jnp.float32)], axis=1)   # (B, N+1, E)
    # fused: depth x TransformerEncoderLayer + CLS selection + MLP head
    return fused_forward(h, params["layers"], params["mlp"], n_heads)


# -----------------------------------------------------------------------------
if __name__ == "__main__":
    emb_size = 32
    n_heads = 4
    depth = 2
    num_classes = 3
    scaler = 2
    mlp_num_layers = 2
    batch = 2
    num_concepts = 7   # -> seq len 8 after prepending CLS token

    key = jax.random.PRNGKey(0)
    k_x, k_p = jax.random.split(key)
    x = jax.random.normal(k_x, (batch, num_concepts, emb_size), dtype=jnp.float32)
    params = init_params(k_p, emb_size, n_heads, depth,
                         num_classes, scaler, mlp_num_layers)

    out = concept_graph_transformer(x, params, n_heads)
    out = jax.block_until_ready(out)
    assert out.shape == (batch, num_classes), out.shape
    assert jnp.all(jnp.isfinite(out))
    print("KERNEL_OK")
</pallas_src>

<mosaic_0001>
module attributes {stable_mosaic.version = 11 : i64} {
  func.func @fused_transformer_kernel(%arg0: i32, %arg1: memref<2x8x32xf32, #tpu.memory_space<vmem>>, %arg2: memref<4x32x8xbf16, #tpu.memory_space<vmem>>, %arg3: memref<4x1x8xf32, #tpu.memory_space<vmem>>, %arg4: memref<4x32x8xbf16, #tpu.memory_space<vmem>>, %arg5: memref<4x1x8xf32, #tpu.memory_space<vmem>>, %arg6: memref<4x32x8xbf16, #tpu.memory_space<vmem>>, %arg7: memref<4x1x8xf32, #tpu.memory_space<vmem>>, %arg8: memref<4x8x32xbf16, #tpu.memory_space<vmem>>, %arg9: memref<1x32xf32, #tpu.memory_space<vmem>>, %arg10: memref<1x32xf32, #tpu.memory_space<vmem>>, %arg11: memref<1x32xf32, #tpu.memory_space<vmem>>, %arg12: memref<32x64xbf16, #tpu.memory_space<vmem>>, %arg13: memref<1x64xf32, #tpu.memory_space<vmem>>, %arg14: memref<64x32xbf16, #tpu.memory_space<vmem>>, %arg15: memref<1x32xf32, #tpu.memory_space<vmem>>, %arg16: memref<1x32xf32, #tpu.memory_space<vmem>>, %arg17: memref<1x32xf32, #tpu.memory_space<vmem>>, %arg18: memref<4x32x8xbf16, #tpu.memory_space<vmem>>, %arg19: memref<4x1x8xf32, #tpu.memory_space<vmem>>, %arg20: memref<4x32x8xbf16, #tpu.memory_space<vmem>>, %arg21: memref<4x1x8xf32, #tpu.memory_space<vmem>>, %arg22: memref<4x32x8xbf16, #tpu.memory_space<vmem>>, %arg23: memref<4x1x8xf32, #tpu.memory_space<vmem>>, %arg24: memref<4x8x32xbf16, #tpu.memory_space<vmem>>, %arg25: memref<1x32xf32, #tpu.memory_space<vmem>>, %arg26: memref<1x32xf32, #tpu.memory_space<vmem>>, %arg27: memref<1x32xf32, #tpu.memory_space<vmem>>, %arg28: memref<32x64xbf16, #tpu.memory_space<vmem>>, %arg29: memref<1x64xf32, #tpu.memory_space<vmem>>, %arg30: memref<64x32xbf16, #tpu.memory_space<vmem>>, %arg31: memref<1x32xf32, #tpu.memory_space<vmem>>, %arg32: memref<1x32xf32, #tpu.memory_space<vmem>>, %arg33: memref<1x32xf32, #tpu.memory_space<vmem>>, %arg34: memref<32x32xbf16, #tpu.memory_space<vmem>>, %arg35: memref<1x32xf32, #tpu.memory_space<vmem>>, %arg36: memref<32x128xbf16, #tpu.memory_space<vmem>>, %arg37: memref<1x128xf32, #tpu.memory_space<vmem>>, %arg38: memref<2x1x128xf32, #tpu.memory_space<vmem>>) attributes {dimension_semantics = [#tpu.dimension_semantics<parallel>], iteration_bounds = array<i64: 1>, scalar_prefetch = 0 : i64, scratch_operands = 0 : i64, tpu.core_type = #tpu.core_type<tc>, window_params = [{transform_indices = @transform_0, window_bounds = array<i64: 2, 8, 32>}, {pipeline_mode = #tpu.pipeline_mode<synchronous>, transform_indices = @transform_1, window_bounds = array<i64: 4, 32, 8>}, {pipeline_mode = #tpu.pipeline_mode<synchronous>, transform_indices = @transform_2, window_bounds = array<i64: 4, 1, 8>}, {pipeline_mode = #tpu.pipeline_mode<synchronous>, transform_indices = @transform_3, window_bounds = array<i64: 4, 32, 8>}, {pipeline_mode = #tpu.pipeline_mode<synchronous>, transform_indices = @transform_4, window_bounds = array<i64: 4, 1, 8>}, {pipeline_mode = #tpu.pipeline_mode<synchronous>, transform_indices = @transform_5, window_bounds = array<i64: 4, 32, 8>}, {pipeline_mode = #tpu.pipeline_mode<synchronous>, transform_indices = @transform_6, window_bounds = array<i64: 4, 1, 8>}, {pipeline_mode = #tpu.pipeline_mode<synchronous>, transform_indices = @transform_7, window_bounds = array<i64: 4, 8, 32>}, {pipeline_mode = #tpu.pipeline_mode<synchronous>, transform_indices = @transform_8, window_bounds = array<i64: 1, 32>}, {pipeline_mode = #tpu.pipeline_mode<synchronous>, transform_indices = @transform_9, window_bounds = array<i64: 1, 32>}, {pipeline_mode = #tpu.pipeline_mode<synchronous>, transform_indices = @transform_10, window_bounds = array<i64: 1, 32>}, {pipeline_mode = #tpu.pipeline_mode<synchronous>, transform_indices = @transform_11, window_bounds = array<i64: 32, 64>}, {pipeline_mode = #tpu.pipeline_mode<synchronous>, transform_indices = @transform_12, window_bounds = array<i64: 1, 64>}, {pipeline_mode = #tpu.pipeline_mode<synchronous>, transform_indices = @transform_13, window_bounds = array<i64: 64, 32>}, {pipeline_mode = #tpu.pipeline_mode<synchronous>, transform_indices = @transform_14, window_bounds = array<i64: 1, 32>}, {pipeline_mode = #tpu.pipeline_mode<synchronous>, transform_indices = @transform_15, window_bounds = array<i64: 1, 32>}, {pipeline_mode = #tpu.pipeline_mode<synchronous>, transform_indices = @transform_16, window_bounds = array<i64: 1, 32>}, {pipeline_mode = #tpu.pipeline_mode<synchronous>, transform_indices = @transform_17, window_bounds = array<i64: 4, 32, 8>}, {pipeline_mode = #tpu.pipeline_mode<synchronous>, transform_indices = @transform_18, window_bounds = array<i64: 4, 1, 8>}, {pipeline_mode = #tpu.pipeline_mode<synchronous>, transform_indices = @transform_19, window_bounds = array<i64: 4, 32, 8>}, {pipeline_mode = #tpu.pipeline_mode<synchronous>, transform_indices = @transform_20, window_bounds = array<i64: 4, 1, 8>}, {pipeline_mode = #tpu.pipeline_mode<synchronous>, transform_indices = @transform_21, window_bounds = array<i64: 4, 32, 8>}, {pipeline_mode = #tpu.pipeline_mode<synchronous>, transform_indices = @transform_22, window_bounds = array<i64: 4, 1, 8>}, {pipeline_mode = #tpu.pipeline_mode<synchronous>, transform_indices = @transform_23, window_bounds = array<i64: 4, 8, 32>}, {pipeline_mode = #tpu.pipeline_mode<synchronous>, transform_indices = @transform_24, window_bounds = array<i64: 1, 32>}, {pipeline_mode = #tpu.pipeline_mode<synchronous>, transform_indices = @transform_25, window_bounds = array<i64: 1, 32>}, {pipeline_mode = #tpu.pipeline_mode<synchronous>, transform_indices = @transform_26, window_bounds = array<i64: 1, 32>}, {pipeline_mode = #tpu.pipeline_mode<synchronous>, transform_indices = @transform_27, window_bounds = array<i64: 32, 64>}, {pipeline_mode = #tpu.pipeline_mode<synchronous>, transform_indices = @transform_28, window_bounds = array<i64: 1, 64>}, {pipeline_mode = #tpu.pipeline_mode<synchronous>, transform_indices = @transform_29, window_bounds = array<i64: 64, 32>}, {pipeline_mode = #tpu.pipeline_mode<synchronous>, transform_indices = @transform_30, window_bounds = array<i64: 1, 32>}, {pipeline_mode = #tpu.pipeline_mode<synchronous>, transform_indices = @transform_31, window_bounds = array<i64: 1, 32>}, {pipeline_mode = #tpu.pipeline_mode<synchronous>, transform_indices = @transform_32, window_bounds = array<i64: 1, 32>}, {pipeline_mode = #tpu.pipeline_mode<synchronous>, transform_indices = @transform_33, window_bounds = array<i64: 32, 32>}, {pipeline_mode = #tpu.pipeline_mode<synchronous>, transform_indices = @transform_34, window_bounds = array<i64: 1, 32>}, {pipeline_mode = #tpu.pipeline_mode<synchronous>, transform_indices = @transform_35, window_bounds = array<i64: 32, 128>}, {pipeline_mode = #tpu.pipeline_mode<synchronous>, transform_indices = @transform_36, window_bounds = array<i64: 1, 128>}, {transform_indices = @transform_37, window_bounds = array<i64: 2, 1, 128>}]} {
    %c0 = arith.constant 0 : index
    %c0_0 = arith.constant 0 : index
    %c0_1 = arith.constant 0 : index
    %0 = vector.load %arg1[%c0, %c0_0, %c0_1] : memref<2x8x32xf32, #tpu.memory_space<vmem>>, vector<2x8x32xf32>
    %1 = vector.shape_cast %0 : vector<2x8x32xf32> to vector<16x32xf32>
    %2 = arith.truncf %1 : vector<16x32xf32> to vector<16x32xbf16>
    %cst = arith.constant 0.000000e+00 : f32
    %3 = vector.broadcast %cst : f32 to vector<16x32xf32>
    %c0_2 = arith.constant 0 : index
    %c0_3 = arith.constant 0 : index
    %c0_4 = arith.constant 0 : index
    %4 = vector.load %arg2[%c0_2, %c0_3, %c0_4] : memref<4x32x8xbf16, #tpu.memory_space<vmem>>, vector<1x32x8xbf16>
    %5 = vector.shape_cast %4 : vector<1x32x8xbf16> to vector<32x8xbf16>
    %cst_5 = arith.constant dense<0.000000e+00> : vector<16x8xf32>
    %6 = tpu.matmul %2, %5, %cst_5 {dimension_numbers = #tpu.dot_dimension_numbers<[1], [0], [0], [1], [0, 0, 1, 1], [], []>} : vector<16x32xbf16>, vector<32x8xbf16>, vector<16x8xf32> -> vector<16x8xf32>
    %c0_6 = arith.constant 0 : index
    %c0_7 = arith.constant 0 : index
    %c0_8 = arith.constant 0 : index
    %7 = vector.load %arg3[%c0_6, %c0_7, %c0_8] : memref<4x1x8xf32, #tpu.memory_space<vmem>>, vector<1x1x8xf32>
    %8 = vector.shape_cast %7 : vector<1x1x8xf32> to vector<1x8xf32>
    %9 = vector.broadcast %8 : vector<1x8xf32> to vector<16x8xf32>
    %10 = arith.addf %6, %9 : vector<16x8xf32>
    %cst_9 = arith.constant 0.353553385 : f32
    %11 = vector.broadcast %cst_9 : f32 to vector<16x8xf32>
    %12 = arith.mulf %10, %11 : vector<16x8xf32>
    %c0_10 = arith.constant 0 : index
    %c0_11 = arith.constant 0 : index
    %c0_12 = arith.constant 0 : index
    %13 = vector.load %arg4[%c0_10, %c0_11, %c0_12] : memref<4x32x8xbf16, #tpu.memory_space<vmem>>, vector<1x32x8xbf16>
    %14 = vector.shape_cast %13 : vector<1x32x8xbf16> to vector<32x8xbf16>
    %cst_13 = arith.constant dense<0.000000e+00> : vector<16x8xf32>
    %15 = tpu.matmul %2, %14, %cst_13 {dimension_numbers = #tpu.dot_dimension_numbers<[1], [0], [0], [1], [0, 0, 1, 1], [], []>} : vector<16x32xbf16>, vector<32x8xbf16>, vector<16x8xf32> -> vector<16x8xf32>
    %c0_14 = arith.constant 0 : index
    %c0_15 = arith.constant 0 : index
    %c0_16 = arith.constant 0 : index
    %16 = vector.load %arg5[%c0_14, %c0_15, %c0_16] : memref<4x1x8xf32, #tpu.memory_space<vmem>>, vector<1x1x8xf32>
    %17 = vector.shape_cast %16 : vector<1x1x8xf32> to vector<1x8xf32>
    %18 = vector.broadcast %17 : vector<1x8xf32> to vector<16x8xf32>
    %19 = arith.addf %15, %18 : vector<16x8xf32>
    %c0_17 = arith.constant 0 : index
    %c0_18 = arith.constant 0 : index
    %c0_19 = arith.constant 0 : index
    %20 = vector.load %arg6[%c0_17, %c0_18, %c0_19] : memref<4x32x8xbf16, #tpu.memory_space<vmem>>, vector<1x32x8xbf16>
    %21 = vector.shape_cast %20 : vector<1x32x8xbf16> to vector<32x8xbf16>
    %cst_20 = arith.constant dense<0.000000e+00> : vector<16x8xf32>
    %22 = tpu.matmul %2, %21, %cst_20 {dimension_numbers = #tpu.dot_dimension_numbers<[1], [0], [0], [1], [0, 0, 1, 1], [], []>} : vector<16x32xbf16>, vector<32x8xbf16>, vector<16x8xf32> -> vector<16x8xf32>
    %c0_21 = arith.constant 0 : index
    %c0_22 = arith.constant 0 : index
    %c0_23 = arith.constant 0 : index
    %23 = vector.load %arg7[%c0_21, %c0_22, %c0_23] : memref<4x1x8xf32, #tpu.memory_space<vmem>>, vector<1x1x8xf32>
    %24 = vector.shape_cast %23 : vector<1x1x8xf32> to vector<1x8xf32>
    %25 = vector.broadcast %24 : vector<1x8xf32> to vector<16x8xf32>
    %26 = arith.addf %22, %25 : vector<16x8xf32>
    %27 = vector.shape_cast %12 : vector<16x8xf32> to vector<2x8x8xf32>
    %28 = arith.truncf %27 : vector<2x8x8xf32> to vector<2x8x8xbf16>
    %29 = vector.shape_cast %19 : vector<16x8xf32> to vector<2x8x8xf32>
    %30 = arith.truncf %29 : vector<2x8x8xf32> to vector<2x8x8xbf16>
    %31 = vector.shape_cast %26 : vector<16x8xf32> to vector<2x8x8xf32>
    %32 = arith.truncf %31 : vector<2x8x8xf32> to vector<2x8x8xbf16>
    "tpu.trace_start"() <{level = 10 : i32, message = "bqd,bkd->bqk"}> : () -> ()
    %cst_24 = arith.constant dense<0.000000e+00> : vector<2x8x8xf32>
    %33 = tpu.matmul %28, %30, %cst_24 {dimension_numbers = #tpu.dot_dimension_numbers<[2], [2], [1], [1], [0, 0, 0, 1, 1, 1], [0], [0]>} : vector<2x8x8xbf16>, vector<2x8x8xbf16>, vector<2x8x8xf32> -> vector<2x8x8xf32>
    "tpu.trace_stop"() : () -> ()
    %cst_25 = arith.constant dense<0xFF800000> : vector<2x8xf32>
    %34 = vector.multi_reduction <maximumf>, %33, %cst_25 [2] : vector<2x8x8xf32> to vector<2x8xf32>
    %35 = vector.shape_cast %34 : vector<2x8xf32> to vector<2x8x1xf32>
    %36 = vector.broadcast %35 : vector<2x8x1xf32> to vector<2x8x8xf32>
    %37 = arith.subf %33, %36 : vector<2x8x8xf32>
    %38 = math.exp %37 : vector<2x8x8xf32>
    %cst_26 = arith.constant dense<0.000000e+00> : vector<2x8xf32>
    %39 = vector.multi_reduction <add>, %38, %cst_26 [2] : vector<2x8x8xf32> to vector<2x8xf32>
    %40 = vector.shape_cast %39 : vector<2x8xf32> to vector<2x8x1xf32>
    %41 = tpu.reciprocal %40 {approx = true} : vector<2x8x1xf32> -> vector<2x8x1xf32>
    %42 = vector.broadcast %41 : vector<2x8x1xf32> to vector<2x8x8xf32>
    %43 = arith.mulf %38, %42 : vector<2x8x8xf32>
    %44 = arith.truncf %43 : vector<2x8x8xf32> to vector<2x8x8xbf16>
    "tpu.trace_start"() <{level = 10 : i32, message = "bqk,bkd->bqd"}> : () -> ()
    %cst_27 = arith.constant dense<0.000000e+00> : vector<2x8x8xf32>
    %45 = tpu.matmul %44, %32, %cst_27 {dimension_numbers = #tpu.dot_dimension_numbers<[2], [1], [1], [2], [0, 0, 0, 1, 1, 2], [0], [0]>} : vector<2x8x8xbf16>, vector<2x8x8xbf16>, vector<2x8x8xf32> -> vector<2x8x8xf32>
    "tpu.trace_stop"() : () -> ()
    %46 = vector.shape_cast %45 : vector<2x8x8xf32> to vector<16x8xf32>
    %47 = arith.truncf %46 : vector<16x8xf32> to vector<16x8xbf16>
    %c0_28 = arith.constant 0 : index
    %c0_29 = arith.constant 0 : index
    %c0_30 = arith.constant 0 : index
    %48 = vector.load %arg8[%c0_28, %c0_29, %c0_30] : memref<4x8x32xbf16, #tpu.memory_space<vmem>>, vector<1x8x32xbf16>
    %49 = vector.shape_cast %48 : vector<1x8x32xbf16> to vector<8x32xbf16>
    %cst_31 = arith.constant dense<0.000000e+00> : vector<16x32xf32>
    %50 = tpu.matmul %47, %49, %cst_31 {dimension_numbers = #tpu.dot_dimension_numbers<[1], [0], [0], [1], [0, 0, 1, 1], [], []>} : vector<16x8xbf16>, vector<8x32xbf16>, vector<16x32xf32> -> vector<16x32xf32>
    %51 = arith.addf %3, %50 : vector<16x32xf32>
    %c1 = arith.constant 1 : index
    %c0_32 = arith.constant 0 : index
    %c0_33 = arith.constant 0 : index
    %52 = vector.load %arg2[%c1, %c0_32, %c0_33] : memref<4x32x8xbf16, #tpu.memory_space<vmem>>, vector<1x32x8xbf16>
    %53 = vector.shape_cast %52 : vector<1x32x8xbf16> to vector<32x8xbf16>
    %cst_34 = arith.constant dense<0.000000e+00> : vector<16x8xf32>
    %54 = tpu.matmul %2, %53, %cst_34 {dimension_numbers = #tpu.dot_dimension_numbers<[1], [0], [0], [1], [0, 0, 1, 1], [], []>} : vector<16x32xbf16>, vector<32x8xbf16>, vector<16x8xf32> -> vector<16x8xf32>
    %c1_35 = arith.constant 1 : index
    %c0_36 = arith.constant 0 : index
    %c0_37 = arith.constant 0 : index
    %55 = vector.load %arg3[%c1_35, %c0_36, %c0_37] : memref<4x1x8xf32, #tpu.memory_space<vmem>>, vector<1x1x8xf32>
    %56 = vector.shape_cast %55 : vector<1x1x8xf32> to vector<1x8xf32>
    %57 = vector.broadcast %56 : vector<1x8xf32> to vector<16x8xf32>
    %58 = arith.addf %54, %57 : vector<16x8xf32>
    %cst_38 = arith.constant 0.353553385 : f32
    %59 = vector.broadcast %cst_38 : f32 to vector<16x8xf32>
    %60 = arith.mulf %58, %59 : vector<16x8xf32>
    %c1_39 = arith.constant 1 : index
    %c0_40 = arith.constant 0 : index
    %c0_41 = arith.constant 0 : index
    %61 = vector.load %arg4[%c1_39, %c0_40, %c0_41] : memref<4x32x8xbf16, #tpu.memory_space<vmem>>, vector<1x32x8xbf16>
    %62 = vector.shape_cast %61 : vector<1x32x8xbf16> to vector<32x8xbf16>
    %cst_42 = arith.constant dense<0.000000e+00> : vector<16x8xf32>
    %63 = tpu.matmul %2, %62, %cst_42 {dimension_numbers = #tpu.dot_dimension_numbers<[1], [0], [0], [1], [0, 0, 1, 1], [], []>} : vector<16x32xbf16>, vector<32x8xbf16>, vector<16x8xf32> -> vector<16x8xf32>
    %c1_43 = arith.constant 1 : index
    %c0_44 = arith.constant 0 : index
    %c0_45 = arith.constant 0 : index
    %64 = vector.load %arg5[%c1_43, %c0_44, %c0_45] : memref<4x1x8xf32, #tpu.memory_space<vmem>>, vector<1x1x8xf32>
    %65 = vector.shape_cast %64 : vector<1x1x8xf32> to vector<1x8xf32>
    %66 = vector.broadcast %65 : vector<1x8xf32> to vector<16x8xf32>
    %67 = arith.addf %63, %66 : vector<16x8xf32>
    %c1_46 = arith.constant 1 : index
    %c0_47 = arith.constant 0 : index
    %c0_48 = arith.constant 0 : index
    %68 = vector.load %arg6[%c1_46, %c0_47, %c0_48] : memref<4x32x8xbf16, #tpu.memory_space<vmem>>, vector<1x32x8xbf16>
    %69 = vector.shape_cast %68 : vector<1x32x8xbf16> to vector<32x8xbf16>
    %cst_49 = arith.constant dense<0.000000e+00> : vector<16x8xf32>
    %70 = tpu.matmul %2, %69, %cst_49 {dimension_numbers = #tpu.dot_dimension_numbers<[1], [0], [0], [1], [0, 0, 1, 1], [], []>} : vector<16x32xbf16>, vector<32x8xbf16>, vector<16x8xf32> -> vector<16x8xf32>
    %c1_50 = arith.constant 1 : index
    %c0_51 = arith.constant 0 : index
    %c0_52 = arith.constant 0 : index
    %71 = vector.load %arg7[%c1_50, %c0_51, %c0_52] : memref<4x1x8xf32, #tpu.memory_space<vmem>>, vector<1x1x8xf32>
    %72 = vector.shape_cast %71 : vector<1x1x8xf32> to vector<1x8xf32>
    %73 = vector.broadcast %72 : vector<1x8xf32> to vector<16x8xf32>
    %74 = arith.addf %70, %73 : vector<16x8xf32>
    %75 = vector.shape_cast %60 : vector<16x8xf32> to vector<2x8x8xf32>
    %76 = arith.truncf %75 : vector<2x8x8xf32> to vector<2x8x8xbf16>
    %77 = vector.shape_cast %67 : vector<16x8xf32> to vector<2x8x8xf32>
    %78 = arith.truncf %77 : vector<2x8x8xf32> to vector<2x8x8xbf16>
    %79 = vector.shape_cast %74 : vector<16x8xf32> to vector<2x8x8xf32>
    %80 = arith.truncf %79 : vector<2x8x8xf32> to vector<2x8x8xbf16>
    "tpu.trace_start"() <{level = 10 : i32, message = "bqd,bkd->bqk"}> : () -> ()
    %cst_53 = arith.constant dense<0.000000e+00> : vector<2x8x8xf32>
    %81 = tpu.matmul %76, %78, %cst_53 {dimension_numbers = #tpu.dot_dimension_numbers<[2], [2], [1], [1], [0, 0, 0, 1, 1, 1], [0], [0]>} : vector<2x8x8xbf16>, vector<2x8x8xbf16>, vector<2x8x8xf32> -> vector<2x8x8xf32>
    "tpu.trace_stop"() : () -> ()
    %cst_54 = arith.constant dense<0xFF800000> : vector<2x8xf32>
    %82 = vector.multi_reduction <maximumf>, %81, %cst_54 [2] : vector<2x8x8xf32> to vector<2x8xf32>
    %83 = vector.shape_cast %82 : vector<2x8xf32> to vector<2x8x1xf32>
    %84 = vector.broadcast %83 : vector<2x8x1xf32> to vector<2x8x8xf32>
    %85 = arith.subf %81, %84 : vector<2x8x8xf32>
    %86 = math.exp %85 : vector<2x8x8xf32>
    %cst_55 = arith.constant dense<0.000000e+00> : vector<2x8xf32>
    %87 = vector.multi_reduction <add>, %86, %cst_55 [2] : vector<2x8x8xf32> to vector<2x8xf32>
    %88 = vector.shape_cast %87 : vector<2x8xf32> to vector<2x8x1xf32>
    %89 = tpu.reciprocal %88 {approx = true} : vector<2x8x1xf32> -> vector<2x8x1xf32>
    %90 = vector.broadcast %89 : vector<2x8x1xf32> to vector<2x8x8xf32>
    %91 = arith.mulf %86, %90 : vector<2x8x8xf32>
    %92 = arith.truncf %91 : vector<2x8x8xf32> to vector<2x8x8xbf16>
    "tpu.trace_start"() <{level = 10 : i32, message = "bqk,bkd->bqd"}> : () -> ()
    %cst_56 = arith.constant dense<0.000000e+00> : vector<2x8x8xf32>
    %93 = tpu.matmul %92, %80, %cst_56 {dimension_numbers = #tpu.dot_dimension_numbers<[2], [1], [1], [2], [0, 0, 0, 1, 1, 2], [0], [0]>} : vector<2x8x8xbf16>, vector<2x8x8xbf16>, vector<2x8x8xf32> -> vector<2x8x8xf32>
    "tpu.trace_stop"() : () -> ()
    %94 = vector.shape_cast %93 : vector<2x8x8xf32> to vector<16x8xf32>
    %95 = arith.truncf %94 : vector<16x8xf32> to vector<16x8xbf16>
    %c1_57 = arith.constant 1 : index
    %c0_58 = arith.constant 0 : index
    %c0_59 = arith.constant 0 : index
    %96 = vector.load %arg8[%c1_57, %c0_58, %c0_59] : memref<4x8x32xbf16, #tpu.memory_space<vmem>>, vector<1x8x32xbf16>
    %97 = vector.shape_cast %96 : vector<1x8x32xbf16> to vector<8x32xbf16>
    %cst_60 = arith.constant dense<0.000000e+00> : vector<16x32xf32>
    %98 = tpu.matmul %95, %97, %cst_60 {dimension_numbers = #tpu.dot_dimension_numbers<[1], [0], [0], [1], [0, 0, 1, 1], [], []>} : vector<16x8xbf16>, vector<8x32xbf16>, vector<16x32xf32> -> vector<16x32xf32>
    %99 = arith.addf %51, %98 : vector<16x32xf32>
    %c2 = arith.constant 2 : index
    %c0_61 = arith.constant 0 : index
    %c0_62 = arith.constant 0 : index
    %100 = vector.load %arg2[%c2, %c0_61, %c0_62] : memref<4x32x8xbf16, #tpu.memory_space<vmem>>, vector<1x32x8xbf16>
    %101 = vector.shape_cast %100 : vector<1x32x8xbf16> to vector<32x8xbf16>
    %cst_63 = arith.constant dense<0.000000e+00> : vector<16x8xf32>
    %102 = tpu.matmul %2, %101, %cst_63 {dimension_numbers = #tpu.dot_dimension_numbers<[1], [0], [0], [1], [0, 0, 1, 1], [], []>} : vector<16x32xbf16>, vector<32x8xbf16>, vector<16x8xf32> -> vector<16x8xf32>
    %c2_64 = arith.constant 2 : index
    %c0_65 = arith.constant 0 : index
    %c0_66 = arith.constant 0 : index
    %103 = vector.load %arg3[%c2_64, %c0_65, %c0_66] : memref<4x1x8xf32, #tpu.memory_space<vmem>>, vector<1x1x8xf32>
    %104 = vector.shape_cast %103 : vector<1x1x8xf32> to vector<1x8xf32>
    %105 = vector.broadcast %104 : vector<1x8xf32> to vector<16x8xf32>
    %106 = arith.addf %102, %105 : vector<16x8xf32>
    %cst_67 = arith.constant 0.353553385 : f32
    %107 = vector.broadcast %cst_67 : f32 to vector<16x8xf32>
    %108 = arith.mulf %106, %107 : vector<16x8xf32>
    %c2_68 = arith.constant 2 : index
    %c0_69 = arith.constant 0 : index
    %c0_70 = arith.constant 0 : index
    %109 = vector.load %arg4[%c2_68, %c0_69, %c0_70] : memref<4x32x8xbf16, #tpu.memory_space<vmem>>, vector<1x32x8xbf16>
    %110 = vector.shape_cast %109 : vector<1x32x8xbf16> to vector<32x8xbf16>
    %cst_71 = arith.constant dense<0.000000e+00> : vector<16x8xf32>
    %111 = tpu.matmul %2, %110, %cst_71 {dimension_numbers = #tpu.dot_dimension_numbers<[1], [0], [0], [1], [0, 0, 1, 1], [], []>} : vector<16x32xbf16>, vector<32x8xbf16>, vector<16x8xf32> -> vector<16x8xf32>
    %c2_72 = arith.constant 2 : index
    %c0_73 = arith.constant 0 : index
    %c0_74 = arith.constant 0 : index
    %112 = vector.load %arg5[%c2_72, %c0_73, %c0_74] : memref<4x1x8xf32, #tpu.memory_space<vmem>>, vector<1x1x8xf32>
    %113 = vector.shape_cast %112 : vector<1x1x8xf32> to vector<1x8xf32>
    %114 = vector.broadcast %113 : vector<1x8xf32> to vector<16x8xf32>
    %115 = arith.addf %111, %114 : vector<16x8xf32>
    %c2_75 = arith.constant 2 : index
    %c0_76 = arith.constant 0 : index
    %c0_77 = arith.constant 0 : index
    %116 = vector.load %arg6[%c2_75, %c0_76, %c0_77] : memref<4x32x8xbf16, #tpu.memory_space<vmem>>, vector<1x32x8xbf16>
    %117 = vector.shape_cast %116 : vector<1x32x8xbf16> to vector<32x8xbf16>
    %cst_78 = arith.constant dense<0.000000e+00> : vector<16x8xf32>
    %118 = tpu.matmul %2, %117, %cst_78 {dimension_numbers = #tpu.dot_dimension_numbers<[1], [0], [0], [1], [0, 0, 1, 1], [], []>} : vector<16x32xbf16>, vector<32x8xbf16>, vector<16x8xf32> -> vector<16x8xf32>
    %c2_79 = arith.constant 2 : index
    %c0_80 = arith.constant 0 : index
    %c0_81 = arith.constant 0 : index
    %119 = vector.load %arg7[%c2_79, %c0_80, %c0_81] : memref<4x1x8xf32, #tpu.memory_space<vmem>>, vector<1x1x8xf32>
    %120 = vector.shape_cast %119 : vector<1x1x8xf32> to vector<1x8xf32>
    %121 = vector.broadcast %120 : vector<1x8xf32> to vector<16x8xf32>
    %122 = arith.addf %118, %121 : vector<16x8xf32>
    %123 = vector.shape_cast %108 : vector<16x8xf32> to vector<2x8x8xf32>
    %124 = arith.truncf %123 : vector<2x8x8xf32> to vector<2x8x8xbf16>
    %125 = vector.shape_cast %115 : vector<16x8xf32> to vector<2x8x8xf32>
    %126 = arith.truncf %125 : vector<2x8x8xf32> to vector<2x8x8xbf16>
    %127 = vector.shape_cast %122 : vector<16x8xf32> to vector<2x8x8xf32>
    %128 = arith.truncf %127 : vector<2x8x8xf32> to vector<2x8x8xbf16>
    "tpu.trace_start"() <{level = 10 : i32, message = "bqd,bkd->bqk"}> : () -> ()
    %cst_82 = arith.constant dense<0.000000e+00> : vector<2x8x8xf32>
    %129 = tpu.matmul %124, %126, %cst_82 {dimension_numbers = #tpu.dot_dimension_numbers<[2], [2], [1], [1], [0, 0, 0, 1, 1, 1], [0], [0]>} : vector<2x8x8xbf16>, vector<2x8x8xbf16>, vector<2x8x8xf32> -> vector<2x8x8xf32>
    "tpu.trace_stop"() : () -> ()
    %cst_83 = arith.constant dense<0xFF800000> : vector<2x8xf32>
    %130 = vector.multi_reduction <maximumf>, %129, %cst_83 [2] : vector<2x8x8xf32> to vector<2x8xf32>
    %131 = vector.shape_cast %130 : vector<2x8xf32> to vector<2x8x1xf32>
    %132 = vector.broadcast %131 : vector<2x8x1xf32> to vector<2x8x8xf32>
    %133 = arith.subf %129, %132 : vector<2x8x8xf32>
    %134 = math.exp %133 : vector<2x8x8xf32>
    %cst_84 = arith.constant dense<0.000000e+00> : vector<2x8xf32>
    %135 = vector.multi_reduction <add>, %134, %cst_84 [2] : vector<2x8x8xf32> to vector<2x8xf32>
    %136 = vector.shape_cast %135 : vector<2x8xf32> to vector<2x8x1xf32>
    %137 = tpu.reciprocal %136 {approx = true} : vector<2x8x1xf32> -> vector<2x8x1xf32>
    %138 = vector.broadcast %137 : vector<2x8x1xf32> to vector<2x8x8xf32>
    %139 = arith.mulf %134, %138 : vector<2x8x8xf32>
    %140 = arith.truncf %139 : vector<2x8x8xf32> to vector<2x8x8xbf16>
    "tpu.trace_start"() <{level = 10 : i32, message = "bqk,bkd->bqd"}> : () -> ()
    %cst_85 = arith.constant dense<0.000000e+00> : vector<2x8x8xf32>
    %141 = tpu.matmul %140, %128, %cst_85 {dimension_numbers = #tpu.dot_dimension_numbers<[2], [1], [1], [2], [0, 0, 0, 1, 1, 2], [0], [0]>} : vector<2x8x8xbf16>, vector<2x8x8xbf16>, vector<2x8x8xf32> -> vector<2x8x8xf32>
    "tpu.trace_stop"() : () -> ()
    %142 = vector.shape_cast %141 : vector<2x8x8xf32> to vector<16x8xf32>
    %143 = arith.truncf %142 : vector<16x8xf32> to vector<16x8xbf16>
    %c2_86 = arith.constant 2 : index
    %c0_87 = arith.constant 0 : index
    %c0_88 = arith.constant 0 : index
    %144 = vector.load %arg8[%c2_86, %c0_87, %c0_88] : memref<4x8x32xbf16, #tpu.memory_space<vmem>>, vector<1x8x32xbf16>
    %145 = vector.shape_cast %144 : vector<1x8x32xbf16> to vector<8x32xbf16>
    %cst_89 = arith.constant dense<0.000000e+00> : vector<16x32xf32>
    %146 = tpu.matmul %143, %145, %cst_89 {dimension_numbers = #tpu.dot_dimension_numbers<[1], [0], [0], [1], [0, 0, 1, 1], [], []>} : vector<16x8xbf16>, vector<8x32xbf16>, vector<16x32xf32> -> vector<16x32xf32>
    %147 = arith.addf %99, %146 : vector<16x32xf32>
    %c3 = arith.constant 3 : index
    %c0_90 = arith.constant 0 : index
    %c0_91 = arith.constant 0 : index
    %148 = vector.load %arg2[%c3, %c0_90, %c0_91] : memref<4x32x8xbf16, #tpu.memory_space<vmem>>, vector<1x32x8xbf16>
    %149 = vector.shape_cast %148 : vector<1x32x8xbf16> to vector<32x8xbf16>
    %cst_92 = arith.constant dense<0.000000e+00> : vector<16x8xf32>
    %150 = tpu.matmul %2, %149, %cst_92 {dimension_numbers = #tpu.dot_dimension_numbers<[1], [0], [0], [1], [0, 0, 1, 1], [], []>} : vector<16x32xbf16>, vector<32x8xbf16>, vector<16x8xf32> -> vector<16x8xf32>
    %c3_93 = arith.constant 3 : index
    %c0_94 = arith.constant 0 : index
    %c0_95 = arith.constant 0 : index
    %151 = vector.load %arg3[%c3_93, %c0_94, %c0_95] : memref<4x1x8xf32, #tpu.memory_space<vmem>>, vector<1x1x8xf32>
    %152 = vector.shape_cast %151 : vector<1x1x8xf32> to vector<1x8xf32>
    %153 = vector.broadcast %152 : vector<1x8xf32> to vector<16x8xf32>
    %154 = arith.addf %150, %153 : vector<16x8xf32>
    %cst_96 = arith.constant 0.353553385 : f32
    %155 = vector.broadcast %cst_96 : f32 to vector<16x8xf32>
    %156 = arith.mulf %154, %155 : vector<16x8xf32>
    %c3_97 = arith.constant 3 : index
    %c0_98 = arith.constant 0 : index
    %c0_99 = arith.constant 0 : index
    %157 = vector.load %arg4[%c3_97, %c0_98, %c0_99] : memref<4x32x8xbf16, #tpu.memory_space<vmem>>, vector<1x32x8xbf16>
    %158 = vector.shape_cast %157 : vector<1x32x8xbf16> to vector<32x8xbf16>
    %cst_100 = arith.constant dense<0.000000e+00> : vector<16x8xf32>
    %159 = tpu.matmul %2, %158, %cst_100 {dimension_numbers = #tpu.dot_dimension_numbers<[1], [0], [0], [1], [0, 0, 1, 1], [], []>} : vector<16x32xbf16>, vector<32x8xbf16>, vector<16x8xf32> -> vector<16x8xf32>
    %c3_101 = arith.constant 3 : index
    %c0_102 = arith.constant 0 : index
    %c0_103 = arith.constant 0 : index
    %160 = vector.load %arg5[%c3_101, %c0_102, %c0_103] : memref<4x1x8xf32, #tpu.memory_space<vmem>>, vector<1x1x8xf32>
    %161 = vector.shape_cast %160 : vector<1x1x8xf32> to vector<1x8xf32>
    %162 = vector.broadcast %161 : vector<1x8xf32> to vector<16x8xf32>
    %163 = arith.addf %159, %162 : vector<16x8xf32>
    %c3_104 = arith.constant 3 : index
    %c0_105 = arith.constant 0 : index
    %c0_106 = arith.constant 0 : index
    %164 = vector.load %arg6[%c3_104, %c0_105, %c0_106] : memref<4x32x8xbf16, #tpu.memory_space<vmem>>, vector<1x32x8xbf16>
    %165 = vector.shape_cast %164 : vector<1x32x8xbf16> to vector<32x8xbf16>
    %cst_107 = arith.constant dense<0.000000e+00> : vector<16x8xf32>
    %166 = tpu.matmul %2, %165, %cst_107 {dimension_numbers = #tpu.dot_dimension_numbers<[1], [0], [0], [1], [0, 0, 1, 1], [], []>} : vector<16x32xbf16>, vector<32x8xbf16>, vector<16x8xf32> -> vector<16x8xf32>
    %c3_108 = arith.constant 3 : index
    %c0_109 = arith.constant 0 : index
    %c0_110 = arith.constant 0 : index
    %167 = vector.load %arg7[%c3_108, %c0_109, %c0_110] : memref<4x1x8xf32, #tpu.memory_space<vmem>>, vector<1x1x8xf32>
    %168 = vector.shape_cast %167 : vector<1x1x8xf32> to vector<1x8xf32>
    %169 = vector.broadcast %168 : vector<1x8xf32> to vector<16x8xf32>
    %170 = arith.addf %166, %169 : vector<16x8xf32>
    %171 = vector.shape_cast %156 : vector<16x8xf32> to vector<2x8x8xf32>
    %172 = arith.truncf %171 : vector<2x8x8xf32> to vector<2x8x8xbf16>
    %173 = vector.shape_cast %163 : vector<16x8xf32> to vector<2x8x8xf32>
    %174 = arith.truncf %173 : vector<2x8x8xf32> to vector<2x8x8xbf16>
    %175 = vector.shape_cast %170 : vector<16x8xf32> to vector<2x8x8xf32>
    %176 = arith.truncf %175 : vector<2x8x8xf32> to vector<2x8x8xbf16>
    "tpu.trace_start"() <{level = 10 : i32, message = "bqd,bkd->bqk"}> : () -> ()
    %cst_111 = arith.constant dense<0.000000e+00> : vector<2x8x8xf32>
    %177 = tpu.matmul %172, %174, %cst_111 {dimension_numbers = #tpu.dot_dimension_numbers<[2], [2], [1], [1], [0, 0, 0, 1, 1, 1], [0], [0]>} : vector<2x8x8xbf16>, vector<2x8x8xbf16>, vector<2x8x8xf32> -> vector<2x8x8xf32>
    "tpu.trace_stop"() : () -> ()
    %cst_112 = arith.constant dense<0xFF800000> : vector<2x8xf32>
    %178 = vector.multi_reduction <maximumf>, %177, %cst_112 [2] : vector<2x8x8xf32> to vector<2x8xf32>
    %179 = vector.shape_cast %178 : vector<2x8xf32> to vector<2x8x1xf32>
    %180 = vector.broadcast %179 : vector<2x8x1xf32> to vector<2x8x8xf32>
    %181 = arith.subf %177, %180 : vector<2x8x8xf32>
    %182 = math.exp %181 : vector<2x8x8xf32>
    %cst_113 = arith.constant dense<0.000000e+00> : vector<2x8xf32>
    %183 = vector.multi_reduction <add>, %182, %cst_113 [2] : vector<2x8x8xf32> to vector<2x8xf32>
    %184 = vector.shape_cast %183 : vector<2x8xf32> to vector<2x8x1xf32>
    %185 = tpu.reciprocal %184 {approx = true} : vector<2x8x1xf32> -> vector<2x8x1xf32>
    %186 = vector.broadcast %185 : vector<2x8x1xf32> to vector<2x8x8xf32>
    %187 = arith.mulf %182, %186 : vector<2x8x8xf32>
    %188 = arith.truncf %187 : vector<2x8x8xf32> to vector<2x8x8xbf16>
    "tpu.trace_start"() <{level = 10 : i32, message = "bqk,bkd->bqd"}> : () -> ()
    %cst_114 = arith.constant dense<0.000000e+00> : vector<2x8x8xf32>
    %189 = tpu.matmul %188, %176, %cst_114 {dimension_numbers = #tpu.dot_dimension_numbers<[2], [1], [1], [2], [0, 0, 0, 1, 1, 2], [0], [0]>} : vector<2x8x8xbf16>, vector<2x8x8xbf16>, vector<2x8x8xf32> -> vector<2x8x8xf32>
    "tpu.trace_stop"() : () -> ()
    %190 = vector.shape_cast %189 : vector<2x8x8xf32> to vector<16x8xf32>
    %191 = arith.truncf %190 : vector<16x8xf32> to vector<16x8xbf16>
    %c3_115 = arith.constant 3 : index
    %c0_116 = arith.constant 0 : index
    %c0_117 = arith.constant 0 : index
    %192 = vector.load %arg8[%c3_115, %c0_116, %c0_117] : memref<4x8x32xbf16, #tpu.memory_space<vmem>>, vector<1x8x32xbf16>
    %193 = vector.shape_cast %192 : vector<1x8x32xbf16> to vector<8x32xbf16>
    %cst_118 = arith.constant dense<0.000000e+00> : vector<16x32xf32>
    %194 = tpu.matmul %191, %193, %cst_118 {dimension_numbers = #tpu.dot_dimension_numbers<[1], [0], [0], [1], [0, 0, 1, 1], [], []>} : vector<16x8xbf16>, vector<8x32xbf16>, vector<16x32xf32> -> vector<16x32xf32>
    %195 = arith.addf %147, %194 : vector<16x32xf32>
    %c0_119 = arith.constant 0 : index
    %c0_120 = arith.constant 0 : index
    %196 = vector.load %arg9[%c0_119, %c0_120] : memref<1x32xf32, #tpu.memory_space<vmem>>, vector<1x32xf32>
    %197 = vector.broadcast %196 : vector<1x32xf32> to vector<16x32xf32>
    %198 = arith.addf %195, %197 : vector<16x32xf32>
    %199 = arith.addf %1, %198 : vector<16x32xf32>
    %c0_121 = arith.constant 0 : index
    %c0_122 = arith.constant 0 : index
    %200 = vector.load %arg10[%c0_121, %c0_122] : memref<1x32xf32, #tpu.memory_space<vmem>>, vector<1x32xf32>
    %c0_123 = arith.constant 0 : index
    %c0_124 = arith.constant 0 : index
    %201 = vector.load %arg11[%c0_123, %c0_124] : memref<1x32xf32, #tpu.memory_space<vmem>>, vector<1x32xf32>
    %cst_125 = arith.constant dense<0.000000e+00> : vector<16xf32>
    %202 = vector.multi_reduction <add>, %199, %cst_125 [1] : vector<16x32xf32> to vector<16xf32>
    %203 = vector.shape_cast %202 : vector<16xf32> to vector<16x1xf32>
    %cst_126 = arith.constant 3.200000e+01 : f32
    %204 = vector.broadcast %cst_126 : f32 to vector<16x1xf32>
    %205 = arith.divf %203, %204 : vector<16x1xf32>
    %206 = vector.broadcast %205 : vector<16x1xf32> to vector<16x32xf32>
    %207 = arith.subf %199, %206 : vector<16x32xf32>
    %208 = arith.mulf %207, %207 : vector<16x32xf32>
    %cst_127 = arith.constant dense<0.000000e+00> : vector<16xf32>
    %209 = vector.multi_reduction <add>, %208, %cst_127 [1] : vector<16x32xf32> to vector<16xf32>
    %210 = vector.shape_cast %209 : vector<16xf32> to vector<16x1xf32>
    %cst_128 = arith.constant 3.200000e+01 : f32
    %211 = vector.broadcast %cst_128 : f32 to vector<16x1xf32>
    %212 = arith.divf %210, %211 : vector<16x1xf32>
    %213 = vector.broadcast %205 : vector<16x1xf32> to vector<16x32xf32>
    %214 = arith.subf %199, %213 : vector<16x32xf32>
    %cst_129 = arith.constant 9.99999974E-6 : f32
    %215 = vector.broadcast %cst_129 : f32 to vector<16x1xf32>
    %216 = arith.addf %212, %215 : vector<16x1xf32>
    %217 = math.rsqrt %216 : vector<16x1xf32>
    %218 = vector.broadcast %217 : vector<16x1xf32> to vector<16x32xf32>
    %219 = arith.mulf %214, %218 : vector<16x32xf32>
    %220 = vector.broadcast %200 : vector<1x32xf32> to vector<16x32xf32>
    %221 = arith.mulf %219, %220 : vector<16x32xf32>
    %222 = vector.broadcast %201 : vector<1x32xf32> to vector<16x32xf32>
    %223 = arith.addf %221, %222 : vector<16x32xf32>
    %c0_130 = arith.constant 0 : index
    %c0_131 = arith.constant 0 : index
    %224 = vector.load %arg12[%c0_130, %c0_131] : memref<32x64xbf16, #tpu.memory_space<vmem>>, vector<32x64xbf16>
    %c0_132 = arith.constant 0 : index
    %c0_133 = arith.constant 0 : index
    %225 = vector.load %arg13[%c0_132, %c0_133] : memref<1x64xf32, #tpu.memory_space<vmem>>, vector<1x64xf32>
    %c0_134 = arith.constant 0 : index
    %c0_135 = arith.constant 0 : index
    %226 = vector.load %arg14[%c0_134, %c0_135] : memref<64x32xbf16, #tpu.memory_space<vmem>>, vector<64x32xbf16>
    %c0_136 = arith.constant 0 : index
    %c0_137 = arith.constant 0 : index
    %227 = vector.load %arg15[%c0_136, %c0_137] : memref<1x32xf32, #tpu.memory_space<vmem>>, vector<1x32xf32>
    %c0_138 = arith.constant 0 : index
    %c0_139 = arith.constant 0 : index
    %228 = vector.load %arg16[%c0_138, %c0_139] : memref<1x32xf32, #tpu.memory_space<vmem>>, vector<1x32xf32>
    %c0_140 = arith.constant 0 : index
    %c0_141 = arith.constant 0 : index
    %229 = vector.load %arg17[%c0_140, %c0_141] : memref<1x32xf32, #tpu.memory_space<vmem>>, vector<1x32xf32>
    %230 = arith.truncf %223 : vector<16x32xf32> to vector<16x32xbf16>
    %cst_142 = arith.constant dense<0.000000e+00> : vector<16x64xf32>
    %231 = tpu.matmul %230, %224, %cst_142 {dimension_numbers = #tpu.dot_dimension_numbers<[1], [0], [0], [1], [0, 0, 1, 1], [], []>} : vector<16x32xbf16>, vector<32x64xbf16>, vector<16x64xf32> -> vector<16x64xf32>
    %232 = vector.broadcast %225 : vector<1x64xf32> to vector<16x64xf32>
    %233 = arith.addf %231, %232 : vector<16x64xf32>
    %cst_143 = arith.constant 0.000000e+00 : f32
    %234 = vector.broadcast %cst_143 : f32 to vector<16x64xf32>
    %235 = arith.maximumf %233, %234 : vector<16x64xf32>
    %236 = arith.truncf %235 : vector<16x64xf32> to vector<16x64xbf16>
    %cst_144 = arith.constant dense<0.000000e+00> : vector<16x32xf32>
    %237 = tpu.matmul %236, %226, %cst_144 {dimension_numbers = #tpu.dot_dimension_numbers<[1], [0], [0], [1], [0, 0, 1, 1], [], []>} : vector<16x64xbf16>, vector<64x32xbf16>, vector<16x32xf32> -> vector<16x32xf32>
    %238 = vector.broadcast %227 : vector<1x32xf32> to vector<16x32xf32>
    %239 = arith.addf %237, %238 : vector<16x32xf32>
    %240 = arith.addf %223, %239 : vector<16x32xf32>
    %cst_145 = arith.constant dense<0.000000e+00> : vector<16xf32>
    %241 = vector.multi_reduction <add>, %240, %cst_145 [1] : vector<16x32xf32> to vector<16xf32>
    %242 = vector.shape_cast %241 : vector<16xf32> to vector<16x1xf32>
    %cst_146 = arith.constant 3.200000e+01 : f32
    %243 = vector.broadcast %cst_146 : f32 to vector<16x1xf32>
    %244 = arith.divf %242, %243 : vector<16x1xf32>
    %245 = vector.broadcast %244 : vector<16x1xf32> to vector<16x32xf32>
    %246 = arith.subf %240, %245 : vector<16x32xf32>
    %247 = arith.mulf %246, %246 : vector<16x32xf32>
    %cst_147 = arith.constant dense<0.000000e+00> : vector<16xf32>
    %248 = vector.multi_reduction <add>, %247, %cst_147 [1] : vector<16x32xf32> to vector<16xf32>
    %249 = vector.shape_cast %248 : vector<16xf32> to vector<16x1xf32>
    %cst_148 = arith.constant 3.200000e+01 : f32
    %250 = vector.broadcast %cst_148 : f32 to vector<16x1xf32>
    %251 = arith.divf %249, %250 : vector<16x1xf32>
    %252 = vector.broadcast %244 : vector<16x1xf32> to vector<16x32xf32>
    %253 = arith.subf %240, %252 : vector<16x32xf32>
    %cst_149 = arith.constant 9.99999974E-6 : f32
    %254 = vector.broadcast %cst_149 : f32 to vector<16x1xf32>
    %255 = arith.addf %251, %254 : vector<16x1xf32>
    %256 = math.rsqrt %255 : vector<16x1xf32>
    %257 = vector.broadcast %256 : vector<16x1xf32> to vector<16x32xf32>
    %258 = arith.mulf %253, %257 : vector<16x32xf32>
    %259 = vector.broadcast %228 : vector<1x32xf32> to vector<16x32xf32>
    %260 = arith.mulf %258, %259 : vector<16x32xf32>
    %261 = vector.broadcast %229 : vector<1x32xf32> to vector<16x32xf32>
    %262 = arith.addf %260, %261 : vector<16x32xf32>
    %263 = arith.truncf %262 : vector<16x32xf32> to vector<16x32xbf16>
    %cst_150 = arith.constant 0.000000e+00 : f32
    %264 = vector.broadcast %cst_150 : f32 to vector<16x32xf32>
    %c0_151 = arith.constant 0 : index
    %c0_152 = arith.constant 0 : index
    %c0_153 = arith.constant 0 : index
    %265 = vector.load %arg18[%c0_151, %c0_152, %c0_153] : memref<4x32x8xbf16, #tpu.memory_space<vmem>>, vector<1x32x8xbf16>
    %266 = vector.shape_cast %265 : vector<1x32x8xbf16> to vector<32x8xbf16>
    %cst_154 = arith.constant dense<0.000000e+00> : vector<16x8xf32>
    %267 = tpu.matmul %263, %266, %cst_154 {dimension_numbers = #tpu.dot_dimension_numbers<[1], [0], [0], [1], [0, 0, 1, 1], [], []>} : vector<16x32xbf16>, vector<32x8xbf16>, vector<16x8xf32> -> vector<16x8xf32>
    %c0_155 = arith.constant 0 : index
    %c0_156 = arith.constant 0 : index
    %c0_157 = arith.constant 0 : index
    %268 = vector.load %arg19[%c0_155, %c0_156, %c0_157] : memref<4x1x8xf32, #tpu.memory_space<vmem>>, vector<1x1x8xf32>
    %269 = vector.shape_cast %268 : vector<1x1x8xf32> to vector<1x8xf32>
    %270 = vector.broadcast %269 : vector<1x8xf32> to vector<16x8xf32>
    %271 = arith.addf %267, %270 : vector<16x8xf32>
    %cst_158 = arith.constant 0.353553385 : f32
    %272 = vector.broadcast %cst_158 : f32 to vector<16x8xf32>
    %273 = arith.mulf %271, %272 : vector<16x8xf32>
    %c0_159 = arith.constant 0 : index
    %c0_160 = arith.constant 0 : index
    %c0_161 = arith.constant 0 : index
    %274 = vector.load %arg20[%c0_159, %c0_160, %c0_161] : memref<4x32x8xbf16, #tpu.memory_space<vmem>>, vector<1x32x8xbf16>
    %275 = vector.shape_cast %274 : vector<1x32x8xbf16> to vector<32x8xbf16>
    %cst_162 = arith.constant dense<0.000000e+00> : vector<16x8xf32>
    %276 = tpu.matmul %263, %275, %cst_162 {dimension_numbers = #tpu.dot_dimension_numbers<[1], [0], [0], [1], [0, 0, 1, 1], [], []>} : vector<16x32xbf16>, vector<32x8xbf16>, vector<16x8xf32> -> vector<16x8xf32>
    %c0_163 = arith.constant 0 : index
    %c0_164 = arith.constant 0 : index
    %c0_165 = arith.constant 0 : index
    %277 = vector.load %arg21[%c0_163, %c0_164, %c0_165] : memref<4x1x8xf32, #tpu.memory_space<vmem>>, vector<1x1x8xf32>
    %278 = vector.shape_cast %277 : vector<1x1x8xf32> to vector<1x8xf32>
    %279 = vector.broadcast %278 : vector<1x8xf32> to vector<16x8xf32>
    %280 = arith.addf %276, %279 : vector<16x8xf32>
    %c0_166 = arith.constant 0 : index
    %c0_167 = arith.constant 0 : index
    %c0_168 = arith.constant 0 : index
    %281 = vector.load %arg22[%c0_166, %c0_167, %c0_168] : memref<4x32x8xbf16, #tpu.memory_space<vmem>>, vector<1x32x8xbf16>
    %282 = vector.shape_cast %281 : vector<1x32x8xbf16> to vector<32x8xbf16>
    %cst_169 = arith.constant dense<0.000000e+00> : vector<16x8xf32>
    %283 = tpu.matmul %263, %282, %cst_169 {dimension_numbers = #tpu.dot_dimension_numbers<[1], [0], [0], [1], [0, 0, 1, 1], [], []>} : vector<16x32xbf16>, vector<32x8xbf16>, vector<16x8xf32> -> vector<16x8xf32>
    %c0_170 = arith.constant 0 : index
    %c0_171 = arith.constant 0 : index
    %c0_172 = arith.constant 0 : index
    %284 = vector.load %arg23[%c0_170, %c0_171, %c0_172] : memref<4x1x8xf32, #tpu.memory_space<vmem>>, vector<1x1x8xf32>
    %285 = vector.shape_cast %284 : vector<1x1x8xf32> to vector<1x8xf32>
    %286 = vector.broadcast %285 : vector<1x8xf32> to vector<16x8xf32>
    %287 = arith.addf %283, %286 : vector<16x8xf32>
    %288 = vector.shape_cast %273 : vector<16x8xf32> to vector<2x8x8xf32>
    %289 = arith.truncf %288 : vector<2x8x8xf32> to vector<2x8x8xbf16>
    %290 = vector.shape_cast %280 : vector<16x8xf32> to vector<2x8x8xf32>
    %291 = arith.truncf %290 : vector<2x8x8xf32> to vector<2x8x8xbf16>
    %292 = vector.shape_cast %287 : vector<16x8xf32> to vector<2x8x8xf32>
    %293 = arith.truncf %292 : vector<2x8x8xf32> to vector<2x8x8xbf16>
    "tpu.trace_start"() <{level = 10 : i32, message = "bqd,bkd->bqk"}> : () -> ()
    %cst_173 = arith.constant dense<0.000000e+00> : vector<2x8x8xf32>
    %294 = tpu.matmul %289, %291, %cst_173 {dimension_numbers = #tpu.dot_dimension_numbers<[2], [2], [1], [1], [0, 0, 0, 1, 1, 1], [0], [0]>} : vector<2x8x8xbf16>, vector<2x8x8xbf16>, vector<2x8x8xf32> -> vector<2x8x8xf32>
    "tpu.trace_stop"() : () -> ()
    %cst_174 = arith.constant dense<0xFF800000> : vector<2x8xf32>
    %295 = vector.multi_reduction <maximumf>, %294, %cst_174 [2] : vector<2x8x8xf32> to vector<2x8xf32>
    %296 = vector.shape_cast %295 : vector<2x8xf32> to vector<2x8x1xf32>
    %297 = vector.broadcast %296 : vector<2x8x1xf32> to vector<2x8x8xf32>
    %298 = arith.subf %294, %297 : vector<2x8x8xf32>
    %299 = math.exp %298 : vector<2x8x8xf32>
    %cst_175 = arith.constant dense<0.000000e+00> : vector<2x8xf32>
    %300 = vector.multi_reduction <add>, %299, %cst_175 [2] : vector<2x8x8xf32> to vector<2x8xf32>
    %301 = vector.shape_cast %300 : vector<2x8xf32> to vector<2x8x1xf32>
    %302 = tpu.reciprocal %301 {approx = true} : vector<2x8x1xf32> -> vector<2x8x1xf32>
    %303 = vector.broadcast %302 : vector<2x8x1xf32> to vector<2x8x8xf32>
    %304 = arith.mulf %299, %303 : vector<2x8x8xf32>
    %305 = arith.truncf %304 : vector<2x8x8xf32> to vector<2x8x8xbf16>
    "tpu.trace_start"() <{level = 10 : i32, message = "bqk,bkd->bqd"}> : () -> ()
    %cst_176 = arith.constant dense<0.000000e+00> : vector<2x8x8xf32>
    %306 = tpu.matmul %305, %293, %cst_176 {dimension_numbers = #tpu.dot_dimension_numbers<[2], [1], [1], [2], [0, 0, 0, 1, 1, 2], [0], [0]>} : vector<2x8x8xbf16>, vector<2x8x8xbf16>, vector<2x8x8xf32> -> vector<2x8x8xf32>
    "tpu.trace_stop"() : () -> ()
    %307 = vector.shape_cast %306 : vector<2x8x8xf32> to vector<16x8xf32>
    %308 = arith.truncf %307 : vector<16x8xf32> to vector<16x8xbf16>
    %c0_177 = arith.constant 0 : index
    %c0_178 = arith.constant 0 : index
    %c0_179 = arith.constant 0 : index
    %309 = vector.load %arg24[%c0_177, %c0_178, %c0_179] : memref<4x8x32xbf16, #tpu.memory_space<vmem>>, vector<1x8x32xbf16>
    %310 = vector.shape_cast %309 : vector<1x8x32xbf16> to vector<8x32xbf16>
    %cst_180 = arith.constant dense<0.000000e+00> : vector<16x32xf32>
    %311 = tpu.matmul %308, %310, %cst_180 {dimension_numbers = #tpu.dot_dimension_numbers<[1], [0], [0], [1], [0, 0, 1, 1], [], []>} : vector<16x8xbf16>, vector<8x32xbf16>, vector<16x32xf32> -> vector<16x32xf32>
    %312 = arith.addf %264, %311 : vector<16x32xf32>
    %c1_181 = arith.constant 1 : index
    %c0_182 = arith.constant 0 : index
    %c0_183 = arith.constant 0 : index
    %313 = vector.load %arg18[%c1_181, %c0_182, %c0_183] : memref<4x32x8xbf16, #tpu.memory_space<vmem>>, vector<1x32x8xbf16>
    %314 = vector.shape_cast %313 : vector<1x32x8xbf16> to vector<32x8xbf16>
    %cst_184 = arith.constant dense<0.000000e+00> : vector<16x8xf32>
    %315 = tpu.matmul %263, %314, %cst_184 {dimension_numbers = #tpu.dot_dimension_numbers<[1], [0], [0], [1], [0, 0, 1, 1], [], []>} : vector<16x32xbf16>, vector<32x8xbf16>, vector<16x8xf32> -> vector<16x8xf32>
    %c1_185 = arith.constant 1 : index
    %c0_186 = arith.constant 0 : index
    %c0_187 = arith.constant 0 : index
    %316 = vector.load %arg19[%c1_185, %c0_186, %c0_187] : memref<4x1x8xf32, #tpu.memory_space<vmem>>, vector<1x1x8xf32>
    %317 = vector.shape_cast %316 : vector<1x1x8xf32> to vector<1x8xf32>
    %318 = vector.broadcast %317 : vector<1x8xf32> to vector<16x8xf32>
    %319 = arith.addf %315, %318 : vector<16x8xf32>
    %cst_188 = arith.constant 0.353553385 : f32
    %320 = vector.broadcast %cst_188 : f32 to vector<16x8xf32>
    %321 = arith.mulf %319, %320 : vector<16x8xf32>
    %c1_189 = arith.constant 1 : index
    %c0_190 = arith.constant 0 : index
    %c0_191 = arith.constant 0 : index
    %322 = vector.load %arg20[%c1_189, %c0_190, %c0_191] : memref<4x32x8xbf16, #tpu.memory_space<vmem>>, vector<1x32x8xbf16>
    %323 = vector.shape_cast %322 : vector<1x32x8xbf16> to vector<32x8xbf16>
    %cst_192 = arith.constant dense<0.000000e+00> : vector<16x8xf32>
    %324 = tpu.matmul %263, %323, %cst_192 {dimension_numbers = #tpu.dot_dimension_numbers<[1], [0], [0], [1], [0, 0, 1, 1], [], []>} : vector<16x32xbf16>, vector<32x8xbf16>, vector<16x8xf32> -> vector<16x8xf32>
    %c1_193 = arith.constant 1 : index
    %c0_194 = arith.constant 0 : index
    %c0_195 = arith.constant 0 : index
    %325 = vector.load %arg21[%c1_193, %c0_194, %c0_195] : memref<4x1x8xf32, #tpu.memory_space<vmem>>, vector<1x1x8xf32>
    %326 = vector.shape_cast %325 : vector<1x1x8xf32> to vector<1x8xf32>
    %327 = vector.broadcast %326 : vector<1x8xf32> to vector<16x8xf32>
    %328 = arith.addf %324, %327 : vector<16x8xf32>
    %c1_196 = arith.constant 1 : index
    %c0_197 = arith.constant 0 : index
    %c0_198 = arith.constant 0 : index
    %329 = vector.load %arg22[%c1_196, %c0_197, %c0_198] : memref<4x32x8xbf16, #tpu.memory_space<vmem>>, vector<1x32x8xbf16>
    %330 = vector.shape_cast %329 : vector<1x32x8xbf16> to vector<32x8xbf16>
    %cst_199 = arith.constant dense<0.000000e+00> : vector<16x8xf32>
    %331 = tpu.matmul %263, %330, %cst_199 {dimension_numbers = #tpu.dot_dimension_numbers<[1], [0], [0], [1], [0, 0, 1, 1], [], []>} : vector<16x32xbf16>, vector<32x8xbf16>, vector<16x8xf32> -> vector<16x8xf32>
    %c1_200 = arith.constant 1 : index
    %c0_201 = arith.constant 0 : index
    %c0_202 = arith.constant 0 : index
    %332 = vector.load %arg23[%c1_200, %c0_201, %c0_202] : memref<4x1x8xf32, #tpu.memory_space<vmem>>, vector<1x1x8xf32>
    %333 = vector.shape_cast %332 : vector<1x1x8xf32> to vector<1x8xf32>
    %334 = vector.broadcast %333 : vector<1x8xf32> to vector<16x8xf32>
    %335 = arith.addf %331, %334 : vector<16x8xf32>
    %336 = vector.shape_cast %321 : vector<16x8xf32> to vector<2x8x8xf32>
    %337 = arith.truncf %336 : vector<2x8x8xf32> to vector<2x8x8xbf16>
    %338 = vector.shape_cast %328 : vector<16x8xf32> to vector<2x8x8xf32>
    %339 = arith.truncf %338 : vector<2x8x8xf32> to vector<2x8x8xbf16>
    %340 = vector.shape_cast %335 : vector<16x8xf32> to vector<2x8x8xf32>
    %341 = arith.truncf %340 : vector<2x8x8xf32> to vector<2x8x8xbf16>
    "tpu.trace_start"() <{level = 10 : i32, message = "bqd,bkd->bqk"}> : () -> ()
    %cst_203 = arith.constant dense<0.000000e+00> : vector<2x8x8xf32>
    %342 = tpu.matmul %337, %339, %cst_203 {dimension_numbers = #tpu.dot_dimension_numbers<[2], [2], [1], [1], [0, 0, 0, 1, 1, 1], [0], [0]>} : vector<2x8x8xbf16>, vector<2x8x8xbf16>, vector<2x8x8xf32> -> vector<2x8x8xf32>
    "tpu.trace_stop"() : () -> ()
    %cst_204 = arith.constant dense<0xFF800000> : vector<2x8xf32>
    %343 = vector.multi_reduction <maximumf>, %342, %cst_204 [2] : vector<2x8x8xf32> to vector<2x8xf32>
    %344 = vector.shape_cast %343 : vector<2x8xf32> to vector<2x8x1xf32>
    %345 = vector.broadcast %344 : vector<2x8x1xf32> to vector<2x8x8xf32>
    %346 = arith.subf %342, %345 : vector<2x8x8xf32>
    %347 = math.exp %346 : vector<2x8x8xf32>
    %cst_205 = arith.constant dense<0.000000e+00> : vector<2x8xf32>
    %348 = vector.multi_reduction <add>, %347, %cst_205 [2] : vector<2x8x8xf32> to vector<2x8xf32>
    %349 = vector.shape_cast %348 : vector<2x8xf32> to vector<2x8x1xf32>
    %350 = tpu.reciprocal %349 {approx = true} : vector<2x8x1xf32> -> vector<2x8x1xf32>
    %351 = vector.broadcast %350 : vector<2x8x1xf32> to vector<2x8x8xf32>
    %352 = arith.mulf %347, %351 : vector<2x8x8xf32>
    %353 = arith.truncf %352 : vector<2x8x8xf32> to vector<2x8x8xbf16>
    "tpu.trace_start"() <{level = 10 : i32, message = "bqk,bkd->bqd"}> : () -> ()
    %cst_206 = arith.constant dense<0.000000e+00> : vector<2x8x8xf32>
    %354 = tpu.matmul %353, %341, %cst_206 {dimension_numbers = #tpu.dot_dimension_numbers<[2], [1], [1], [2], [0, 0, 0, 1, 1, 2], [0], [0]>} : vector<2x8x8xbf16>, vector<2x8x8xbf16>, vector<2x8x8xf32> -> vector<2x8x8xf32>
    "tpu.trace_stop"() : () -> ()
    %355 = vector.shape_cast %354 : vector<2x8x8xf32> to vector<16x8xf32>
    %356 = arith.truncf %355 : vector<16x8xf32> to vector<16x8xbf16>
    %c1_207 = arith.constant 1 : index
    %c0_208 = arith.constant 0 : index
    %c0_209 = arith.constant 0 : index
    %357 = vector.load %arg24[%c1_207, %c0_208, %c0_209] : memref<4x8x32xbf16, #tpu.memory_space<vmem>>, vector<1x8x32xbf16>
    %358 = vector.shape_cast %357 : vector<1x8x32xbf16> to vector<8x32xbf16>
    %cst_210 = arith.constant dense<0.000000e+00> : vector<16x32xf32>
    %359 = tpu.matmul %356, %358, %cst_210 {dimension_numbers = #tpu.dot_dimension_numbers<[1], [0], [0], [1], [0, 0, 1, 1], [], []>} : vector<16x8xbf16>, vector<8x32xbf16>, vector<16x32xf32> -> vector<16x32xf32>
    %360 = arith.addf %312, %359 : vector<16x32xf32>
    %c2_211 = arith.constant 2 : index
    %c0_212 = arith.constant 0 : index
    %c0_213 = arith.constant 0 : index
    %361 = vector.load %arg18[%c2_211, %c0_212, %c0_213] : memref<4x32x8xbf16, #tpu.memory_space<vmem>>, vector<1x32x8xbf16>
    %362 = vector.shape_cast %361 : vector<1x32x8xbf16> to vector<32x8xbf16>
    %cst_214 = arith.constant dense<0.000000e+00> : vector<16x8xf32>
    %363 = tpu.matmul %263, %362, %cst_214 {dimension_numbers = #tpu.dot_dimension_numbers<[1], [0], [0], [1], [0, 0, 1, 1], [], []>} : vector<16x32xbf16>, vector<32x8xbf16>, vector<16x8xf32> -> vector<16x8xf32>
    %c2_215 = arith.constant 2 : index
    %c0_216 = arith.constant 0 : index
    %c0_217 = arith.constant 0 : index
    %364 = vector.load %arg19[%c2_215, %c0_216, %c0_217] : memref<4x1x8xf32, #tpu.memory_space<vmem>>, vector<1x1x8xf32>
    %365 = vector.shape_cast %364 : vector<1x1x8xf32> to vector<1x8xf32>
    %366 = vector.broadcast %365 : vector<1x8xf32> to vector<16x8xf32>
    %367 = arith.addf %363, %366 : vector<16x8xf32>
    %cst_218 = arith.constant 0.353553385 : f32
    %368 = vector.broadcast %cst_218 : f32 to vector<16x8xf32>
    %369 = arith.mulf %367, %368 : vector<16x8xf32>
    %c2_219 = arith.constant 2 : index
    %c0_220 = arith.constant 0 : index
    %c0_221 = arith.constant 0 : index
    %370 = vector.load %arg20[%c2_219, %c0_220, %c0_221] : memref<4x32x8xbf16, #tpu.memory_space<vmem>>, vector<1x32x8xbf16>
    %371 = vector.shape_cast %370 : vector<1x32x8xbf16> to vector<32x8xbf16>
    %cst_222 = arith.constant dense<0.000000e+00> : vector<16x8xf32>
    %372 = tpu.matmul %263, %371, %cst_222 {dimension_numbers = #tpu.dot_dimension_numbers<[1], [0], [0], [1], [0, 0, 1, 1], [], []>} : vector<16x32xbf16>, vector<32x8xbf16>, vector<16x8xf32> -> vector<16x8xf32>
    %c2_223 = arith.constant 2 : index
    %c0_224 = arith.constant 0 : index
    %c0_225 = arith.constant 0 : index
    %373 = vector.load %arg21[%c2_223, %c0_224, %c0_225] : memref<4x1x8xf32, #tpu.memory_space<vmem>>, vector<1x1x8xf32>
    %374 = vector.shape_cast %373 : vector<1x1x8xf32> to vector<1x8xf32>
    %375 = vector.broadcast %374 : vector<1x8xf32> to vector<16x8xf32>
    %376 = arith.addf %372, %375 : vector<16x8xf32>
    %c2_226 = arith.constant 2 : index
    %c0_227 = arith.constant 0 : index
    %c0_228 = arith.constant 0 : index
    %377 = vector.load %arg22[%c2_226, %c0_227, %c0_228] : memref<4x32x8xbf16, #tpu.memory_space<vmem>>, vector<1x32x8xbf16>
    %378 = vector.shape_cast %377 : vector<1x32x8xbf16> to vector<32x8xbf16>
    %cst_229 = arith.constant dense<0.000000e+00> : vector<16x8xf32>
    %379 = tpu.matmul %263, %378, %cst_229 {dimension_numbers = #tpu.dot_dimension_numbers<[1], [0], [0], [1], [0, 0, 1, 1], [], []>} : vector<16x32xbf16>, vector<32x8xbf16>, vector<16x8xf32> -> vector<16x8xf32>
    %c2_230 = arith.constant 2 : index
    %c0_231 = arith.constant 0 : index
    %c0_232 = arith.constant 0 : index
    %380 = vector.load %arg23[%c2_230, %c0_231, %c0_232] : memref<4x1x8xf32, #tpu.memory_space<vmem>>, vector<1x1x8xf32>
    %381 = vector.shape_cast %380 : vector<1x1x8xf32> to vector<1x8xf32>
    %382 = vector.broadcast %381 : vector<1x8xf32> to vector<16x8xf32>
    %383 = arith.addf %379, %382 : vector<16x8xf32>
    %384 = vector.shape_cast %369 : vector<16x8xf32> to vector<2x8x8xf32>
    %385 = arith.truncf %384 : vector<2x8x8xf32> to vector<2x8x8xbf16>
    %386 = vector.shape_cast %376 : vector<16x8xf32> to vector<2x8x8xf32>
    %387 = arith.truncf %386 : vector<2x8x8xf32> to vector<2x8x8xbf16>
    %388 = vector.shape_cast %383 : vector<16x8xf32> to vector<2x8x8xf32>
    %389 = arith.truncf %388 : vector<2x8x8xf32> to vector<2x8x8xbf16>
    "tpu.trace_start"() <{level = 10 : i32, message = "bqd,bkd->bqk"}> : () -> ()
    %cst_233 = arith.constant dense<0.000000e+00> : vector<2x8x8xf32>
    %390 = tpu.matmul %385, %387, %cst_233 {dimension_numbers = #tpu.dot_dimension_numbers<[2], [2], [1], [1], [0, 0, 0, 1, 1, 1], [0], [0]>} : vector<2x8x8xbf16>, vector<2x8x8xbf16>, vector<2x8x8xf32> -> vector<2x8x8xf32>
    "tpu.trace_stop"() : () -> ()
    %cst_234 = arith.constant dense<0xFF800000> : vector<2x8xf32>
    %391 = vector.multi_reduction <maximumf>, %390, %cst_234 [2] : vector<2x8x8xf32> to vector<2x8xf32>
    %392 = vector.shape_cast %391 : vector<2x8xf32> to vector<2x8x1xf32>
    %393 = vector.broadcast %392 : vector<2x8x1xf32> to vector<2x8x8xf32>
    %394 = arith.subf %390, %393 : vector<2x8x8xf32>
    %395 = math.exp %394 : vector<2x8x8xf32>
    %cst_235 = arith.constant dense<0.000000e+00> : vector<2x8xf32>
    %396 = vector.multi_reduction <add>, %395, %cst_235 [2] : vector<2x8x8xf32> to vector<2x8xf32>
    %397 = vector.shape_cast %396 : vector<2x8xf32> to vector<2x8x1xf32>
    %398 = tpu.reciprocal %397 {approx = true} : vector<2x8x1xf32> -> vector<2x8x1xf32>
    %399 = vector.broadcast %398 : vector<2x8x1xf32> to vector<2x8x8xf32>
    %400 = arith.mulf %395, %399 : vector<2x8x8xf32>
    %401 = arith.truncf %400 : vector<2x8x8xf32> to vector<2x8x8xbf16>
    "tpu.trace_start"() <{level = 10 : i32, message = "bqk,bkd->bqd"}> : () -> ()
    %cst_236 = arith.constant dense<0.000000e+00> : vector<2x8x8xf32>
    %402 = tpu.matmul %401, %389, %cst_236 {dimension_numbers = #tpu.dot_dimension_numbers<[2], [1], [1], [2], [0, 0, 0, 1, 1, 2], [0], [0]>} : vector<2x8x8xbf16>, vector<2x8x8xbf16>, vector<2x8x8xf32> -> vector<2x8x8xf32>
    "tpu.trace_stop"() : () -> ()
    %403 = vector.shape_cast %402 : vector<2x8x8xf32> to vector<16x8xf32>
    %404 = arith.truncf %403 : vector<16x8xf32> to vector<16x8xbf16>
    %c2_237 = arith.constant 2 : index
    %c0_238 = arith.constant 0 : index
    %c0_239 = arith.constant 0 : index
    %405 = vector.load %arg24[%c2_237, %c0_238, %c0_239] : memref<4x8x32xbf16, #tpu.memory_space<vmem>>, vector<1x8x32xbf16>
    %406 = vector.shape_cast %405 : vector<1x8x32xbf16> to vector<8x32xbf16>
    %cst_240 = arith.constant dense<0.000000e+00> : vector<16x32xf32>
    %407 = tpu.matmul %404, %406, %cst_240 {dimension_numbers = #tpu.dot_dimension_numbers<[1], [0], [0], [1], [0, 0, 1, 1], [], []>} : vector<16x8xbf16>, vector<8x32xbf16>, vector<16x32xf32> -> vector<16x32xf32>
    %408 = arith.addf %360, %407 : vector<16x32xf32>
    %c3_241 = arith.constant 3 : index
    %c0_242 = arith.constant 0 : index
    %c0_243 = arith.constant 0 : index
    %409 = vector.load %arg18[%c3_241, %c0_242, %c0_243] : memref<4x32x8xbf16, #tpu.memory_space<vmem>>, vector<1x32x8xbf16>
    %410 = vector.shape_cast %409 : vector<1x32x8xbf16> to vector<32x8xbf16>
    %cst_244 = arith.constant dense<0.000000e+00> : vector<16x8xf32>
    %411 = tpu.matmul %263, %410, %cst_244 {dimension_numbers = #tpu.dot_dimension_numbers<[1], [0], [0], [1], [0, 0, 1, 1], [], []>} : vector<16x32xbf16>, vector<32x8xbf16>, vector<16x8xf32> -> vector<16x8xf32>
    %c3_245 = arith.constant 3 : index
    %c0_246 = arith.constant 0 : index
    %c0_247 = arith.constant 0 : index
    %412 = vector.load %arg19[%c3_245, %c0_246, %c0_247] : memref<4x1x8xf32, #tpu.memory_space<vmem>>, vector<1x1x8xf32>
    %413 = vector.shape_cast %412 : vector<1x1x8xf32> to vector<1x8xf32>
    %414 = vector.broadcast %413 : vector<1x8xf32> to vector<16x8xf32>
    %415 = arith.addf %411, %414 : vector<16x8xf32>
    %cst_248 = arith.constant 0.353553385 : f32
    %416 = vector.broadcast %cst_248 : f32 to vector<16x8xf32>
    %417 = arith.mulf %415, %416 : vector<16x8xf32>
    %c3_249 = arith.constant 3 : index
    %c0_250 = arith.constant 0 : index
    %c0_251 = arith.constant 0 : index
    %418 = vector.load %arg20[%c3_249, %c0_250, %c0_251] : memref<4x32x8xbf16, #tpu.memory_space<vmem>>, vector<1x32x8xbf16>
    %419 = vector.shape_cast %418 : vector<1x32x8xbf16> to vector<32x8xbf16>
    %cst_252 = arith.constant dense<0.000000e+00> : vector<16x8xf32>
    %420 = tpu.matmul %263, %419, %cst_252 {dimension_numbers = #tpu.dot_dimension_numbers<[1], [0], [0], [1], [0, 0, 1, 1], [], []>} : vector<16x32xbf16>, vector<32x8xbf16>, vector<16x8xf32> -> vector<16x8xf32>
    %c3_253 = arith.constant 3 : index
    %c0_254 = arith.constant 0 : index
    %c0_255 = arith.constant 0 : index
    %421 = vector.load %arg21[%c3_253, %c0_254, %c0_255] : memref<4x1x8xf32, #tpu.memory_space<vmem>>, vector<1x1x8xf32>
    %422 = vector.shape_cast %421 : vector<1x1x8xf32> to vector<1x8xf32>
    %423 = vector.broadcast %422 : vector<1x8xf32> to vector<16x8xf32>
    %424 = arith.addf %420, %423 : vector<16x8xf32>
    %c3_256 = arith.constant 3 : index
    %c0_257 = arith.constant 0 : index
    %c0_258 = arith.constant 0 : index
    %425 = vector.load %arg22[%c3_256, %c0_257, %c0_258] : memref<4x32x8xbf16, #tpu.memory_space<vmem>>, vector<1x32x8xbf16>
    %426 = vector.shape_cast %425 : vector<1x32x8xbf16> to vector<32x8xbf16>
    %cst_259 = arith.constant dense<0.000000e+00> : vector<16x8xf32>
    %427 = tpu.matmul %263, %426, %cst_259 {dimension_numbers = #tpu.dot_dimension_numbers<[1], [0], [0], [1], [0, 0, 1, 1], [], []>} : vector<16x32xbf16>, vector<32x8xbf16>, vector<16x8xf32> -> vector<16x8xf32>
    %c3_260 = arith.constant 3 : index
    %c0_261 = arith.constant 0 : index
    %c0_262 = arith.constant 0 : index
    %428 = vector.load %arg23[%c3_260, %c0_261, %c0_262] : memref<4x1x8xf32, #tpu.memory_space<vmem>>, vector<1x1x8xf32>
    %429 = vector.shape_cast %428 : vector<1x1x8xf32> to vector<1x8xf32>
    %430 = vector.broadcast %429 : vector<1x8xf32> to vector<16x8xf32>
    %431 = arith.addf %427, %430 : vector<16x8xf32>
    %432 = vector.shape_cast %417 : vector<16x8xf32> to vector<2x8x8xf32>
    %433 = arith.truncf %432 : vector<2x8x8xf32> to vector<2x8x8xbf16>
    %434 = vector.shape_cast %424 : vector<16x8xf32> to vector<2x8x8xf32>
    %435 = arith.truncf %434 : vector<2x8x8xf32> to vector<2x8x8xbf16>
    %436 = vector.shape_cast %431 : vector<16x8xf32> to vector<2x8x8xf32>
    %437 = arith.truncf %436 : vector<2x8x8xf32> to vector<2x8x8xbf16>
    "tpu.trace_start"() <{level = 10 : i32, message = "bqd,bkd->bqk"}> : () -> ()
    %cst_263 = arith.constant dense<0.000000e+00> : vector<2x8x8xf32>
    %438 = tpu.matmul %433, %435, %cst_263 {dimension_numbers = #tpu.dot_dimension_numbers<[2], [2], [1], [1], [0, 0, 0, 1, 1, 1], [0], [0]>} : vector<2x8x8xbf16>, vector<2x8x8xbf16>, vector<2x8x8xf32> -> vector<2x8x8xf32>
    "tpu.trace_stop"() : () -> ()
    %cst_264 = arith.constant dense<0xFF800000> : vector<2x8xf32>
    %439 = vector.multi_reduction <maximumf>, %438, %cst_264 [2] : vector<2x8x8xf32> to vector<2x8xf32>
    %440 = vector.shape_cast %439 : vector<2x8xf32> to vector<2x8x1xf32>
    %441 = vector.broadcast %440 : vector<2x8x1xf32> to vector<2x8x8xf32>
    %442 = arith.subf %438, %441 : vector<2x8x8xf32>
    %443 = math.exp %442 : vector<2x8x8xf32>
    %cst_265 = arith.constant dense<0.000000e+00> : vector<2x8xf32>
    %444 = vector.multi_reduction <add>, %443, %cst_265 [2] : vector<2x8x8xf32> to vector<2x8xf32>
    %445 = vector.shape_cast %444 : vector<2x8xf32> to vector<2x8x1xf32>
    %446 = tpu.reciprocal %445 {approx = true} : vector<2x8x1xf32> -> vector<2x8x1xf32>
    %447 = vector.broadcast %446 : vector<2x8x1xf32> to vector<2x8x8xf32>
    %448 = arith.mulf %443, %447 : vector<2x8x8xf32>
    %449 = arith.truncf %448 : vector<2x8x8xf32> to vector<2x8x8xbf16>
    "tpu.trace_start"() <{level = 10 : i32, message = "bqk,bkd->bqd"}> : () -> ()
    %cst_266 = arith.constant dense<0.000000e+00> : vector<2x8x8xf32>
    %450 = tpu.matmul %449, %437, %cst_266 {dimension_numbers = #tpu.dot_dimension_numbers<[2], [1], [1], [2], [0, 0, 0, 1, 1, 2], [0], [0]>} : vector<2x8x8xbf16>, vector<2x8x8xbf16>, vector<2x8x8xf32> -> vector<2x8x8xf32>
    "tpu.trace_stop"() : () -> ()
    %451 = vector.shape_cast %450 : vector<2x8x8xf32> to vector<16x8xf32>
    %452 = arith.truncf %451 : vector<16x8xf32> to vector<16x8xbf16>
    %c3_267 = arith.constant 3 : index
    %c0_268 = arith.constant 0 : index
    %c0_269 = arith.constant 0 : index
    %453 = vector.load %arg24[%c3_267, %c0_268, %c0_269] : memref<4x8x32xbf16, #tpu.memory_space<vmem>>, vector<1x8x32xbf16>
    %454 = vector.shape_cast %453 : vector<1x8x32xbf16> to vector<8x32xbf16>
    %cst_270 = arith.constant dense<0.000000e+00> : vector<16x32xf32>
    %455 = tpu.matmul %452, %454, %cst_270 {dimension_numbers = #tpu.dot_dimension_numbers<[1], [0], [0], [1], [0, 0, 1, 1], [], []>} : vector<16x8xbf16>, vector<8x32xbf16>, vector<16x32xf32> -> vector<16x32xf32>
    %456 = arith.addf %408, %455 : vector<16x32xf32>
    %c0_271 = arith.constant 0 : index
    %c0_272 = arith.constant 0 : index
    %457 = vector.load %arg25[%c0_271, %c0_272] : memref<1x32xf32, #tpu.memory_space<vmem>>, vector<1x32xf32>
    %458 = vector.broadcast %457 : vector<1x32xf32> to vector<16x32xf32>
    %459 = arith.addf %456, %458 : vector<16x32xf32>
    %460 = arith.addf %262, %459 : vector<16x32xf32>
    %c0_273 = arith.constant 0 : index
    %c0_274 = arith.constant 0 : index
    %461 = vector.load %arg26[%c0_273, %c0_274] : memref<1x32xf32, #tpu.memory_space<vmem>>, vector<1x32xf32>
    %c0_275 = arith.constant 0 : index
    %c0_276 = arith.constant 0 : index
    %462 = vector.load %arg27[%c0_275, %c0_276] : memref<1x32xf32, #tpu.memory_space<vmem>>, vector<1x32xf32>
    %cst_277 = arith.constant dense<0.000000e+00> : vector<16xf32>
    %463 = vector.multi_reduction <add>, %460, %cst_277 [1] : vector<16x32xf32> to vector<16xf32>
    %464 = vector.shape_cast %463 : vector<16xf32> to vector<16x1xf32>
    %cst_278 = arith.constant 3.200000e+01 : f32
    %465 = vector.broadcast %cst_278 : f32 to vector<16x1xf32>
    %466 = arith.divf %464, %465 : vector<16x1xf32>
    %467 = vector.broadcast %466 : vector<16x1xf32> to vector<16x32xf32>
    %468 = arith.subf %460, %467 : vector<16x32xf32>
    %469 = arith.mulf %468, %468 : vector<16x32xf32>
    %cst_279 = arith.constant dense<0.000000e+00> : vector<16xf32>
    %470 = vector.multi_reduction <add>, %469, %cst_279 [1] : vector<16x32xf32> to vector<16xf32>
    %471 = vector.shape_cast %470 : vector<16xf32> to vector<16x1xf32>
    %cst_280 = arith.constant 3.200000e+01 : f32
    %472 = vector.broadcast %cst_280 : f32 to vector<16x1xf32>
    %473 = arith.divf %471, %472 : vector<16x1xf32>
    %474 = vector.broadcast %466 : vector<16x1xf32> to vector<16x32xf32>
    %475 = arith.subf %460, %474 : vector<16x32xf32>
    %cst_281 = arith.constant 9.99999974E-6 : f32
    %476 = vector.broadcast %cst_281 : f32 to vector<16x1xf32>
    %477 = arith.addf %473, %476 : vector<16x1xf32>
    %478 = math.rsqrt %477 : vector<16x1xf32>
    %479 = vector.broadcast %478 : vector<16x1xf32> to vector<16x32xf32>
    %480 = arith.mulf %475, %479 : vector<16x32xf32>
    %481 = vector.broadcast %461 : vector<1x32xf32> to vector<16x32xf32>
    %482 = arith.mulf %480, %481 : vector<16x32xf32>
    %483 = vector.broadcast %462 : vector<1x32xf32> to vector<16x32xf32>
    %484 = arith.addf %482, %483 : vector<16x32xf32>
    %485 = vector.shape_cast %484 : vector<16x32xf32> to vector<2x8x32xf32>
    %486 = vector.extract_strided_slice %485 {offsets = [0, 0, 0], sizes = [2, 1, 32], strides = [1, 1, 1]} : vector<2x8x32xf32> to vector<2x1x32xf32>
    %487 = vector.shape_cast %486 : vector<2x1x32xf32> to vector<2x32xf32>
    %c0_282 = arith.constant 0 : index
    %c0_283 = arith.constant 0 : index
    %488 = vector.load %arg28[%c0_282, %c0_283] : memref<32x64xbf16, #tpu.memory_space<vmem>>, vector<32x64xbf16>
    %c0_284 = arith.constant 0 : index
    %c0_285 = arith.constant 0 : index
    %489 = vector.load %arg29[%c0_284, %c0_285] : memref<1x64xf32, #tpu.memory_space<vmem>>, vector<1x64xf32>
    %c0_286 = arith.constant 0 : index
    %c0_287 = arith.constant 0 : index
    %490 = vector.load %arg30[%c0_286, %c0_287] : memref<64x32xbf16, #tpu.memory_space<vmem>>, vector<64x32xbf16>
    %c0_288 = arith.constant 0 : index
    %c0_289 = arith.constant 0 : index
    %491 = vector.load %arg31[%c0_288, %c0_289] : memref<1x32xf32, #tpu.memory_space<vmem>>, vector<1x32xf32>
    %c0_290 = arith.constant 0 : index
    %c0_291 = arith.constant 0 : index
    %492 = vector.load %arg32[%c0_290, %c0_291] : memref<1x32xf32, #tpu.memory_space<vmem>>, vector<1x32xf32>
    %c0_292 = arith.constant 0 : index
    %c0_293 = arith.constant 0 : index
    %493 = vector.load %arg33[%c0_292, %c0_293] : memref<1x32xf32, #tpu.memory_space<vmem>>, vector<1x32xf32>
    %494 = arith.truncf %487 : vector<2x32xf32> to vector<2x32xbf16>
    %cst_294 = arith.constant dense<0.000000e+00> : vector<2x64xf32>
    %495 = tpu.matmul %494, %488, %cst_294 {dimension_numbers = #tpu.dot_dimension_numbers<[1], [0], [0], [1], [0, 0, 1, 1], [], []>} : vector<2x32xbf16>, vector<32x64xbf16>, vector<2x64xf32> -> vector<2x64xf32>
    %496 = vector.broadcast %489 : vector<1x64xf32> to vector<2x64xf32>
    %497 = arith.addf %495, %496 : vector<2x64xf32>
    %cst_295 = arith.constant 0.000000e+00 : f32
    %498 = vector.broadcast %cst_295 : f32 to vector<2x64xf32>
    %499 = arith.maximumf %497, %498 : vector<2x64xf32>
    %500 = arith.truncf %499 : vector<2x64xf32> to vector<2x64xbf16>
    %cst_296 = arith.constant dense<0.000000e+00> : vector<2x32xf32>
    %501 = tpu.matmul %500, %490, %cst_296 {dimension_numbers = #tpu.dot_dimension_numbers<[1], [0], [0], [1], [0, 0, 1, 1], [], []>} : vector<2x64xbf16>, vector<64x32xbf16>, vector<2x32xf32> -> vector<2x32xf32>
    %502 = vector.broadcast %491 : vector<1x32xf32> to vector<2x32xf32>
    %503 = arith.addf %501, %502 : vector<2x32xf32>
    %504 = arith.addf %487, %503 : vector<2x32xf32>
    %cst_297 = arith.constant dense<0.000000e+00> : vector<2xf32>
    %505 = vector.multi_reduction <add>, %504, %cst_297 [1] : vector<2x32xf32> to vector<2xf32>
    %506 = vector.shape_cast %505 : vector<2xf32> to vector<2x1xf32>
    %cst_298 = arith.constant 3.200000e+01 : f32
    %507 = vector.broadcast %cst_298 : f32 to vector<2x1xf32>
    %508 = arith.divf %506, %507 : vector<2x1xf32>
    %509 = vector.broadcast %508 : vector<2x1xf32> to vector<2x32xf32>
    %510 = arith.subf %504, %509 : vector<2x32xf32>
    %511 = arith.mulf %510, %510 : vector<2x32xf32>
    %cst_299 = arith.constant dense<0.000000e+00> : vector<2xf32>
    %512 = vector.multi_reduction <add>, %511, %cst_299 [1] : vector<2x32xf32> to vector<2xf32>
    %513 = vector.shape_cast %512 : vector<2xf32> to vector<2x1xf32>
    %cst_300 = arith.constant 3.200000e+01 : f32
    %514 = vector.broadcast %cst_300 : f32 to vector<2x1xf32>
    %515 = arith.divf %513, %514 : vector<2x1xf32>
    %516 = vector.broadcast %508 : vector<2x1xf32> to vector<2x32xf32>
    %517 = arith.subf %504, %516 : vector<2x32xf32>
    %cst_301 = arith.constant 9.99999974E-6 : f32
    %518 = vector.broadcast %cst_301 : f32 to vector<2x1xf32>
    %519 = arith.addf %515, %518 : vector<2x1xf32>
    %520 = math.rsqrt %519 : vector<2x1xf32>
    %521 = vector.broadcast %520 : vector<2x1xf32> to vector<2x32xf32>
    %522 = arith.mulf %517, %521 : vector<2x32xf32>
    %523 = vector.broadcast %492 : vector<1x32xf32> to vector<2x32xf32>
    %524 = arith.mulf %522, %523 : vector<2x32xf32>
    %525 = vector.broadcast %493 : vector<1x32xf32> to vector<2x32xf32>
    %526 = arith.addf %524, %525 : vector<2x32xf32>
    %c0_302 = arith.constant 0 : index
    %c0_303 = arith.constant 0 : index
    %527 = vector.load %arg34[%c0_302, %c0_303] : memref<32x32xbf16, #tpu.memory_space<vmem>>, vector<32x32xbf16>
    %c0_304 = arith.constant 0 : index
    %c0_305 = arith.constant 0 : index
    %528 = vector.load %arg35[%c0_304, %c0_305] : memref<1x32xf32, #tpu.memory_space<vmem>>, vector<1x32xf32>
    %529 = arith.truncf %526 : vector<2x32xf32> to vector<2x32xbf16>
    %cst_306 = arith.constant dense<0.000000e+00> : vector<2x32xf32>
    %530 = tpu.matmul %529, %527, %cst_306 {dimension_numbers = #tpu.dot_dimension_numbers<[1], [0], [0], [1], [0, 0, 1, 1], [], []>} : vector<2x32xbf16>, vector<32x32xbf16>, vector<2x32xf32> -> vector<2x32xf32>
    %531 = vector.broadcast %528 : vector<1x32xf32> to vector<2x32xf32>
    %532 = arith.addf %530, %531 : vector<2x32xf32>
    %cst_307 = arith.constant 0.000000e+00 : f32
    %533 = vector.broadcast %cst_307 : f32 to vector<2x32xf32>
    %534 = arith.maximumf %532, %533 : vector<2x32xf32>
    %c0_308 = arith.constant 0 : index
    %c0_309 = arith.constant 0 : index
    %535 = vector.load %arg36[%c0_308, %c0_309] : memref<32x128xbf16, #tpu.memory_space<vmem>>, vector<32x128xbf16>
    %c0_310 = arith.constant 0 : index
    %c0_311 = arith.constant 0 : index
    %536 = vector.load %arg37[%c0_310, %c0_311] : memref<1x128xf32, #tpu.memory_space<vmem>>, vector<1x128xf32>
    %537 = arith.truncf %534 : vector<2x32xf32> to vector<2x32xbf16>
    %cst_312 = arith.constant dense<0.000000e+00> : vector<2x128xf32>
    %538 = tpu.matmul %537, %535, %cst_312 {dimension_numbers = #tpu.dot_dimension_numbers<[1], [0], [0], [1], [0, 0, 1, 1], [], []>} : vector<2x32xbf16>, vector<32x128xbf16>, vector<2x128xf32> -> vector<2x128xf32>
    %539 = vector.broadcast %536 : vector<1x128xf32> to vector<2x128xf32>
    %540 = arith.addf %538, %539 : vector<2x128xf32>
    %541 = vector.shape_cast %540 : vector<2x128xf32> to vector<2x1x128xf32>
    %c0_313 = arith.constant 0 : index
    %c0_314 = arith.constant 0 : index
    %c0_315 = arith.constant 0 : index
    %542 = vector.load %arg38[%c0_313, %c0_314, %c0_315] : memref<2x1x128xf32, #tpu.memory_space<vmem>>, vector<2x1x128xf32>
    tpu.vector_store %arg38[%c0_313, %c0_314, %c0_315], %541 {strides = array<i32>} : memref<2x1x128xf32, #tpu.memory_space<vmem>>, vector<2x1x128xf32>,
    return
  }
  func.func @transform_0(%arg0: i32) -> (i32, i32, i32) {
    %c0_i32 = arith.constant 0 : i32
    %c0_i32_0 = arith.constant 0 : i32
    %c0_i32_1 = arith.constant 0 : i32
    return %arg0, %c0_i32, %c0_i32_0 : i32, i32, i32
  }
  func.func @transform_1(%arg0: i32) -> (i32, i32, i32) {
    %c0_i32 = arith.constant 0 : i32
    %c0_i32_0 = arith.constant 0 : i32
    %c0_i32_1 = arith.constant 0 : i32
    %c0_i32_2 = arith.constant 0 : i32
    return %c0_i32, %c0_i32_0, %c0_i32_1 : i32, i32, i32
  }
  func.func @transform_2(%arg0: i32) -> (i32, i32, i32) {
    %c0_i32 = arith.constant 0 : i32
    %c0_i32_0 = arith.constant 0 : i32
    %c0_i32_1 = arith.constant 0 : i32
    %c0_i32_2 = arith.constant 0 : i32
    return %c0_i32, %c0_i32_0, %c0_i32_1 : i32, i32, i32
  }
  func.func @transform_3(%arg0: i32) -> (i32, i32, i32) {
    %c0_i32 = arith.constant 0 : i32
    %c0_i32_0 = arith.constant 0 : i32
    %c0_i32_1 = arith.constant 0 : i32
    %c0_i32_2 = arith.constant 0 : i32
    return %c0_i32, %c0_i32_0, %c0_i32_1 : i32, i32, i32
  }
  func.func @transform_4(%arg0: i32) -> (i32, i32, i32) {
    %c0_i32 = arith.constant 0 : i32
    %c0_i32_0 = arith.constant 0 : i32
    %c0_i32_1 = arith.constant 0 : i32
    %c0_i32_2 = arith.constant 0 : i32
    return %c0_i32, %c0_i32_0, %c0_i32_1 : i32, i32, i32
  }
  func.func @transform_5(%arg0: i32) -> (i32, i32, i32) {
    %c0_i32 = arith.constant 0 : i32
    %c0_i32_0 = arith.constant 0 : i32
    %c0_i32_1 = arith.constant 0 : i32
    %c0_i32_2 = arith.constant 0 : i32
    return %c0_i32, %c0_i32_0, %c0_i32_1 : i32, i32, i32
  }
  func.func @transform_6(%arg0: i32) -> (i32, i32, i32) {
    %c0_i32 = arith.constant 0 : i32
    %c0_i32_0 = arith.constant 0 : i32
    %c0_i32_1 = arith.constant 0 : i32
    %c0_i32_2 = arith.constant 0 : i32
    return %c0_i32, %c0_i32_0, %c0_i32_1 : i32, i32, i32
  }
  func.func @transform_7(%arg0: i32) -> (i32, i32, i32) {
    %c0_i32 = arith.constant 0 : i32
    %c0_i32_0 = arith.constant 0 : i32
    %c0_i32_1 = arith.constant 0 : i32
    %c0_i32_2 = arith.constant 0 : i32
    return %c0_i32, %c0_i32_0, %c0_i32_1 : i32, i32, i32
  }
  func.func @transform_8(%arg0: i32) -> (i32, i32) {
    %c0_i32 = arith.constant 0 : i32
    %c0_i32_0 = arith.constant 0 : i32
    %c0_i32_1 = arith.constant 0 : i32
    return %c0_i32, %c0_i32_0 : i32, i32
  }
  func.func @transform_9(%arg0: i32) -> (i32, i32) {
    %c0_i32 = arith.constant 0 : i32
    %c0_i32_0 = arith.constant 0 : i32
    %c0_i32_1 = arith.constant 0 : i32
    return %c0_i32, %c0_i32_0 : i32, i32
  }
  func.func @transform_10(%arg0: i32) -> (i32, i32) {
    %c0_i32 = arith.constant 0 : i32
    %c0_i32_0 = arith.constant 0 : i32
    %c0_i32_1 = arith.constant 0 : i32
    return %c0_i32, %c0_i32_0 : i32, i32
  }
  func.func @transform_11(%arg0: i32) -> (i32, i32) {
    %c0_i32 = arith.constant 0 : i32
    %c0_i32_0 = arith.constant 0 : i32
    %c0_i32_1 = arith.constant 0 : i32
    return %c0_i32, %c0_i32_0 : i32, i32
  }
  func.func @transform_12(%arg0: i32) -> (i32, i32) {
    %c0_i32 = arith.constant 0 : i32
    %c0_i32_0 = arith.constant 0 : i32
    %c0_i32_1 = arith.constant 0 : i32
    return %c0_i32, %c0_i32_0 : i32, i32
  }
  func.func @transform_13(%arg0: i32) -> (i32, i32) {
    %c0_i32 = arith.constant 0 : i32
    %c0_i32_0 = arith.constant 0 : i32
    %c0_i32_1 = arith.constant 0 : i32
    return %c0_i32, %c0_i32_0 : i32, i32
  }
  func.func @transform_14(%arg0: i32) -> (i32, i32) {
    %c0_i32 = arith.constant 0 : i32
    %c0_i32_0 = arith.constant 0 : i32
    %c0_i32_1 = arith.constant 0 : i32
    return %c0_i32, %c0_i32_0 : i32, i32
  }
  func.func @transform_15(%arg0: i32) -> (i32, i32) {
    %c0_i32 = arith.constant 0 : i32
    %c0_i32_0 = arith.constant 0 : i32
    %c0_i32_1 = arith.constant 0 : i32
    return %c0_i32, %c0_i32_0 : i32, i32
  }
  func.func @transform_16(%arg0: i32) -> (i32, i32) {
    %c0_i32 = arith.constant 0 : i32
    %c0_i32_0 = arith.constant 0 : i32
    %c0_i32_1 = arith.constant 0 : i32
    return %c0_i32, %c0_i32_0 : i32, i32
  }
  func.func @transform_17(%arg0: i32) -> (i32, i32, i32) {
    %c0_i32 = arith.constant 0 : i32
    %c0_i32_0 = arith.constant 0 : i32
    %c0_i32_1 = arith.constant 0 : i32
    %c0_i32_2 = arith.constant 0 : i32
    return %c0_i32, %c0_i32_0, %c0_i32_1 : i32, i32, i32
  }
  func.func @transform_18(%arg0: i32) -> (i32, i32, i32) {
    %c0_i32 = arith.constant 0 : i32
    %c0_i32_0 = arith.constant 0 : i32
    %c0_i32_1 = arith.constant 0 : i32
    %c0_i32_2 = arith.constant 0 : i32
    return %c0_i32, %c0_i32_0, %c0_i32_1 : i32, i32, i32
  }
  func.func @transform_19(%arg0: i32) -> (i32, i32, i32) {
    %c0_i32 = arith.constant 0 : i32
    %c0_i32_0 = arith.constant 0 : i32
    %c0_i32_1 = arith.constant 0 : i32
    %c0_i32_2 = arith.constant 0 : i32
    return %c0_i32, %c0_i32_0, %c0_i32_1 : i32, i32, i32
  }
  func.func @transform_20(%arg0: i32) -> (i32, i32, i32) {
    %c0_i32 = arith.constant 0 : i32
    %c0_i32_0 = arith.constant 0 : i32
    %c0_i32_1 = arith.constant 0 : i32
    %c0_i32_2 = arith.constant 0 : i32
    return %c0_i32, %c0_i32_0, %c0_i32_1 : i32, i32, i32
  }
  func.func @transform_21(%arg0: i32) -> (i32, i32, i32) {
    %c0_i32 = arith.constant 0 : i32
    %c0_i32_0 = arith.constant 0 : i32
    %c0_i32_1 = arith.constant 0 : i32
    %c0_i32_2 = arith.constant 0 : i32
    return %c0_i32, %c0_i32_0, %c0_i32_1 : i32, i32, i32
  }
  func.func @transform_22(%arg0: i32) -> (i32, i32, i32) {
    %c0_i32 = arith.constant 0 : i32
    %c0_i32_0 = arith.constant 0 : i32
    %c0_i32_1 = arith.constant 0 : i32
    %c0_i32_2 = arith.constant 0 : i32
    return %c0_i32, %c0_i32_0, %c0_i32_1 : i32, i32, i32
  }
  func.func @transform_23(%arg0: i32) -> (i32, i32, i32) {
    %c0_i32 = arith.constant 0 : i32
    %c0_i32_0 = arith.constant 0 : i32
    %c0_i32_1 = arith.constant 0 : i32
    %c0_i32_2 = arith.constant 0 : i32
    return %c0_i32, %c0_i32_0, %c0_i32_1 : i32, i32, i32
  }
  func.func @transform_24(%arg0: i32) -> (i32, i32) {
    %c0_i32 = arith.constant 0 : i32
    %c0_i32_0 = arith.constant 0 : i32
    %c0_i32_1 = arith.constant 0 : i32
    return %c0_i32, %c0_i32_0 : i32, i32
  }
  func.func @transform_25(%arg0: i32) -> (i32, i32) {
    %c0_i32 = arith.constant 0 : i32
    %c0_i32_0 = arith.constant 0 : i32
    %c0_i32_1 = arith.constant 0 : i32
    return %c0_i32, %c0_i32_0 : i32, i32
  }
  func.func @transform_26(%arg0: i32) -> (i32, i32) {
    %c0_i32 = arith.constant 0 : i32
    %c0_i32_0 = arith.constant 0 : i32
    %c0_i32_1 = arith.constant 0 : i32
    return %c0_i32, %c0_i32_0 : i32, i32
  }
  func.func @transform_27(%arg0: i32) -> (i32, i32) {
    %c0_i32 = arith.constant 0 : i32
    %c0_i32_0 = arith.constant 0 : i32
    %c0_i32_1 = arith.constant 0 : i32
    return %c0_i32, %c0_i32_0 : i32, i32
  }
  func.func @transform_28(%arg0: i32) -> (i32, i32) {
    %c0_i32 = arith.constant 0 : i32
    %c0_i32_0 = arith.constant 0 : i32
    %c0_i32_1 = arith.constant 0 : i32
    return %c0_i32, %c0_i32_0 : i32, i32
  }
  func.func @transform_29(%arg0: i32) -> (i32, i32) {
    %c0_i32 = arith.constant 0 : i32
    %c0_i32_0 = arith.constant 0 : i32
    %c0_i32_1 = arith.constant 0 : i32
    return %c0_i32, %c0_i32_0 : i32, i32
  }
  func.func @transform_30(%arg0: i32) -> (i32, i32) {
    %c0_i32 = arith.constant 0 : i32
    %c0_i32_0 = arith.constant 0 : i32
    %c0_i32_1 = arith.constant 0 : i32
    return %c0_i32, %c0_i32_0 : i32, i32
  }
  func.func @transform_31(%arg0: i32) -> (i32, i32) {
    %c0_i32 = arith.constant 0 : i32
    %c0_i32_0 = arith.constant 0 : i32
    %c0_i32_1 = arith.constant 0 : i32
    return %c0_i32, %c0_i32_0 : i32, i32
  }
  func.func @transform_32(%arg0: i32) -> (i32, i32) {
    %c0_i32 = arith.constant 0 : i32
    %c0_i32_0 = arith.constant 0 : i32
    %c0_i32_1 = arith.constant 0 : i32
    return %c0_i32, %c0_i32_0 : i32, i32
  }
  func.func @transform_33(%arg0: i32) -> (i32, i32) {
    %c0_i32 = arith.constant 0 : i32
    %c0_i32_0 = arith.constant 0 : i32
    %c0_i32_1 = arith.constant 0 : i32
    return %c0_i32, %c0_i32_0 : i32, i32
  }
  func.func @transform_34(%arg0: i32) -> (i32, i32) {
    %c0_i32 = arith.constant 0 : i32
    %c0_i32_0 = arith.constant 0 : i32
    %c0_i32_1 = arith.constant 0 : i32
    return %c0_i32, %c0_i32_0 : i32, i32
  }
  func.func @transform_35(%arg0: i32) -> (i32, i32) {
    %c0_i32 = arith.constant 0 : i32
    %c0_i32_0 = arith.constant 0 : i32
    %c0_i32_1 = arith.constant 0 : i32
    return %c0_i32, %c0_i32_0 : i32, i32
  }
  func.func @transform_36(%arg0: i32) -> (i32, i32) {
    %c0_i32 = arith.constant 0 : i32
    %c0_i32_0 = arith.constant 0 : i32
    %c0_i32_1 = arith.constant 0 : i32
    return %c0_i32, %c0_i32_0 : i32, i32
  }
  func.func @transform_37(%arg0: i32) -> (i32, i32, i32) {
    %c0_i32 = arith.constant 0 : i32
    %c0_i32_0 = arith.constant 0 : i32
    %c0_i32_1 = arith.constant 0 : i32
    return %arg0, %c0_i32, %c0_i32_0 : i32, i32, i32
  }
}

</mosaic_0001>

<bundles_post_ra>
// kernel: tpu_custom_call.1
= control target key start
LH: loop header
LB: loop body
LE: loop exit
PB: predicated region body
PF: predicated region fallthrough
CT: control target
= control target key end

     0   :  { %s3341_s6 = smov 1   ;;  %s3342_s10 = smov 2   ;;  %s3933_s0 = inlined_call_operand.smem [shape: u32[38], index: -1, kind: input, shape index: {}] }
   0x1   :  { %s3390_s5 = sld [smem:[%s3933_s0]]   ;;  %s3343_s14 = smov 3  }
   0x2   :  { %s3395_s9 = sld [smem:[%s3933_s0 + %s3341_s6]]   ;;  %s3344_s18 = smov 4  }
   0x3   :  { %s3400_s13 = sld [smem:[%s3933_s0 + %s3342_s10]]   ;;  %s3345_s22 = smov 5  }
   0x4   :  { %s3405_s17 = sld [smem:[%s3933_s0 + %s3343_s14]]   ;;  %s3346_s26 = smov 6  }
   0x5   :  { %s3410_s21 = sld [smem:[%s3933_s0 + %s3344_s18]]   ;;  %s3347_s30 = smov 7  }
   0x6   :  { %s3415_s25 = sld [smem:[%s3933_s0 + %s3345_s22]]   ;;  %s3348_s4 = smov 8  }
   0x7   :  { %s3420_s29 = sld [smem:[%s3933_s0 + %s3346_s26]]   ;;  %s3349_s10 = smov 9  }
   0x8   :  { %s3425_s3 = sld [smem:[%s3933_s0 + %s3347_s30]]   ;;  %s3350_s15 = smov 10  }
   0x9   :  { %s3430_s8 = sld [smem:[%s3933_s0 + %s3348_s4]]   ;;  %s3351_s20 = smov 11  }
   0xa   :  { %s3435_s14 = sld [smem:[%s3933_s0 + %s3349_s10]]   ;;  %s3352_s26 = smov 12  }
   0xb   :  { %s3440_s19 = sld [smem:[%s3933_s0 + %s3350_s15]]   ;;  %s3353_s1 = smov 13  }
   0xc   :  { %s3445_s24 = sld [smem:[%s3933_s0 + %s3351_s20]]   ;;  %s3354_s7 = smov 14  }
   0xd   :  { %s3450_s30 = sld [smem:[%s3933_s0 + %s3352_s26]]   ;;  %s3355_s15 = smov 15  }
   0xe   :  { %s3455_s6 = sld [smem:[%s3933_s0 + %s3353_s1]]   ;;  %s3356_s22 = smov 16  }
   0xf   :  { %s3460_s12 = sld [smem:[%s3933_s0 + %s3354_s7]]   ;;  %s3357_s28 = smov 17  }
  0x10   :  { %s3465_s20 = sld [smem:[%s3933_s0 + %s3355_s15]]   ;;  %s3358_s7 = smov 18  }
  0x11   :  { %s3470_s27 = sld [smem:[%s3933_s0 + %s3356_s22]]   ;;  %s3359_s15 = smov 19  }
  0x12   :  { %s3475_s4 = sld [smem:[%s3933_s0 + %s3357_s28]]   ;;  %s3360_s22 = smov 20  }
  0x13   :  { %s3361_s28 = smov 21  }
  0x15   :  { %3944 = sst [smem:[#allocation5_spill]] %s3460_s12 }
  0x16   :  { %3945 = sst [smem:[#allocation6_spill]] %s3465_s20 }
  0x17   :  { %3946 = sst [smem:[#allocation7_spill]] %s3470_s27 }
  0x18   :  { %3947 = sst [smem:[#allocation8_spill]] %s3475_s4 }
  0x19   :  { %s3480_s12 = sld [smem:[%s3933_s0 + %s3358_s7]]   ;;  %s3362_s7 = smov 22  }
  0x1a   :  { %s3485_s20 = sld [smem:[%s3933_s0 + %s3359_s15]]   ;;  %s3363_s15 = smov 23  }
  0x1b   :  { %s3490_s27 = sld [smem:[%s3933_s0 + %s3360_s22]]   ;;  %s3364_s22 = smov 24  }
  0x1c   :  { %s3495_s4 = sld [smem:[%s3933_s0 + %s3361_s28]]   ;;  %s3365_s28 = smov 25  }
  0x1f   :  { %3948 = sst [smem:[#allocation9_spill]] %s3480_s12 }
  0x20   :  { %3949 = sst [smem:[#allocation10_spill]] %s3485_s20 }
  0x21   :  { %3950 = sst [smem:[#allocation11_spill]] %s3490_s27 }
  0x22   :  { %3951 = sst [smem:[#allocation12_spill]] %s3495_s4 }
  0x23   :  { %s3500_s12 = sld [smem:[%s3933_s0 + %s3362_s7]]   ;;  %s3366_s7 = smov 26  }
  0x24   :  { %s3505_s20 = sld [smem:[%s3933_s0 + %s3363_s15]]   ;;  %s3367_s15 = smov 27  }
  0x25   :  { %s3510_s27 = sld [smem:[%s3933_s0 + %s3364_s22]]   ;;  %s3368_s22 = smov 28  }
  0x26   :  { %s3515_s4 = sld [smem:[%s3933_s0 + %s3365_s28]]   ;;  %s3369_s28 = smov 29  }
  0x29   :  { %3952 = sst [smem:[#allocation13_spill]] %s3500_s12 }
  0x2a   :  { %3953 = sst [smem:[#allocation14_spill]] %s3505_s20 }
  0x2b   :  { %3954 = sst [smem:[#allocation15_spill]] %s3510_s27 }
  0x2c   :  { %3955 = sst [smem:[#allocation16_spill]] %s3515_s4 }
  0x2d   :  { %s3520_s12 = sld [smem:[%s3933_s0 + %s3366_s7]]   ;;  %s3370_s7 = smov 30  }
  0x2e   :  { %s3525_s20 = sld [smem:[%s3933_s0 + %s3367_s15]]   ;;  %s3371_s15 = smov 31  }
  0x2f   :  { %s3530_s27 = sld [smem:[%s3933_s0 + %s3368_s22]]   ;;  %s3372_s22 = smov 32  }
  0x30   :  { %s3535_s4 = sld [smem:[%s3933_s0 + %s3369_s28]]   ;;  %s3373_s28 = smov 33  }
  0x33   :  { %3956 = sst [smem:[#allocation17_spill]] %s3520_s12 }
  0x34   :  { %3957 = sst [smem:[#allocation18_spill]] %s3525_s20 }
  0x35   :  { %3958 = sst [smem:[#allocation19_spill]] %s3530_s27 }
  0x36   :  { %3959 = sst [smem:[#allocation20_spill]] %s3535_s4 }
  0x37   :  { %s3540_s12 = sld [smem:[%s3933_s0 + %s3370_s7]]   ;;  %s3374_s7 = smov 34  }
  0x38   :  { %s3545_s20 = sld [smem:[%s3933_s0 + %s3371_s15]]   ;;  %s3375_s15 = smov 35  }
  0x39   :  { %s3550_s27 = sld [smem:[%s3933_s0 + %s3372_s22]]   ;;  %s3376_s22 = smov 36  }
  0x3a   :  { %s3555_s4 = sld [smem:[%s3933_s0 + %s3373_s28]]   ;;  %s3377_s28 = smov 37  }
  0x3d   :  { %3960 = sst [smem:[#allocation21_spill]] %s3540_s12 }
  0x3e   :  { %3961 = sst [smem:[#allocation22_spill]] %s3545_s20 }
  0x3f   :  { %3962 = sst [smem:[#allocation23_spill]] %s3550_s27 }
  0x40   :  { %3963 = sst [smem:[#allocation24_spill]] %s3555_s4 }
  0x41   :  { %s3560_s12 = sld [smem:[%s3933_s0 + %s3374_s7]]  }
  0x42   :  { %s3565_s20 = sld [smem:[%s3933_s0 + %s3375_s15]]  }
  0x43   :  { %s3570_s27 = sld [smem:[%s3933_s0 + %s3376_s22]]  }
  0x44   :  { %s3575_s4 = sld [smem:[%s3933_s0 + %s3377_s28]]  }
  0x45   :  { %v3091_v0 = vld [vmem:[%s3395_s9 + $0x8] sm:$0xff]  ;;  %v3090_v2 = vld [vmem:[%s3395_s9] sm:$0xff]  ;;  %vm179_vm0 = vcmask 261120  }
  0x46   :  { %v3093_v1 = vld [vmem:[%s3405_s17 + $0x8] sm:$0xff]  ;;  %v3092_v3 = vld [vmem:[%s3405_s17] sm:$0xff]  ;;  %189 = vmatpush.bf16.msra.mxu0 %v3091_v0 }
  0x47   :  { %v3582_v4 = vld [vmem:[%s3390_s5] sm:$0xff]  ;;  %225 = vmatpush.bf16.msra.mxu1 %v3093_v1  ;;  %v3585_v5 = vld [vmem:[%s3390_s5 + $0x8] sm:$0xff] }
  0x48   :  { %v3589_v6 = vpack.c.bf16 %v3585_v5, %v3582_v4 }
  0x4a   :  { %190 = vmatpush.bf16.msra.mxu0 %v3090_v2 }
  0x4b   :  { %226 = vmatpush.bf16.msra.mxu1 %v3092_v3 }
  0x4d   :  { %2676 = vmatmul.msk.bf16.vlgmr.msra.gmra.mxu0 %vm179_vm0, %v3589_v6 }
  0x4e   :  { %2685 = vmatmul.msk.bf16.vlgmr.msra.gmra.mxu1 %vm179_vm0, %v3589_v6 }
  0x4f   :  { %80 = vsyncpa [#allocation3], 0  ;;  %v3195_v7 = vld [vmem:[%s3400_s13] ss:$0 sm:$0xff]  ;;  %vm273_vm1 = vcmask 64512   ;;  %v3097_v14 = vld [vmem:[%s3395_s9 + $0x18] sm:$0xff] }
  0x50   :  { %v3196_v8 = vld [vmem:[%s3410_s21] ss:$0 sm:$0xff]  ;;  %v3096_v17 = vld [vmem:[%s3395_s9 + $0x10] sm:$0xff]  ;;  %v3099_v24 = vld [vmem:[%s3405_s17 + $0x18] sm:$0xff]  ;;  %vm339_vm2 = vcmask 1043456   ;;  %s3964_s0 = sld [smem:[#allocation5_spill]] }
  0x51   :  { %v3098_v27 = vld [vmem:[%s3405_s17 + $0x10] sm:$0xff]  ;;  %v3095_v33 = vld [vmem:[%s3415_s25 + $0x8] sm:$0xff]  ;;  %v3094_v35 = vld [vmem:[%s3415_s25] sm:$0xff]  ;;  %vm1268_vm10 = vcmask 523264   ;;  %s3965_s5 = sld [smem:[#allocation8_spill]]  ;;  %s3379_s18 = smov [#allocation2]  }
  0x52   :  { %259 = vmatpush.bf16.msra.mxu2 %v3095_v33  ;;  %v3198_v37 = vld [vmem:[%s3400_s13 + $0x1] ss:$0 sm:$0xff]  ;;  %v3199_v61 = vld [vmem:[%s3420_s29] ss:$0 sm:$0xff]  ;;  %s3979_s7 = sld [smem:[#allocation19_spill]]  ;;  %s2617_s22 = sshll.u32 %s3379_s18, 4  ;;  %s2618_s22 = int_to_ptr.vmem [resolvable:$true] %s2617_s22 }
  0x53   :  { %v3197_v39 = vld [vmem:[%s3410_s21 + $0x1] ss:$0 sm:$0xff]  ;;  %s3980_s10 = sld [smem:[#allocation21_spill]]  ;;  %s2619_s23 = sshll.u32 %s3575_s4, 4  ;;  %s2620_s23 = int_to_ptr.hbm [resolvable:$true] %s2619_s23 }
  0x54   :  { %s3981_s11 = sld [smem:[#allocation24_spill]]  ;;  %s3331_s26 = scalar_lea.hbm %s3575_s4, 2 }
  0x55   :  { %s3982_s15 = sld [smem:[#allocation22_spill]] }
  0x56   :  { %260 = vmatpush.bf16.msra.mxu2 %v3094_v35  ;;  %s3983_s16 = sld [smem:[#allocation23_spill]] }
  0x59   :  { %2694 = vmatmul.msk.bf16.vlgmr.msra.gmra.mxu2 %vm179_vm0, %v3589_v6 }
  0xca   :  { %v192_v9 = vpop.f32.mrf.mxu0 }
  0xcb   :  { %v228_v10 = vpop.f32.mrf.mxu1  ;;  %v193_v11 = vadd.f32 %v3195_v7, %v192_v9 }
  0xcc   :  { %v229_v12 = vadd.f32 %v3196_v8, %v228_v10 }
  0xcd   :  { %v197_v15 = vmul.f32 0.35355338, %v193_v11 }
  0xce   :  { %v269_v13 = vpack.c.bf16 %v229_v12, %v229_v12 }
  0xcf   :  { %v267_v20 = vpack.c.bf16 %v197_v15, %v197_v15 }
  0xd0   :  { %v278_v16 = vsel %vm273_vm1, %v269_v13, 0 }
  0xd1   :  { %287 = vmatpush.bf16.xpose.msra.mxu3 %v278_v16  ;;  %v3100_v16 = vld [vmem:[%s3415_s25 + $0x10] sm:$0xff] }
  0xd2   :  { %v194_v18 = vpop.f32.mrf.mxu0 }
  0xd3   :  { %v230_v19 = vpop.f32.mrf.mxu1  ;;  %v195_v22 = vadd.f32 %v3195_v7, %v194_v18 }
  0xd4   :  { %v231_v21 = vadd.f32 %v3196_v8, %v230_v19 }
  0xd5   :  { %v198_v26 = vmul.f32 0.35355338, %v195_v22 }
  0xd6   :  { %v270_v23 = vpack.c.bf16 %v231_v21, %v231_v21 }
  0xd7   :  { %v268_v28 = vpack.c.bf16 %v198_v26, %v198_v26 }
  0xd8   :  { %2695 = vmatmul.msk.bf16.vlgmr.msra.gmra.mxu3 %vm273_vm1, %v267_v20  ;;  %v297_v25 = vsel %vm273_vm1, %v270_v23, 0 }
  0xd9   :  { %405 = vmatpush.bf16.msrb.mxu3 %v3097_v14  ;;  %306 = vmatpush.bf16.xpose.msrb.mxu0 %v297_v25  ;;  %v3101_v14 = vld [vmem:[%s3415_s25 + $0x18] sm:$0xff] }
  0xdc   :  { %v262_v62 = vpop.f32.mrf.mxu2 }
  0xdd   :  { %406 = vmatpush.bf16.msrb.mxu3 %v3096_v17  ;;  %v263_v63 = vadd.f32 %v3199_v61, %v262_v62  ;;  %v3104_v62 = vld [vmem:[%s3405_s17 + $0x20] sm:$0xff] }
  0xdf   :  { %v271_v0 = vpack.c.bf16 %v263_v63, %v263_v63  ;;  %v3103_v63 = vld [vmem:[%s3395_s9 + $0x28] sm:$0xff] }
  0xe0   :  { %2696 = vmatmul.msk.bf16.vlgmr.msrb.gmra.mxu0 %vm273_vm1, %v268_v28 }
  0xe1   :  { %443 = vmatpush.bf16.msra.mxu0 %v3099_v24  ;;  %v341_v1 = vsel %vm339_vm2, %v271_v0, 0  ;;  %v3102_v0 = vld [vmem:[%s3395_s9 + $0x20] sm:$0xff] }
  0xe2   :  { %350 = vmatpush.bf16.msrb.mxu1 %v341_v1 }
  0xe4   :  { %v264_v3 = vpop.f32.mrf.mxu2 }
  0xe5   :  { %444 = vmatpush.bf16.msra.mxu0 %v3098_v27  ;;  %v265_v7 = vadd.f32 %v3199_v61, %v264_v3  ;;  %v3105_v61 = vld [vmem:[%s3405_s17 + $0x28] sm:$0xff] }
  0xe6   :  { %479 = vmatpush.bf16.msra.mxu1 %v3101_v14 }
  0xe7   :  { %v272_v8 = vpack.c.bf16 %v265_v7, %v265_v7 }
  0xe8   :  { %2712 = vmatmul.msk.bf16.vlgmr.msrb.gmra.mxu3 %vm179_vm0, %v3589_v6 }
  0xe9   :  { %v360_v10 = vsel %vm339_vm2, %v272_v8, 0  ;;  %v2745_v8 = vld [vmem:[%s3425_s3 + $0x4] sm:$0xf] }
  0xea   :  { %369 = vmatpush.bf16.msrb.mxu2 %v360_v10  ;;  %480 = vmatpush.bf16.msra.mxu1 %v3100_v16  ;;  %v3201_v10 = vld [vmem:[%s3410_s21 + $0x2] ss:$0 sm:$0xff] }
  0xf0   :  { %2726 = vmatmul.msk.bf16.vlgmr.msra.gmra.mxu0 %vm179_vm0, %v3589_v6 }
 0x15b   :  { %v289_v29 = vpop.f32.mrf.mxu3 }
 0x15c   :  { %v312_v30 = vsel %vm273_vm1, %v289_v29, -inf }
 0x15d   :  { %v308_v31 = vpop.f32.mrf.mxu0  ;;  %313 = vmax.xlane.f32.xlu1 %v312_v30 }
 0x15e   :  { %v315_v32 = vsel %vm273_vm1, %v308_v31, -inf }
 0x15f   :  { %316 = vmax.xlane.f32.xlu0 %v315_v32 }
 0x163   :  { %v291_v34 = vpop.f32.mrf.mxu3 }
 0x165   :  { %v310_v36 = vpop.f32.mrf.mxu0 }
 0x16b   :  { %v408_v38 = vpop.f32.mrf.mxu3 }
 0x16c   :  { %v409_v40 = vadd.f32 %v3198_v37, %v408_v38 }
 0x16d   :  { %v446_v41 = vpop.f32.mrf.mxu0 }
 0x16e   :  { %v447_v42 = vadd.f32 %v3197_v39, %v446_v41  ;;  %v413_v24 = vmul.f32 0.35355338, %v409_v40 }
 0x170   :  { %v489_v2 = vpack.c.bf16 %v447_v42, %v447_v42  ;;  %v487_v25 = vpack.c.bf16 %v413_v24, %v413_v24 }
 0x172   :  { %v497_v9 = vsel %vm273_vm1, %v489_v2, 0 }
 0x173   :  { %v410_v43 = vpop.f32.mrf.mxu3  ;;  %506 = vmatpush.bf16.xpose.msra.mxu2 %v497_v9  ;;  %v600_v9 = vsel %vm339_vm2, %v2745_v8, 0 }
 0x174   :  { %v411_v46 = vadd.f32 %v3198_v37, %v410_v43  ;;  %v3200_v37 = vld [vmem:[%s3420_s29 + $0x1] ss:$0 sm:$0xff] }
 0x175   :  { %v448_v44 = vpop.f32.mrf.mxu0 }
 0x176   :  { %v449_v45 = vadd.f32 %v3197_v39, %v448_v44  ;;  %v414_v48 = vmul.f32 0.35355338, %v411_v46 }
 0x178   :  { %v490_v47 = vpack.c.bf16 %v449_v45, %v449_v45  ;;  %v488_v50 = vpack.c.bf16 %v414_v48, %v414_v48 }
 0x17a   :  { %v516_v49 = vsel %vm273_vm1, %v490_v47, 0 }
 0x17b   :  { %525 = vmatpush.bf16.xpose.msra.mxu3 %v516_v49 }
 0x182   :  { %2742 = vmatmul.msk.bf16.vlgmr.msra.gmra.mxu3 %vm273_vm1, %v488_v50 }
 0x1d0   :  { %v314_v51 = vpop.xlane.xlu1 %313 }
 0x1d1   :  { %v318_v52 = vsub.f32 %v289_v29, %v314_v51 }
 0x1d2   :  { %v317_v53 = vpop.xlane.xlu0 %316 }
 0x1d3   :  { %v320_v54 = vmul.f32 1.442695, %v318_v52  ;;  %v319_v55 = vsub.f32 %v308_v31, %v317_v53  ;;  %v376_v31 = vld [vmem:[%s3425_s3] sm:$0xf] }
 0x1d4   :  { %v620_v32 = vsel %vm339_vm2, %v376_v31, 0  ;;  %v3107_v31 = vld [vmem:[%s3415_s25 + $0x28] sm:$0xff] }
 0x1d5   :  { %3235 = vpow2.f32 %v320_v54  ;;  %v322_v56 = vmul.f32 1.442695, %v319_v55  ;;  %629 = vmatpush.bf16.msrb.mxu3 %v620_v32  ;;  %v3106_v32 = vld [vmem:[%s3415_s25 + $0x20] sm:$0xff] }
 0x1d7   :  { %3237 = vpow2.f32 %v322_v56 }
 0x1db   :  { %v3236_v57 = vpop.eup %3235 }
 0x1dc   :  { %v324_v58 = vsel %vm273_vm1, %v3236_v57, 0.0 }
 0x1dd   :  { %v3238_v59 = vpop.eup %3237  ;;  %325 = vadd.xlane.f32.xlu1 %v324_v58 }
 0x1de   :  { %v327_v60 = vsel %vm273_vm1, %v3238_v59, 0.0 }
 0x1df   :  { %328 = vadd.xlane.f32.xlu0 %v327_v60 }
 0x205   :  { %v527_v11 = vpop.f32.mrf.mxu3 }
 0x206   :  { %v534_v12 = vsel %vm273_vm1, %v527_v11, -inf }
 0x207   :  { %535 = vmax.xlane.f32.xlu2 %v534_v12 }
 0x20d   :  { %v529_v13 = vpop.f32.mrf.mxu3 }
 0x250   :  { %v326_v15 = vpop.xlane.xlu1 %325 }
 0x251   :  { %3239 = vrcp.f32 %v326_v15 }
 0x252   :  { %v329_v17 = vpop.xlane.xlu0 %328 }
 0x253   :  { %3241 = vrcp.f32 %v329_v17 }
 0x257   :  { %v3240_v18 = vpop.eup %3239 }
 0x258   :  { %v332_v19 = vmul.f32 %v3240_v18, %v3236_v57 }
 0x259   :  { %v3242_v20 = vpop.eup %3241 }
 0x25a   :  { %v333_v21 = vmul.f32 %v3242_v20, %v3238_v59  ;;  %v334_v22 = vpack.c.bf16 %v332_v19, %v332_v19 }
 0x25c   :  { %2697 = vmatmul.msk.bf16.vlgmr.msrb.gmra.mxu1 %vm273_vm1, %v334_v22  ;;  %v335_v23 = vpack.c.bf16 %v333_v21, %v333_v21  ;;  %v3202_v22 = vld [vmem:[%s3400_s13 + $0x2] ss:$0 sm:$0xff] }
 0x25e   :  { %2698 = vmatmul.msk.bf16.vlgmr.msrb.gmra.mxu2 %vm273_vm1, %v335_v23 }
 0x25f   :  { %609 = vmatpush.bf16.msrb.mxu2 %v600_v9 }
 0x26c   :  { %2740 = vmatmul.msk.bf16.vlgmr.msra.gmra.mxu1 %vm179_vm0, %v3589_v6 }
 0x26e   :  { %2741 = vmatmul.msk.bf16.vlgmr.msra.gmra.mxu2 %vm273_vm1, %v487_v25 }
 0x26f   :  { %738 = vmatpush.bf16.msra.mxu2 %v3107_v31 }
 0x273   :  { %739 = vmatpush.bf16.msra.mxu2 %v3106_v32 }
 0x27a   :  { %v536_v26 = vpop.xlane.xlu2 %535 }
 0x27b   :  { %v538_v27 = vsub.f32 %v527_v11, %v536_v26 }
 0x27d   :  { %v541_v28 = vmul.f32 1.442695, %v538_v27 }
 0x27f   :  { %3243 = vpow2.f32 %v541_v28 }
 0x285   :  { %v3244_v29 = vpop.eup %3243 }
 0x286   :  { %v546_v30 = vsel %vm273_vm1, %v3244_v29, 0.0 }
 0x287   :  { %547 = vadd.xlane.f32.xlu0 %v546_v30 }
 0x2d9   :  { %v352_v33 = vpop.f32.mrf.mxu1 }
 0x2e1   :  { %v354_v34 = vpop.f32.mrf.mxu1  ;;  %v371_v35 = vpop.f32.mrf.mxu2 }
 0x2e2   :  { %v375_v36 = vpack.c.bf16 %v371_v35, %v352_v33 }
 0x2e4   :  { %2747 = vmatmul.msk.bf16.vlgmr.msrb.gmra.mxu3 %vm273_vm1, %v375_v36 }
 0x2e9   :  { %v373_v38 = vpop.f32.mrf.mxu2  ;;  %v482_v39 = vpop.f32.mrf.mxu1 }
 0x2ea   :  { %v483_v40 = vadd.f32 %v3200_v37, %v482_v39 }
 0x2ec   :  { %v491_v41 = vpack.c.bf16 %v483_v40, %v483_v40 }
 0x2ee   :  { %v559_v42 = vsel %vm339_vm2, %v491_v41, 0 }
 0x2ef   :  { %568 = vmatpush.bf16.msrb.mxu0 %v559_v42 }
 0x2f1   :  { %v508_v43 = vpop.f32.mrf.mxu2  ;;  %v484_v44 = vpop.f32.mrf.mxu1 }
 0x2f2   :  { %v531_v45 = vsel %vm273_vm1, %v508_v43, -inf  ;;  %v485_v46 = vadd.f32 %v3200_v37, %v484_v44 }
 0x2f3   :  { %532 = vmax.xlane.f32.xlu2 %v531_v45  ;;  %664 = vmatpush.bf16.msra.mxu0 %v3103_v63  ;;  %v3111_v63 = vld [vmem:[%s3405_s17 + $0x38] sm:$0xff] }
 0x2f4   :  { %v492_v47 = vpack.c.bf16 %v485_v46, %v485_v46 }
 0x2f6   :  { %v578_v48 = vsel %vm339_vm2, %v492_v47, 0 }
 0x2f7   :  { %587 = vmatpush.bf16.msrb.mxu1 %v578_v48  ;;  %665 = vmatpush.bf16.msra.mxu0 %v3102_v0  ;;  %v3108_v0 = vld [vmem:[%s3395_s9 + $0x30] sm:$0xff] }
 0x2f9   :  { %v510_v49 = vpop.f32.mrf.mxu2 }
 0x2fa   :  { %v548_v50 = vpop.xlane.xlu0 %547 }
 0x2fb   :  { %3245 = vrcp.f32 %v548_v50  ;;  %702 = vmatpush.bf16.msra.mxu1 %v3105_v61 }
 0x2ff   :  { %703 = vmatpush.bf16.msra.mxu1 %v3104_v62  ;;  %v3109_v62 = vld [vmem:[%s3395_s9 + $0x38] sm:$0xff]  ;;  %s3966_s9 = sld [smem:[#allocation10_spill]] }
 0x301   :  { %v3246_v51 = vpop.eup %3245 }
 0x302   :  { %v552_v52 = vmul.f32 %v3246_v51, %v3244_v29 }
 0x304   :  { %v554_v53 = vpack.c.bf16 %v552_v52, %v552_v52 }
 0x306   :  { %2744 = vmatmul.msk.bf16.vlgmr.msrb.gmra.mxu1 %vm273_vm1, %v554_v53 }
 0x316   :  { %2775 = vmatmul.msk.bf16.vlgmr.msra.gmra.mxu1 %vm179_vm0, %v3589_v6 }
 0x366   :  { %v533_v54 = vpop.xlane.xlu2 %532 }
 0x367   :  { %v537_v55 = vsub.f32 %v508_v43, %v533_v54  ;;  %v3663_v33 = vpop.f32.mrf.mxu3  ;;  %v3203_v43 = vld [vmem:[%s3420_s29 + $0x2] ss:$0 sm:$0xff] }
 0x369   :  { %v539_v56 = vmul.f32 1.442695, %v537_v55 }
 0x36b   :  { %3247 = vpow2.f32 %v539_v56 }
 0x36f   :  { %v3667_v34 = vpop.f32.mrf.mxu3 }
 0x371   :  { %v3248_v57 = vpop.eup %3247 }
 0x372   :  { %v543_v58 = vsel %vm273_vm1, %v3248_v57, 0.0 }
 0x373   :  { %544 = vadd.xlane.f32.xlu1 %v543_v58 }
 0x383   :  { %v589_v59 = vpop.f32.mrf.mxu1 }
 0x38b   :  { %v591_v60 = vpop.f32.mrf.mxu1 }
 0x393   :  { %v705_v11 = vpop.f32.mrf.mxu1 }
 0x394   :  { %v706_v12 = vadd.f32 %v3201_v10, %v705_v11 }
 0x396   :  { %v748_v13 = vpack.c.bf16 %v706_v12, %v706_v12 }
 0x398   :  { %v756_v14 = vsel %vm273_vm1, %v748_v13, 0  ;;  %v2794_v13 = vld [vmem:[%s3425_s3 + $0x8] sm:$0xf] }
 0x399   :  { %765 = vmatpush.bf16.xpose.msra.mxu3 %v756_v14  ;;  %v859_v14 = vsel %vm339_vm2, %v2794_v13, 0 }
 0x39b   :  { %v707_v15 = vpop.f32.mrf.mxu1 }
 0x39c   :  { %v708_v16 = vadd.f32 %v3201_v10, %v707_v15 }
 0x39e   :  { %v749_v17 = vpack.c.bf16 %v708_v16, %v708_v16 }
 0x3a0   :  { %v775_v18 = vsel %vm273_vm1, %v749_v17, 0 }
 0x3a1   :  { %868 = vmatpush.bf16.msrb.mxu3 %v859_v14 }
 0x3e6   :  { %v545_v1 = vpop.xlane.xlu1 %544 }
 0x3e7   :  { %3249 = vrcp.f32 %v545_v1  ;;  %v3110_v1 = vld [vmem:[%s3405_s17 + $0x30] sm:$0xff]  ;;  %s3968_s17 = sld [smem:[#allocation6_spill]] }
 0x3ed   :  { %v3250_v2 = vpop.eup %3249 }
 0x3ee   :  { %v551_v3 = vmul.f32 %v3250_v2, %v3248_v57 }
 0x3f0   :  { %v553_v7 = vpack.c.bf16 %v551_v3, %v551_v3 }
 0x3f2   :  { %2743 = vmatmul.msk.bf16.vlgmr.msrb.gmra.mxu0 %vm273_vm1, %v553_v7 }
 0x3f3   :  { %784 = vmatpush.bf16.xpose.msrb.mxu0 %v775_v18 }
 0x402   :  { %2761 = vmatmul.msk.bf16.vlgmr.msra.gmra.mxu0 %vm179_vm0, %v3589_v6 }
 0x403   :  { %905 = vmatpush.bf16.msra.mxu0 %v3109_v62 }
 0x407   :  { %906 = vmatpush.bf16.msra.mxu0 %v3108_v0 }
 0x46f   :  { %v570_v19 = vpop.f32.mrf.mxu0 }
 0x470   :  { %v593_v20 = vpack.c.bf16 %v589_v59, %v570_v19  ;;  %v3204_v19 = vld [vmem:[%s3400_s13 + $0x3] ss:$0 sm:$0xff]  ;;  %s3967_s13 = sld [smem:[#allocation12_spill]] }
 0x472   :  { %2746 = vmatmul.msk.bf16.vlgmr.msrb.gmra.mxu2 %vm273_vm1, %v593_v20  ;;  %v3205_v20 = vld [vmem:[%s3410_s21 + $0x3] ss:$0 sm:$0xff]  ;;  %s3969_s21 = sld [smem:[#allocation7_spill]] }
 0x477   :  { %v572_v21 = vpop.f32.mrf.mxu0 }
 0x47f   :  { %v667_v23 = vpop.f32.mrf.mxu0 }
 0x480   :  { %v668_v24 = vadd.f32 %v3202_v22, %v667_v23 }
 0x482   :  { %v672_v25 = vmul.f32 0.35355338, %v668_v24  ;;  %2789 = vmatmul.msk.bf16.vlgmr.msra.gmra.mxu2 %vm179_vm0, %v3589_v6 }
 0x484   :  { %v746_v26 = vpack.c.bf16 %v672_v25, %v672_v25 }
 0x486   :  { %2790 = vmatmul.msk.bf16.vlgmr.msra.gmra.mxu3 %vm273_vm1, %v746_v26 }
 0x487   :  { %v669_v27 = vpop.f32.mrf.mxu0 }
 0x488   :  { %v670_v28 = vadd.f32 %v3202_v22, %v669_v27 }
 0x48a   :  { %v673_v29 = vmul.f32 0.35355338, %v670_v28 }
 0x48c   :  { %v747_v30 = vpack.c.bf16 %v673_v29, %v673_v29 }
 0x48e   :  { %2791 = vmatmul.msk.bf16.vlgmr.msrb.gmra.mxu0 %vm273_vm1, %v747_v30 }
 0x49e   :  { %2809 = vmatmul.msk.bf16.vlgmr.msra.gmra.mxu0 %vm179_vm0, %v3589_v6 }
 0x4f5   :  { %v3671_v41 = vpop.f32.mrf.mxu2 }
 0x4fd   :  { %v3673_v42 = vpop.f32.mrf.mxu2 }
 0x505   :  { %v741_v46 = vpop.f32.mrf.mxu2 }
 0x506   :  { %v742_v48 = vadd.f32 %v3203_v43, %v741_v46 }
 0x508   :  { %v750_v51 = vpack.c.bf16 %v742_v48, %v742_v48 }
 0x509   :  { %v767_v35 = vpop.f32.mrf.mxu3 }
 0x50a   :  { %v790_v36 = vsel %vm273_vm1, %v767_v35, -inf  ;;  %v818_v53 = vsel %vm339_vm2, %v750_v51, 0 }
 0x50b   :  { %v786_v37 = vpop.f32.mrf.mxu0  ;;  %791 = vmax.xlane.f32.xlu2 %v790_v36  ;;  %827 = vmatpush.bf16.msrb.mxu1 %v818_v53 }
 0x50c   :  { %v793_v38 = vsel %vm273_vm1, %v786_v37, -inf }
 0x50d   :  { %794 = vmax.xlane.f32.xlu0 %v793_v38  ;;  %v743_v58 = vpop.f32.mrf.mxu2 }
 0x50e   :  { %v744_v59 = vadd.f32 %v3203_v43, %v743_v58  ;;  %v3112_v43 = vld [vmem:[%s3415_s25 + $0x30] sm:$0xff] }
 0x50f   :  { %943 = vmatpush.bf16.msra.mxu1 %v3111_v63 }
 0x510   :  { %v751_v60 = vpack.c.bf16 %v744_v59, %v744_v59 }
 0x511   :  { %v769_v39 = vpop.f32.mrf.mxu3 }
 0x512   :  { %v837_v61 = vsel %vm339_vm2, %v751_v60, 0 }
 0x513   :  { %v788_v40 = vpop.f32.mrf.mxu0  ;;  %846 = vmatpush.bf16.msrb.mxu2 %v837_v61  ;;  %944 = vmatpush.bf16.msra.mxu1 %v3110_v1 }
 0x514   :  { %v3113_v40 = vld [vmem:[%s3415_s25 + $0x38] sm:$0xff]  ;;  %s3970_s25 = sld [smem:[#allocation13_spill]] }
 0x517   :  { %979 = vmatpush.bf16.msra.mxu2 %v3113_v40 }
 0x51b   :  { %v908_v21 = vpop.f32.mrf.mxu0  ;;  %980 = vmatpush.bf16.msra.mxu2 %v3112_v43 }
 0x51c   :  { %v909_v24 = vadd.f32 %v3204_v19, %v908_v21 }
 0x51e   :  { %v913_v27 = vmul.f32 0.35355338, %v909_v24  ;;  %v3207_v24 = vld [vmem:[%s3430_s8] ss:$0 sm:$0xff]  ;;  %s3973_s8 = sld [smem:[#allocation14_spill]] }
 0x520   :  { %v987_v31 = vpack.c.bf16 %v913_v27, %v913_v27 }
 0x523   :  { %v910_v29 = vpop.f32.mrf.mxu0 }
 0x57e   :  { %v792_v44 = vpop.xlane.xlu2 %791 }
 0x57f   :  { %v796_v45 = vsub.f32 %v767_v35, %v792_v44  ;;  %v911_v35 = vadd.f32 %v3204_v19, %v910_v29  ;;  %v632_v44 = vadd.f32 %v3663_v33, %v3671_v41 }
 0x580   :  { %v795_v47 = vpop.xlane.xlu0 %794 }
 0x581   :  { %v798_v49 = vmul.f32 1.442695, %v796_v45  ;;  %v797_v50 = vsub.f32 %v786_v37, %v795_v47  ;;  %v914_v38 = vmul.f32 0.35355338, %v911_v35 }
 0x583   :  { %3251 = vpow2.f32 %v798_v49  ;;  %v800_v52 = vmul.f32 1.442695, %v797_v50  ;;  %v988_v39 = vpack.c.bf16 %v914_v38, %v914_v38 }
 0x585   :  { %3253 = vpow2.f32 %v800_v52 }
 0x589   :  { %v3252_v54 = vpop.eup %3251 }
 0x58a   :  { %v802_v55 = vsel %vm273_vm1, %v3252_v54, 0.0 }
 0x58b   :  { %v3254_v56 = vpop.eup %3253  ;;  %803 = vadd.xlane.f32.xlu1 %v802_v55 }
 0x58c   :  { %v805_v57 = vsel %vm273_vm1, %v3254_v56, 0.0 }
 0x58d   :  { %806 = vadd.xlane.f32.xlu2 %v805_v57 }
 0x5fe   :  { %v804_v2 = vpop.xlane.xlu1 %803 }
 0x5ff   :  { %3255 = vrcp.f32 %v804_v2 }
 0x600   :  { %v807_v3 = vpop.xlane.xlu2 %806 }
 0x601   :  { %3257 = vrcp.f32 %v807_v3 }
 0x605   :  { %v3256_v7 = vpop.eup %3255 }
 0x606   :  { %v810_v8 = vmul.f32 %v3256_v7, %v3252_v54  ;;  %v3206_v54 = vld [vmem:[%s3420_s29 + $0x3] ss:$0 sm:$0xff]  ;;  %s3971_s29 = sld [smem:[#allocation11_spill]] }
 0x607   :  { %v3258_v9 = vpop.eup %3257 }
 0x608   :  { %v812_v10 = vpack.c.bf16 %v810_v8, %v810_v8  ;;  %v811_v11 = vmul.f32 %v3258_v9, %v3254_v56 }
 0x60a   :  { %v813_v12 = vpack.c.bf16 %v811_v11, %v811_v11  ;;  %2792 = vmatmul.msk.bf16.vlgmr.msrb.gmra.mxu1 %vm273_vm1, %v812_v10 }
 0x60c   :  { %2793 = vmatmul.msk.bf16.vlgmr.msrb.gmra.mxu2 %vm273_vm1, %v813_v12 }
 0x61a   :  { %2823 = vmatmul.msk.bf16.vlgmr.msra.gmra.mxu1 %vm179_vm0, %v3589_v6 }
 0x61c   :  { %2837 = vmatmul.msk.bf16.vlgmr.msra.gmra.mxu2 %vm179_vm0, %v3589_v6 }
 0x687   :  { %v829_v15 = vpop.f32.mrf.mxu1 }
 0x68f   :  { %v831_v16 = vpop.f32.mrf.mxu1  ;;  %v848_v17 = vpop.f32.mrf.mxu2 }
 0x690   :  { %v852_v18 = vpack.c.bf16 %v848_v17, %v829_v15  ;;  %v2842_v17 = vld [vmem:[%s3425_s3 + $0xc] sm:$0xf]  ;;  %s3972_s3 = sld [smem:[#allocation9_spill]] }
 0x692   :  { %2795 = vmatmul.msk.bf16.vlgmr.msrb.gmra.mxu3 %vm273_vm1, %v852_v18  ;;  %v1100_v18 = vsel %vm339_vm2, %v2842_v17, 0 }
 0x697   :  { %v850_v22 = vpop.f32.mrf.mxu2  ;;  %v946_v23 = vpop.f32.mrf.mxu1 }
 0x698   :  { %v947_v25 = vadd.f32 %v3205_v20, %v946_v23 }
 0x69a   :  { %v989_v26 = vpack.c.bf16 %v947_v25, %v947_v25 }
 0x69c   :  { %v997_v28 = vsel %vm273_vm1, %v989_v26, 0 }
 0x69d   :  { %1006 = vmatpush.bf16.xpose.msra.mxu3 %v997_v28  ;;  %v634_v28 = vadd.f32 %v3667_v34, %v3673_v42 }
 0x69f   :  { %v948_v30 = vpop.f32.mrf.mxu1  ;;  %v982_v41 = vpop.f32.mrf.mxu2 }
 0x6a0   :  { %v949_v32 = vadd.f32 %v3205_v20, %v948_v30  ;;  %v983_v57 = vadd.f32 %v3206_v54, %v982_v41  ;;  %v3114_v41 = vld [vmem:[%s3445_s24] sm:$0xff] }
 0x6a2   :  { %v990_v36 = vpack.c.bf16 %v949_v32, %v949_v32  ;;  %v991_v6 = vpack.c.bf16 %v983_v57, %v983_v57 }
 0x6a4   :  { %v1016_v37 = vsel %vm273_vm1, %v990_v36, 0  ;;  %2838 = vmatmul.msk.bf16.vlgmr.msra.gmra.mxu3 %vm273_vm1, %v987_v31  ;;  %v1059_v61 = vsel %vm339_vm2, %v991_v6, 0 }
 0x6a5   :  { %1025 = vmatpush.bf16.xpose.msrb.mxu0 %v1016_v37  ;;  %1068 = vmatpush.bf16.msrb.mxu1 %v1059_v61 }
 0x6a6   :  { %1109 = vmatpush.bf16.msrb.mxu3 %v1100_v18 }
 0x6a7   :  { %v984_v62 = vpop.f32.mrf.mxu2 }
 0x6a8   :  { %v985_v63 = vadd.f32 %v3206_v54, %v984_v62  ;;  %v3115_v54 = vld [vmem:[%s3445_s24 + $0x8] sm:$0xff]  ;;  %s3976_s24 = sld [smem:[#allocation20_spill]] }
 0x6aa   :  { %v992_v2 = vpack.c.bf16 %v985_v63, %v985_v63 }
 0x6ac   :  { %2839 = vmatmul.msk.bf16.vlgmr.msrb.gmra.mxu0 %vm273_vm1, %v988_v39  ;;  %v1078_v8 = vsel %vm339_vm2, %v992_v2, 0  ;;  %v3378_v39 = vmov 32.0  }
 0x6ad   :  { %1087 = vmatpush.bf16.msrb.mxu2 %v1078_v8  ;;  %1230 = vmatpush.bf16.msra.mxu0 %v3115_v54  ;;  %v3123_v54 = vld [vmem:[%s3966_s9 + $0x8] sm:$0xff] }
 0x6ae   :  { %1408 = vmatpush.bf16.msra.mxu3 %v3123_v54  ;;  %v3128_v54 = vld [vmem:[%s3966_s9 + $0x10] sm:$0xff] }
 0x6b1   :  { %1231 = vmatpush.bf16.msra.mxu0 %v3114_v41 }
 0x715   :  { %v870_v45 = vpop.f32.mrf.mxu3 }
 0x716   :  { %v875_v46 = vadd.f32 %v870_v45, %v632_v44 }
 0x71d   :  { %v872_v47 = vpop.f32.mrf.mxu3 }
 0x71e   :  { %v876_v30 = vadd.f32 %v872_v47, %v634_v28 }
 0x727   :  { %v1008_v48 = vpop.f32.mrf.mxu3 }
 0x728   :  { %v1031_v49 = vsel %vm273_vm1, %v1008_v48, -inf }
 0x729   :  { %v1027_v50 = vpop.f32.mrf.mxu0  ;;  %1032 = vmax.xlane.f32.xlu1 %v1031_v49 }
 0x72a   :  { %v1034_v51 = vsel %vm273_vm1, %v1027_v50, -inf }
 0x72b   :  { %1035 = vmax.xlane.f32.xlu0 %v1034_v51 }
 0x72f   :  { %v1010_v52 = vpop.f32.mrf.mxu3 }
 0x731   :  { %v1029_v53 = vpop.f32.mrf.mxu0 }
 0x79c   :  { %v1033_v55 = vpop.xlane.xlu1 %1032 }
 0x79d   :  { %v1037_v33 = vsub.f32 %v1008_v48, %v1033_v55 }
 0x79e   :  { %v1036_v56 = vpop.xlane.xlu0 %1035 }
 0x79f   :  { %v1039_v58 = vmul.f32 1.442695, %v1037_v33  ;;  %v1038_v59 = vsub.f32 %v1027_v50, %v1036_v56 }
 0x7a1   :  { %3259 = vpow2.f32 %v1039_v58  ;;  %v1041_v60 = vmul.f32 1.442695, %v1038_v59 }
 0x7a3   :  { %3261 = vpow2.f32 %v1041_v60 }
 0x7a7   :  { %v3260_v0 = vpop.eup %3259 }
 0x7a8   :  { %v1043_v1 = vsel %vm273_vm1, %v3260_v0, 0.0 }
 0x7a9   :  { %v3262_v3 = vpop.eup %3261  ;;  %1044 = vadd.xlane.f32.xlu0 %v1043_v1 }
 0x7aa   :  { %v1046_v7 = vsel %vm273_vm1, %v3262_v3, 0.0 }
 0x7ab   :  { %1047 = vadd.xlane.f32.xlu2 %v1046_v7 }
 0x81c   :  { %v1045_v9 = vpop.xlane.xlu0 %1044 }
 0x81d   :  { %3263 = vrcp.f32 %v1045_v9 }
 0x81e   :  { %v1048_v10 = vpop.xlane.xlu2 %1047 }
 0x81f   :  { %3265 = vrcp.f32 %v1048_v10  ;;  %v3208_v10 = vld [vmem:[%s3435_s14] ss:$0 sm:$0xff]  ;;  %s3974_s14 = sld [smem:[#allocation15_spill]] }
 0x820   :  { %3267 = vrcp.f32 %v3378_v39 }
 0x823   :  { %v3264_v11 = vpop.eup %3263 }
 0x824   :  { %v1051_v12 = vmul.f32 %v3264_v11, %v3260_v0 }
 0x825   :  { %v3266_v13 = vpop.eup %3265 }
 0x826   :  { %v1053_v14 = vpack.c.bf16 %v1051_v12, %v1051_v12  ;;  %v1052_v15 = vmul.f32 %v3266_v13, %v3262_v3  ;;  %v3268_v40 = vpop.eup %3267 }
 0x827   :  { %v1135_v43 = vmul.f32 32.0, %v3268_v40  ;;  %vm1139_vm3 = vweird.f32 %v3268_v40 }
 0x828   :  { %v1054_v16 = vpack.c.bf16 %v1052_v15, %v1052_v15  ;;  %2840 = vmatmul.msk.bf16.vlgmr.msrb.gmra.mxu1 %vm273_vm1, %v1053_v14  ;;  %v3209_v14 = vld [vmem:[%s3440_s19] ss:$0 sm:$0xff]  ;;  %s3975_s19 = sld [smem:[#allocation18_spill]] }
 0x829   :  { %v1136_v44 = vsub.f32 1.0, %v1135_v43 }
 0x82a   :  { %2841 = vmatmul.msk.bf16.vlgmr.msrb.gmra.mxu2 %vm273_vm1, %v1054_v16 }
 0x82b   :  { %v1137_v34 = vmul.f32 %v3268_v40, %v1136_v44 }
 0x8a5   :  { %v1070_v19 = vpop.f32.mrf.mxu1 }
 0x8ad   :  { %v1072_v20 = vpop.f32.mrf.mxu1  ;;  %v1089_v21 = vpop.f32.mrf.mxu2 }
 0x8ae   :  { %v1093_v22 = vpack.c.bf16 %v1089_v21, %v1070_v19  ;;  %v3119_v21 = vld [vmem:[%s3455_s6 + $0x18] sm:$0xff] }
 0x8af   :  { %1276 = vmatpush.bf16.msra.mxu1 %v3119_v21 }
 0x8b0   :  { %2843 = vmatmul.msk.bf16.vlgmr.msrb.gmra.mxu3 %vm273_vm1, %v1093_v22  ;;  %v3118_v22 = vld [vmem:[%s3455_s6 + $0x10] sm:$0xff] }
 0x8b3   :  { %1277 = vmatpush.bf16.msra.mxu1 %v3118_v22 }
 0x8b5   :  { %v1091_v23 = vpop.f32.mrf.mxu2 }
 0x8b6   :  { %v3117_v23 = vld [vmem:[%s3455_s6 + $0x8] sm:$0xff] }
 0x8b7   :  { %1278 = vmatpush.bf16.msra.mxu1 %v3117_v23 }
 0x933   :  { %v1111_v25 = vpop.f32.mrf.mxu3 }
 0x934   :  { %v1116_v26 = vadd.f32 %v1111_v25, %v875_v46 }
 0x936   :  { %v1122_v27 = vadd.f32 %v3207_v24, %v1116_v26  ;;  %v3210_v26 = vld [vmem:[%s3450_s30] ss:$0 sm:$0xff]  ;;  %s3977_s30 = sld [smem:[#allocation16_spill]] }
 0x938   :  { %v1124_v29 = vadd.f32 %v1122_v27, %v3582_v4  ;;  %v1138_v4 = vadd.f32 %v3268_v40, %v1137_v34 }
 0x93a   :  { %v1128_v31 = vsel %vm179_vm0, %v1124_v29, 0.0  ;;  %v3724_v42 = vsel %vm1139_vm3, %v3268_v40, %v1138_v4 }
 0x93b   :  { %1129 = vadd.xlane.f32.xlu1 %v1128_v31  ;;  %v1113_v32 = vpop.f32.mrf.mxu3 }
 0x93c   :  { %v1117_v35 = vadd.f32 %v1113_v32, %v876_v30 }
 0x93e   :  { %v1123_v36 = vadd.f32 %v3207_v24, %v1117_v35  ;;  %v3116_v24 = vld [vmem:[%s3455_s6] sm:$0xff]  ;;  %s3978_s6 = sld [smem:[#allocation17_spill]] }
 0x93f   :  { %1279 = vmatpush.bf16.msra.mxu1 %v3116_v24  ;;  %v3211_v35 = vld [vmem:[%s3964_s0] ss:$0 sm:$0xff] }
 0x940   :  { %v1125_v37 = vadd.f32 %v1123_v36, %v3585_v5  ;;  %v3214_v24 = vld [vmem:[%s3970_s25] ss:$0 sm:$0xff] }
 0x942   :  { %v1131_v38 = vsel %vm179_vm0, %v1125_v37, 0.0 }
 0x943   :  { %1132 = vadd.xlane.f32.xlu2 %v1131_v38 }
 0x9ae   :  { %v1130_v45 = vpop.xlane.xlu1 %1129 }
 0x9af   :  { %v1141_v46 = vmul.f32 %v3724_v42, %v1130_v45 }
 0x9b1   :  { %v1143_v47 = vsub.f32 %v1124_v29, %v1141_v46 }
 0x9b3   :  { %v1145_v5 = vmul.f32 %v1143_v47, %v1143_v47 }
 0x9b5   :  { %v1147_v48 = vsel %vm179_vm0, %v1145_v5, 0.0 }
 0x9b6   :  { %1148 = vadd.xlane.f32.xlu0 %v1147_v48  ;;  %v1133_v49 = vpop.xlane.xlu2 %1132 }
 0x9b7   :  { %v1142_v50 = vmul.f32 %v3724_v42, %v1133_v49 }
 0x9b9   :  { %v1144_v51 = vsub.f32 %v1125_v37, %v1142_v50 }
 0x9bb   :  { %v1146_v52 = vmul.f32 %v1144_v51, %v1144_v51 }
 0x9bd   :  { %v1150_v53 = vsel %vm179_vm0, %v1146_v52, 0.0 }
 0x9be   :  { %1151 = vadd.xlane.f32.xlu1 %v1150_v53  ;;  %v3121_v53 = vld [vmem:[%s3965_s5 + $0x8] sm:$0xff] }
 0x9bf   :  { %1372 = vmatpush.bf16.msra.mxu2 %v3121_v53 }
 0xa29   :  { %v1149_v55 = vpop.xlane.xlu0 %1148 }
 0xa2a   :  { %v1153_v33 = vmul.f32 %v1149_v55, %v3724_v42  ;;  %v3125_v55 = vld [vmem:[%s3967_s13 + $0x8] sm:$0xff] }
 0xa2b   :  { %1442 = vmatpush.bf16.msrb.mxu0 %v3125_v55 }
 0xa2c   :  { %v1155_v56 = vadd.f32 1e-05, %v1153_v33 }
 0xa2e   :  { %3269 = vrsqrt.f32 %v1155_v56  ;;  %vm1163_vm5 = vweird.f32 %v1155_v56 }
 0xa31   :  { %v1152_v57 = vpop.xlane.xlu1 %1151 }
 0xa32   :  { %v1154_v58 = vmul.f32 %v1152_v57, %v3724_v42  ;;  %v3122_v57 = vld [vmem:[%s3966_s9] sm:$0xff] }
 0xa33   :  { %1409 = vmatpush.bf16.msra.mxu3 %v3122_v57  ;;  %v3217_v57 = vld [vmem:[%s3972_s3 + $0x1] ss:$0 sm:$0xff] }
 0xa34   :  { %v3270_v59 = vpop.eup %3269  ;;  %v1156_v6 = vadd.f32 1e-05, %v1154_v58  ;;  %v3124_v58 = vld [vmem:[%s3967_s13] sm:$0xff] }
 0xa35   :  { %v1158_v60 = vmul.f32 %v3270_v59, %v1155_v56  ;;  %vm1164_vm4 = vweird.f32 %v3270_v59  ;;  %v3120_v56 = vld [vmem:[%s3965_s5] sm:$0xff]  ;;  %1443 = vmatpush.bf16.msrb.mxu0 %v3124_v58 }
 0xa36   :  { %3271 = vrsqrt.f32 %v1156_v6  ;;  %vm1165_vm6 = vmor %vm1163_vm5, %vm1164_vm4  ;;  %vm1173_vm8 = vweird.f32 %v1156_v6  ;;  %1373 = vmatpush.bf16.msra.mxu2 %v3120_v56 }
 0xa37   :  { %v1159_v61 = vmul.f32 %v3270_v59, %v1158_v60 }
 0xa39   :  { %v1160_v62 = vmul.f32 0.5, %v1159_v61 }
 0xa3b   :  { %v1161_v63 = vsub.f32 1.5, %v1160_v62 }
 0xa3c   :  { %v3272_v0 = vpop.eup %3271 }
 0xa3d   :  { %v1162_v1 = vmul.f32 %v3270_v59, %v1161_v63  ;;  %v1168_v2 = vmul.f32 %v3272_v0, %v1156_v6  ;;  %vm1174_vm7 = vweird.f32 %v3272_v0 }
 0xa3e   :  { %vm1175_vm9 = vmor %vm1173_vm8, %vm1174_vm7  ;;  %vm2389_vm8 = vcmask 1041409  }
 0xa3f   :  { %v1169_v3 = vmul.f32 %v3272_v0, %v1168_v2  ;;  %v1166_v7 = vsel %vm1165_vm6, %v3270_v59, %v1162_v1 }
 0xa40   :  { %v1177_v11 = vmul.f32 %v1166_v7, %v1143_v47 }
 0xa41   :  { %v1170_v8 = vmul.f32 0.5, %v1169_v3 }
 0xa42   :  { %v1182_v15 = vmul.f32 %v3208_v10, %v1177_v11 }
 0xa43   :  { %v1171_v9 = vsub.f32 1.5, %v1170_v8 }
 0xa44   :  { %v1187_v18 = vadd.f32 %v3209_v14, %v1182_v15 }
 0xa45   :  { %v1172_v12 = vmul.f32 %v3272_v0, %v1171_v9 }
 0xa47   :  { %v1176_v13 = vsel %vm1175_vm9, %v3272_v0, %v1172_v12  ;;  %vm2476_vm9 = vcmask 254976  }
 0xa48   :  { %v1178_v16 = vmul.f32 %v1176_v13, %v1144_v51  ;;  %v3212_v13 = vld [vmem:[%s3968_s17] ss:$0 sm:$0xff] }
 0xa4a   :  { %v1183_v17 = vmul.f32 %v3208_v10, %v1178_v16 }
 0xa4c   :  { %v1188_v19 = vadd.f32 %v3209_v14, %v1183_v17  ;;  %v3213_v17 = vld [vmem:[%s3969_s21] ss:$0 sm:$0xff] }
 0xa4e   :  { %v1205_v20 = vpack.c.bf16 %v1188_v19, %v1187_v18 }
 0xa50   :  { %2852 = vmatmul.msk.bf16.vlgmr.msra.gmra.mxu0 %vm179_vm0, %v1205_v20 }
 0xacd   :  { %v1233_v25 = vpop.f32.mrf.mxu0 }
 0xace   :  { %v1234_v27 = vadd.f32 %v3210_v26, %v1233_v25 }
 0xad0   :  { %v1238_v30 = vmax.f32 %v1234_v27, 0.0  ;;  %v3216_v27 = vld [vmem:[%s3971_s29] ss:$0 sm:$0xff] }
 0xad5   :  { %v1235_v28 = vpop.f32.mrf.mxu0 }
 0xad6   :  { %v1236_v29 = vadd.f32 %v3210_v26, %v1235_v28 }
 0xad8   :  { %v1239_v31 = vmax.f32 %v1236_v29, 0.0  ;;  %v3215_v29 = vld [vmem:[%s3972_s3] ss:$0 sm:$0xff] }
 0xada   :  { %v1240_v32 = vpack.c.bf16 %v1239_v31, %v1238_v30 }
 0xadc   :  { %2869 = vmatmul.msk.bf16.vlgmr.msra.gmra.mxu1 %vm1268_vm10, %v1240_v32 }
 0xb59   :  { %v1281_v36 = vpop.f32.mrf.mxu1 }
 0xb5a   :  { %v1282_v37 = vadd.f32 %v3211_v35, %v1281_v36 }
 0xb5c   :  { %v1286_v38 = vadd.f32 %v1282_v37, %v1187_v18 }
 0xb5e   :  { %v1288_v39 = vsel %vm179_vm0, %v1286_v38, 0.0 }
 0xb5f   :  { %1289 = vadd.xlane.f32.xlu2 %v1288_v39  ;;  %v3127_v39 = vld [vmem:[%s3965_s5 + $0x18] sm:$0xff] }
 0xb61   :  { %v1283_v40 = vpop.f32.mrf.mxu1 }
 0xb62   :  { %v1284_v43 = vadd.f32 %v3211_v35, %v1283_v40 }
 0xb64   :  { %v1287_v44 = vadd.f32 %v1284_v43, %v1188_v19 }
 0xb66   :  { %v1291_v34 = vsel %vm179_vm0, %v1287_v44, 0.0 }
 0xb67   :  { %1292 = vadd.xlane.f32.xlu0 %v1291_v34 }
 0xbd2   :  { %v1290_v4 = vpop.xlane.xlu2 %1289 }
 0xbd3   :  { %v1294_v45 = vmul.f32 %v1290_v4, %v3724_v42  ;;  %v3126_v4 = vld [vmem:[%s3965_s5 + $0x10] sm:$0xff] }
 0xbd5   :  { %v1296_v46 = vsub.f32 %v1286_v38, %v1294_v45 }
 0xbd7   :  { %v1298_v47 = vmul.f32 %v1296_v46, %v1296_v46 }
 0xbd9   :  { %v1300_v5 = vsel %vm179_vm0, %v1298_v47, 0.0 }
 0xbda   :  { %v1293_v48 = vpop.xlane.xlu0 %1292  ;;  %1301 = vadd.xlane.f32.xlu1 %v1300_v5 }
 0xbdb   :  { %v1295_v49 = vmul.f32 %v1293_v48, %v3724_v42 }
 0xbdd   :  { %v1297_v50 = vsub.f32 %v1287_v44, %v1295_v49 }
 0xbdf   :  { %v1299_v51 = vmul.f32 %v1297_v50, %v1297_v50 }
 0xbe1   :  { %v1303_v52 = vsel %vm179_vm0, %v1299_v51, 0.0  ;;  %v3129_v51 = vld [vmem:[%s3966_s9 + $0x18] sm:$0xff] }
 0xbe2   :  { %1304 = vadd.xlane.f32.xlu2 %v1303_v52 }
 0xc4d   :  { %v1302_v33 = vpop.xlane.xlu1 %1301 }
 0xc4e   :  { %v1306_v41 = vmul.f32 %v1302_v33, %v3724_v42 }
 0xc50   :  { %v1308_v59 = vadd.f32 1e-05, %v1306_v41 }
 0xc52   :  { %3273 = vrsqrt.f32 %v1308_v59  ;;  %vm1316_vm12 = vweird.f32 %v1308_v59 }
 0xc55   :  { %v1305_v6 = vpop.xlane.xlu2 %1304 }
 0xc56   :  { %v1307_v60 = vmul.f32 %v1305_v6, %v3724_v42 }
 0xc58   :  { %v3274_v61 = vpop.eup %3273  ;;  %v1309_v62 = vadd.f32 1e-05, %v1307_v60 }
 0xc59   :  { %v1311_v63 = vmul.f32 %v3274_v61, %v1308_v59  ;;  %vm1317_vm11 = vweird.f32 %v3274_v61 }
 0xc5a   :  { %3275 = vrsqrt.f32 %v1309_v62  ;;  %vm1318_vm13 = vmor %vm1316_vm12, %vm1317_vm11  ;;  %vm1326_vm15 = vweird.f32 %v1309_v62 }
 0xc5b   :  { %v1312_v0 = vmul.f32 %v3274_v61, %v1311_v63 }
 0xc5d   :  { %v1313_v1 = vmul.f32 0.5, %v1312_v0 }
 0xc5f   :  { %v1314_v2 = vsub.f32 1.5, %v1313_v1 }
 0xc60   :  { %v3276_v3 = vpop.eup %3275 }
 0xc61   :  { %v1315_v7 = vmul.f32 %v3274_v61, %v1314_v2  ;;  %v1321_v8 = vmul.f32 %v3276_v3, %v1309_v62  ;;  %vm1327_vm14 = vweird.f32 %v3276_v3  ;;  %v3218_v62 = vld [vmem:[%s3971_s29 + $0x1] ss:$0 sm:$0xff] }
 0xc62   :  { %vm1328_vm3 = vmor %vm1326_vm15, %vm1327_vm14 }
 0xc63   :  { %v1322_v9 = vmul.f32 %v3276_v3, %v1321_v8  ;;  %v1319_v10 = vsel %vm1318_vm13, %v3274_v61, %v1315_v7 }
 0xc64   :  { %v1330_v14 = vmul.f32 %v1319_v10, %v1296_v46 }
 0xc65   :  { %v1323_v11 = vmul.f32 0.5, %v1322_v9 }
 0xc66   :  { %v1335_v18 = vmul.f32 %v3212_v13, %v1330_v14 }
 0xc67   :  { %v1324_v12 = vsub.f32 1.5, %v1323_v11 }
 0xc68   :  { %v3760_v21 = vadd.f32 %v3213_v17, %v1335_v18 }
 0xc69   :  { %v1325_v15 = vmul.f32 %v3276_v3, %v1324_v12 }
 0xc6b   :  { %v1329_v16 = vsel %vm1328_vm3, %v3276_v3, %v1325_v15 }
 0xc6c   :  { %v1331_v19 = vmul.f32 %v1329_v16, %v1297_v50 }
 0xc6e   :  { %v1336_v20 = vmul.f32 %v3212_v13, %v1331_v19 }
 0xc70   :  { %v3762_v22 = vadd.f32 %v3213_v17, %v1336_v20 }
 0xc72   :  { %v3766_v23 = vpack.c.bf16 %v3762_v22, %v3760_v21 }
 0xc74   :  { %2878 = vmatmul.msk.bf16.vlgmr.msra.gmra.mxu2 %vm179_vm0, %v3766_v23  ;;  %2887 = vmatmul.msk.bf16.vlgmr.msra.gmra.mxu3 %vm179_vm0, %v3766_v23 }
 0xc75   :  { %2896 = vmatmul.msk.bf16.vlgmr.msrb.gmra.mxu0 %vm179_vm0, %v3766_v23 }
 0xcf2   :  { %v1445_v25 = vpop.f32.mrf.mxu0 }
 0xcf3   :  { %v1446_v26 = vadd.f32 %v3214_v24, %v1445_v25 }
 0xcf5   :  { %v1454_v28 = vpack.c.bf16 %v1446_v26, %v1446_v26 }
 0xcf7   :  { %v1522_v30 = vsel %vm339_vm2, %v1454_v28, 0  ;;  %v1375_v31 = vpop.f32.mrf.mxu2  ;;  %v1411_v32 = vpop.f32.mrf.mxu3 }
 0xcf8   :  { %v1412_v35 = vadd.f32 %v3216_v27, %v1411_v32  ;;  %1531 = vmatpush.bf16.msrb.mxu3 %v1522_v30  ;;  %v1376_v36 = vadd.f32 %v3215_v29, %v1375_v31  ;;  %v3131_v30 = vld [vmem:[%s3967_s13 + $0x18] sm:$0xff]  ;;  %v3130_v31 = vld [vmem:[%s3967_s13 + $0x10] sm:$0xff] }
 0xcfa   :  { %v1452_v37 = vpack.c.bf16 %v1412_v35, %v1412_v35  ;;  %v1447_v38 = vpop.f32.mrf.mxu0  ;;  %v1380_v34 = vmul.f32 0.35355338, %v1376_v36 }
 0xcfb   :  { %v1448_v40 = vadd.f32 %v3214_v24, %v1447_v38 }
 0xcfc   :  { %v1460_v43 = vsel %vm273_vm1, %v1452_v37, 0  ;;  %v1450_v48 = vpack.c.bf16 %v1380_v34, %v1380_v34  ;;  %1660 = vmatpush.bf16.msra.mxu3 %v3131_v30 }
 0xcfd   :  { %v1455_v44 = vpack.c.bf16 %v1448_v40, %v1448_v40  ;;  %1469 = vmatpush.bf16.xpose.msrb.mxu1 %v1460_v43 }
 0xcff   :  { %v1541_v45 = vsel %vm339_vm2, %v1455_v44, 0  ;;  %v1377_v46 = vpop.f32.mrf.mxu2  ;;  %v1413_v47 = vpop.f32.mrf.mxu3 }
 0xd00   :  { %v1414_v5 = vadd.f32 %v3216_v27, %v1413_v47  ;;  %1550 = vmatpush.bf16.msra.mxu0 %v1541_v45  ;;  %v1378_v49 = vadd.f32 %v3215_v29, %v1377_v46  ;;  %1661 = vmatpush.bf16.msra.mxu3 %v3130_v31 }
 0xd02   :  { %v1453_v50 = vpack.c.bf16 %v1414_v5, %v1414_v5  ;;  %v1381_v53 = vmul.f32 0.35355338, %v1378_v49 }
 0xd04   :  { %v1479_v52 = vsel %vm273_vm1, %v1453_v50, 0  ;;  %2897 = vmatmul.msk.bf16.vlgmr.msrb.gmra.mxu1 %vm273_vm1, %v1450_v48  ;;  %v1451_v55 = vpack.c.bf16 %v1381_v53, %v1381_v53  ;;  %v1557_v48 = vld [vmem:[%s3973_s8] sm:$0xf] }
 0xd05   :  { %1586 = vmatpush.bf16.msra.mxu1 %v3127_v39  ;;  %1488 = vmatpush.bf16.xpose.msrb.mxu2 %v1479_v52  ;;  %v1801_v49 = vsel %vm339_vm2, %v1557_v48, 0 }
 0xd09   :  { %1587 = vmatpush.bf16.msra.mxu1 %v3126_v4 }
 0xd0c   :  { %2898 = vmatmul.msk.bf16.vlgmr.msrb.gmra.mxu2 %vm273_vm1, %v1451_v55 }
 0xd0d   :  { %1624 = vmatpush.bf16.msra.mxu2 %v3129_v51 }
 0xd11   :  { %1625 = vmatpush.bf16.msra.mxu2 %v3128_v54  ;;  %v3219_v54 = vld [vmem:[%s3970_s25 + $0x1] ss:$0 sm:$0xff] }
 0xd14   :  { %2914 = vmatmul.msk.bf16.vlgmr.msra.gmra.mxu1 %vm179_vm0, %v3766_v23 }
 0xd1c   :  { %2928 = vmatmul.msk.bf16.vlgmr.msra.gmra.mxu2 %vm179_vm0, %v3766_v23 }
 0xd81   :  { %v1471_v33 = vpop.f32.mrf.mxu1 }
 0xd82   :  { %v1494_v41 = vsel %vm273_vm1, %v1471_v33, -inf }
 0xd83   :  { %1495 = vmax.xlane.f32.xlu2 %v1494_v41 }
 0xd89   :  { %v1473_v56 = vpop.f32.mrf.mxu1 }
 0xd8f   :  { %v1490_v58 = vpop.f32.mrf.mxu2 }
 0xd90   :  { %v1497_v59 = vsel %vm273_vm1, %v1490_v58, -inf }
 0xd91   :  { %1498 = vmax.xlane.f32.xlu0 %v1497_v59  ;;  %v1589_v6 = vpop.f32.mrf.mxu1 }
 0xd92   :  { %v1590_v60 = vadd.f32 %v3217_v57, %v1589_v6 }
 0xd94   :  { %v1594_v44 = vmul.f32 0.35355338, %v1590_v60 }
 0xd96   :  { %v1668_v34 = vpack.c.bf16 %v1594_v44, %v1594_v44 }
 0xd97   :  { %v1492_v61 = vpop.f32.mrf.mxu2 }
 0xd99   :  { %v1591_v3 = vpop.f32.mrf.mxu1 }
 0xd9a   :  { %v1592_v9 = vadd.f32 %v3217_v57, %v1591_v3 }
 0xd9c   :  { %v1595_v12 = vmul.f32 0.35355338, %v1592_v9 }
 0xd9e   :  { %v1669_v13 = vpack.c.bf16 %v1595_v12, %v1595_v12 }
 0xd9f   :  { %v1627_v63 = vpop.f32.mrf.mxu2 }
 0xda0   :  { %v1628_v0 = vadd.f32 %v3218_v62, %v1627_v63 }
 0xda2   :  { %v1670_v1 = vpack.c.bf16 %v1628_v0, %v1628_v0  ;;  %v3134_v0 = vld [vmem:[%s3966_s9 + $0x20] sm:$0xff] }
 0xda4   :  { %v1678_v2 = vsel %vm273_vm1, %v1670_v1, 0 }
 0xda5   :  { %1687 = vmatpush.bf16.xpose.msrb.mxu0 %v1678_v2 }
 0xda7   :  { %v1629_v7 = vpop.f32.mrf.mxu2 }
 0xda8   :  { %v1630_v8 = vadd.f32 %v3218_v62, %v1629_v7  ;;  %v3135_v62 = vld [vmem:[%s3966_s9 + $0x28] sm:$0xff] }
 0xdaa   :  { %v1671_v10 = vpack.c.bf16 %v1630_v8, %v1630_v8 }
 0xdac   :  { %v1697_v11 = vsel %vm273_vm1, %v1671_v10, 0 }
 0xdad   :  { %1706 = vmatpush.bf16.xpose.msrb.mxu1 %v1697_v11 }
 0xdb4   :  { %2944 = vmatmul.msk.bf16.vlgmr.msrb.gmra.mxu1 %vm273_vm1, %v1669_v13 }
 0xdb5   :  { %1810 = vmatpush.bf16.msra.mxu1 %v1801_v49 }
 0xdf6   :  { %v1496_v14 = vpop.xlane.xlu2 %1495 }
 0xdf7   :  { %v1500_v15 = vsub.f32 %v1471_v33, %v1496_v14 }
 0xdf9   :  { %v1502_v16 = vmul.f32 1.442695, %v1500_v15 }
 0xdfb   :  { %3277 = vpow2.f32 %v1502_v16  ;;  %v3220_v16 = vld [vmem:[%s3971_s29 + $0x2] ss:$0 sm:$0xff] }
 0xe01   :  { %v3278_v17 = vpop.eup %3277 }
 0xe02   :  { %v1506_v18 = vsel %vm273_vm1, %v3278_v17, 0.0 }
 0xe03   :  { %1507 = vadd.xlane.f32.xlu0 %v1506_v18 }
 0xe04   :  { %v1499_v19 = vpop.xlane.xlu0 %1498 }
 0xe05   :  { %v1501_v20 = vsub.f32 %v1490_v58, %v1499_v19 }
 0xe07   :  { %v1504_v24 = vmul.f32 1.442695, %v1501_v20 }
 0xe09   :  { %3279 = vpow2.f32 %v1504_v24  ;;  %v3133_v24 = vld [vmem:[%s3965_s5 + $0x28] sm:$0xff] }
 0xe0f   :  { %v3280_v25 = vpop.eup %3279 }
 0xe10   :  { %v1509_v26 = vsel %vm273_vm1, %v3280_v25, 0.0 }
 0xe11   :  { %1510 = vadd.xlane.f32.xlu1 %v1509_v26 }
 0xe31   :  { %v1708_v27 = vpop.f32.mrf.mxu1 }
 0xe32   :  { %v1715_v28 = vsel %vm273_vm1, %v1708_v27, -inf }
 0xe33   :  { %1716 = vmax.xlane.f32.xlu1 %v1715_v28 }
 0xe39   :  { %v1710_v29 = vpop.f32.mrf.mxu1 }
 0xe76   :  { %v1508_v32 = vpop.xlane.xlu0 %1507 }
 0xe77   :  { %3281 = vrcp.f32 %v1508_v32 }
 0xe7d   :  { %v3282_v35 = vpop.eup %3281 }
 0xe7e   :  { %v1514_v36 = vmul.f32 %v3282_v35, %v3278_v17 }
 0xe80   :  { %v1516_v37 = vpack.c.bf16 %v1514_v36, %v1514_v36  ;;  %v2947_v36 = vld [vmem:[%s3973_s8 + $0x4] sm:$0xf] }
 0xe82   :  { %2899 = vmatmul.msk.bf16.vlgmr.msrb.gmra.mxu3 %vm273_vm1, %v1516_v37  ;;  %v1781_v37 = vsel %vm339_vm2, %v2947_v36, 0  ;;  %v2996_v36 = vld [vmem:[%s3973_s8 + $0x8] sm:$0xf] }
 0xe84   :  { %v1511_v38 = vpop.xlane.xlu1 %1510 }
 0xe85   :  { %3283 = vrcp.f32 %v1511_v38  ;;  %v3137_v38 = vld [vmem:[%s3967_s13 + $0x28] sm:$0xff] }
 0xe8b   :  { %v3284_v39 = vpop.eup %3283 }
 0xe8c   :  { %v1515_v40 = vmul.f32 %v3284_v39, %v3280_v25  ;;  %v3132_v25 = vld [vmem:[%s3965_s5 + $0x20] sm:$0xff] }
 0xe8d   :  { %v3136_v39 = vld [vmem:[%s3967_s13 + $0x20] sm:$0xff] }
 0xe8e   :  { %v1517_v43 = vpack.c.bf16 %v1515_v40, %v1515_v40  ;;  %v3139_v40 = vld [vmem:[%s3965_s5 + $0x38] sm:$0xff] }
 0xe90   :  { %2900 = vmatmul.msk.bf16.vlgmr.msra.gmra.mxu0 %vm273_vm1, %v1517_v43 }
 0xe91   :  { %1790 = vmatpush.bf16.msra.mxu0 %v1781_v37  ;;  %v2040_v37 = vsel %vm339_vm2, %v2996_v36, 0 }
 0xe92   :  { %2942 = vmatmul.msk.bf16.vlgmr.msra.gmra.mxu3 %vm179_vm0, %v3766_v23 }
 0xea0   :  { %2943 = vmatmul.msk.bf16.vlgmr.msrb.gmra.mxu0 %vm273_vm1, %v1668_v34  ;;  %v3138_v34 = vld [vmem:[%s3965_s5 + $0x30] sm:$0xff] }
 0xea1   :  { %1919 = vmatpush.bf16.msrb.mxu0 %v3137_v38 }
 0xea5   :  { %1920 = vmatpush.bf16.msrb.mxu0 %v3136_v39 }
 0xea6   :  { %v1717_v4 = vpop.xlane.xlu1 %1716 }
 0xea7   :  { %v1719_v45 = vsub.f32 %v1708_v27, %v1717_v4 }
 0xea9   :  { %v1722_v46 = vmul.f32 1.442695, %v1719_v45  ;;  %v3221_v45 = vld [vmem:[%s3972_s3 + $0x2] ss:$0 sm:$0xff] }
 0xeab   :  { %3285 = vpow2.f32 %v1722_v46 }
 0xeb1   :  { %v3286_v47 = vpop.eup %3285 }
 0xeb2   :  { %v1727_v5 = vsel %vm273_vm1, %v3286_v47, 0.0 }
 0xeb3   :  { %1728 = vadd.xlane.f32.xlu0 %v1727_v5 }
 0xf05   :  { %v1533_v50 = vpop.f32.mrf.mxu3 }
 0xf0d   :  { %v1535_v51 = vpop.f32.mrf.mxu3  ;;  %v1552_v52 = vpop.f32.mrf.mxu0 }
 0xf0e   :  { %v1556_v53 = vpack.c.bf16 %v1552_v52, %v1533_v50 }
 0xf10   :  { %2949 = vmatmul.msk.bf16.vlgmr.msra.gmra.mxu1 %vm273_vm1, %v1556_v53 }
 0xf15   :  { %v1554_v55 = vpop.f32.mrf.mxu0  ;;  %v1663_v33 = vpop.f32.mrf.mxu3 }
 0xf16   :  { %v1664_v41 = vadd.f32 %v3219_v54, %v1663_v33 }
 0xf18   :  { %v1672_v56 = vpack.c.bf16 %v1664_v41, %v1664_v41 }
 0xf1a   :  { %v1740_v57 = vsel %vm339_vm2, %v1672_v56, 0  ;;  %v3222_v56 = vld [vmem:[%s3970_s25 + $0x2] ss:$0 sm:$0xff] }
 0xf1b   :  { %1749 = vmatpush.bf16.msrb.mxu2 %v1740_v57 }
 0xf1d   :  { %v1665_v58 = vpop.f32.mrf.mxu3  ;;  %v1689_v59 = vpop.f32.mrf.mxu0 }
 0xf1e   :  { %v1666_v6 = vadd.f32 %v3219_v54, %v1665_v58  ;;  %v1712_v60 = vsel %vm273_vm1, %v1689_v59, -inf }
 0xf1f   :  { %1713 = vmax.xlane.f32.xlu2 %v1712_v60  ;;  %1845 = vmatpush.bf16.msra.mxu2 %v3133_v24  ;;  %v3143_v24 = vld [vmem:[%s3967_s13 + $0x38] sm:$0xff] }
 0xf20   :  { %v1673_v61 = vpack.c.bf16 %v1666_v6, %v1666_v6 }
 0xf22   :  { %v1759_v63 = vsel %vm339_vm2, %v1673_v61, 0 }
 0xf23   :  { %1768 = vmatpush.bf16.msrb.mxu3 %v1759_v63  ;;  %1846 = vmatpush.bf16.msra.mxu2 %v3132_v25  ;;  %v3142_v25 = vld [vmem:[%s3967_s13 + $0x30] sm:$0xff] }
 0xf25   :  { %v1691_v1 = vpop.f32.mrf.mxu0 }
 0xf26   :  { %v1729_v2 = vpop.xlane.xlu0 %1728 }
 0xf27   :  { %1883 = vmatpush.bf16.msra.mxu3 %v3135_v62  ;;  %3287 = vrcp.f32 %v1729_v2 }
 0xf2b   :  { %1884 = vmatpush.bf16.msra.mxu3 %v3134_v0 }
 0xf2d   :  { %v3288_v3 = vpop.eup %3287 }
 0xf2e   :  { %v1733_v7 = vmul.f32 %v3288_v3, %v3286_v47 }
 0xf30   :  { %v1735_v8 = vpack.c.bf16 %v1733_v7, %v1733_v7 }
 0xf32   :  { %2946 = vmatmul.msk.bf16.vlgmr.msrb.gmra.mxu3 %vm273_vm1, %v1735_v8 }
 0xf42   :  { %2977 = vmatmul.msk.bf16.vlgmr.msra.gmra.mxu3 %vm179_vm0, %v3766_v23 }
 0xf8d   :  { %v3844_v53 = vpop.f32.mrf.mxu1 }
 0xf92   :  { %v1714_v9 = vpop.xlane.xlu2 %1713 }
 0xf93   :  { %v1718_v10 = vsub.f32 %v1689_v59, %v1714_v9 }
 0xf95   :  { %v1720_v11 = vmul.f32 1.442695, %v1718_v10  ;;  %v1814_v55 = vpop.f32.mrf.mxu1 }
 0xf97   :  { %3289 = vpow2.f32 %v1720_v11 }
 0xf9d   :  { %v3290_v12 = vpop.eup %3289 }
 0xf9e   :  { %v1724_v13 = vsel %vm273_vm1, %v3290_v12, 0.0 }
 0xf9f   :  { %1725 = vadd.xlane.f32.xlu1 %v1724_v13 }
 0xfb5   :  { %v1770_v14 = vpop.f32.mrf.mxu3 }
 0xfbd   :  { %v1772_v15 = vpop.f32.mrf.mxu3 }
 0xfc5   :  { %v1886_v17 = vpop.f32.mrf.mxu3 }
 0xfc6   :  { %v1887_v18 = vadd.f32 %v3220_v16, %v1886_v17 }
 0xfc8   :  { %v1929_v19 = vpack.c.bf16 %v1887_v18, %v1887_v18 }
 0xfca   :  { %v1937_v20 = vsel %vm273_vm1, %v1929_v19, 0  ;;  %v3141_v19 = vld [vmem:[%s3966_s9 + $0x38] sm:$0xff] }
 0xfcb   :  { %1946 = vmatpush.bf16.xpose.msrb.mxu1 %v1937_v20  ;;  %v3140_v20 = vld [vmem:[%s3966_s9 + $0x30] sm:$0xff] }
 0xfcd   :  { %v1888_v27 = vpop.f32.mrf.mxu3 }
 0xfce   :  { %v1889_v28 = vadd.f32 %v3220_v16, %v1888_v27 }
 0xfd0   :  { %v1930_v30 = vpack.c.bf16 %v1889_v28, %v1889_v28 }
 0xfd2   :  { %v1956_v35 = vsel %vm273_vm1, %v1930_v30, 0 }
 0xfd3   :  { %2049 = vmatpush.bf16.msra.mxu1 %v2040_v37 }
0x1012   :  { %v1726_v26 = vpop.xlane.xlu1 %1725 }
0x1013   :  { %3291 = vrcp.f32 %v1726_v26 }
0x1019   :  { %v3292_v29 = vpop.eup %3291 }
0x101a   :  { %v1732_v31 = vmul.f32 %v3292_v29, %v3290_v12 }
0x101c   :  { %v1734_v32 = vpack.c.bf16 %v1732_v31, %v1732_v31 }
0x101e   :  { %2945 = vmatmul.msk.bf16.vlgmr.msrb.gmra.mxu2 %vm273_vm1, %v1734_v32 }
0x101f   :  { %1965 = vmatpush.bf16.xpose.msrb.mxu2 %v1956_v35 }
0x102e   :  { %2963 = vmatmul.msk.bf16.vlgmr.msra.gmra.mxu2 %vm179_vm0, %v3766_v23 }
0x102f   :  { %2086 = vmatpush.bf16.msra.mxu2 %v3139_v40 }
0x1033   :  { %2087 = vmatpush.bf16.msra.mxu2 %v3138_v34  ;;  %v3224_v34 = vld [vmem:[%s3971_s29 + $0x3] ss:$0 sm:$0xff] }
0x10a1   :  { %v1751_v43 = vpop.f32.mrf.mxu2 }
0x10a2   :  { %v1774_v44 = vpack.c.bf16 %v1770_v14, %v1751_v43 }
0x10a4   :  { %2948 = vmatmul.msk.bf16.vlgmr.msra.gmra.mxu0 %vm273_vm1, %v1774_v44 }
0x10a9   :  { %v1753_v4 = vpop.f32.mrf.mxu2 }
0x10aa   :  { %v3223_v4 = vld [vmem:[%s3972_s3 + $0x3] ss:$0 sm:$0xff] }
0x10b1   :  { %v1848_v46 = vpop.f32.mrf.mxu2 }
0x10b2   :  { %v1849_v47 = vadd.f32 %v3221_v45, %v1848_v46 }
0x10b4   :  { %v1853_v5 = vmul.f32 0.35355338, %v1849_v47  ;;  %2991 = vmatmul.msk.bf16.vlgmr.msrb.gmra.mxu0 %vm179_vm0, %v3766_v23 }
0x10b6   :  { %v1927_v48 = vpack.c.bf16 %v1853_v5, %v1853_v5 }
0x10b8   :  { %2992 = vmatmul.msk.bf16.vlgmr.msrb.gmra.mxu1 %vm273_vm1, %v1927_v48 }
0x10b9   :  { %v1850_v49 = vpop.f32.mrf.mxu2 }
0x10ba   :  { %v1851_v50 = vadd.f32 %v3221_v45, %v1850_v49  ;;  %v3225_v49 = vld [vmem:[%s3970_s25 + $0x3] ss:$0 sm:$0xff] }
0x10bc   :  { %v1854_v51 = vmul.f32 0.35355338, %v1851_v50 }
0x10be   :  { %v1928_v52 = vpack.c.bf16 %v1854_v51, %v1854_v51 }
0x10c0   :  { %2993 = vmatmul.msk.bf16.vlgmr.msrb.gmra.mxu2 %vm273_vm1, %v1928_v52 }
0x10d0   :  { %3011 = vmatmul.msk.bf16.vlgmr.msra.gmra.mxu2 %vm179_vm0, %v3766_v23 }
0x1121   :  { %v3846_v54 = vpop.f32.mrf.mxu0 }
0x1129   :  { %v1794_v33 = vpop.f32.mrf.mxu0 }
0x112a   :  { %v3848_v41 = vadd.f32 %v1814_v55, %v1794_v33 }
0x1131   :  { %v1922_v57 = vpop.f32.mrf.mxu0 }
0x1132   :  { %v1923_v58 = vadd.f32 %v3222_v56, %v1922_v57 }
0x1134   :  { %v1931_v59 = vpack.c.bf16 %v1923_v58, %v1923_v58 }
0x1135   :  { %v1948_v6 = vpop.f32.mrf.mxu1 }
0x1136   :  { %v1999_v60 = vsel %vm339_vm2, %v1931_v59, 0  ;;  %v1971_v61 = vsel %vm273_vm1, %v1948_v6, -inf }
0x1137   :  { %1972 = vmax.xlane.f32.xlu2 %v1971_v61  ;;  %2008 = vmatpush.bf16.msrb.mxu3 %v1999_v60 }
0x1139   :  { %v1924_v62 = vpop.f32.mrf.mxu0 }
0x113a   :  { %v1925_v63 = vadd.f32 %v3222_v56, %v1924_v62 }
0x113b   :  { %2124 = vmatpush.bf16.msra.mxu3 %v3141_v19 }
0x113c   :  { %v1932_v0 = vpack.c.bf16 %v1925_v63, %v1925_v63 }
0x113d   :  { %v1950_v1 = vpop.f32.mrf.mxu1 }
0x113e   :  { %v2018_v2 = vsel %vm339_vm2, %v1932_v0, 0 }
0x113f   :  { %2027 = vmatpush.bf16.msra.mxu0 %v2018_v2  ;;  %2125 = vmatpush.bf16.msra.mxu3 %v3140_v20 }
0x1143   :  { %v1967_v3 = vpop.f32.mrf.mxu2  ;;  %2160 = vmatpush.bf16.msrb.mxu0 %v3143_v24 }
0x1144   :  { %v1974_v7 = vsel %vm273_vm1, %v1967_v3, -inf }
0x1145   :  { %1975 = vmax.xlane.f32.xlu0 %v1974_v7  ;;  %v1813_v7 = vadd.f32 %v3844_v53, %v3846_v54 }
0x1147   :  { %2161 = vmatpush.bf16.msrb.mxu0 %v3142_v25 }
0x114b   :  { %v1969_v8 = vpop.f32.mrf.mxu2 }
0x1153   :  { %v2089_v44 = vpop.f32.mrf.mxu2 }
0x1154   :  { %v2090_v5 = vadd.f32 %v3223_v4, %v2089_v44 }
0x1156   :  { %v2094_v50 = vmul.f32 0.35355338, %v2090_v5 }
0x1158   :  { %v2168_v57 = vpack.c.bf16 %v2094_v50, %v2094_v50 }
0x115b   :  { %v2091_v51 = vpop.f32.mrf.mxu2 }
0x115c   :  { %v2092_v58 = vadd.f32 %v3223_v4, %v2091_v51 }
0x115e   :  { %v2095_v62 = vmul.f32 0.35355338, %v2092_v58 }
0x1160   :  { %v2169_v1 = vpack.c.bf16 %v2095_v62, %v2095_v62 }
0x11aa   :  { %v1973_v9 = vpop.xlane.xlu2 %1972 }
0x11ab   :  { %v1977_v10 = vsub.f32 %v1948_v6, %v1973_v9 }
0x11ad   :  { %v1979_v11 = vmul.f32 1.442695, %v1977_v10 }
0x11af   :  { %3293 = vpow2.f32 %v1979_v11 }
0x11b5   :  { %v3294_v12 = vpop.eup %3293 }
0x11b6   :  { %v1983_v13 = vsel %vm273_vm1, %v3294_v12, 0.0 }
0x11b7   :  { %1984 = vadd.xlane.f32.xlu1 %v1983_v13 }
0x11b8   :  { %v1976_v14 = vpop.xlane.xlu0 %1975 }
0x11b9   :  { %v1978_v15 = vsub.f32 %v1967_v3, %v1976_v14 }
0x11bb   :  { %v1981_v16 = vmul.f32 1.442695, %v1978_v15 }
0x11bd   :  { %3295 = vpow2.f32 %v1981_v16 }
0x11c3   :  { %v3296_v17 = vpop.eup %3295 }
0x11c4   :  { %v1986_v18 = vsel %vm273_vm1, %v3296_v17, 0.0 }
0x11c5   :  { %1987 = vadd.xlane.f32.xlu2 %v1986_v18 }
0x122a   :  { %v1985_v26 = vpop.xlane.xlu1 %1984 }
0x122b   :  { %3297 = vrcp.f32 %v1985_v26 }
0x1231   :  { %v3298_v27 = vpop.eup %3297 }
0x1232   :  { %v1991_v28 = vmul.f32 %v3298_v27, %v3294_v12 }
0x1234   :  { %v1993_v29 = vpack.c.bf16 %v1991_v28, %v1991_v28 }
0x1236   :  { %2994 = vmatmul.msk.bf16.vlgmr.msrb.gmra.mxu3 %vm273_vm1, %v1993_v29 }
0x1238   :  { %v1988_v30 = vpop.xlane.xlu2 %1987 }
0x1239   :  { %3299 = vrcp.f32 %v1988_v30 }
0x123f   :  { %v3300_v31 = vpop.eup %3299 }
0x1240   :  { %v1992_v32 = vmul.f32 %v3300_v31, %v3296_v17 }
0x1242   :  { %v1994_v35 = vpack.c.bf16 %v1992_v32, %v1992_v32 }
0x1244   :  { %2995 = vmatmul.msk.bf16.vlgmr.msra.gmra.mxu0 %vm273_vm1, %v1994_v35 }
0x1246   :  { %3025 = vmatmul.msk.bf16.vlgmr.msra.gmra.mxu3 %vm179_vm0, %v3766_v23 }
0x1254   :  { %3039 = vmatmul.msk.bf16.vlgmr.msrb.gmra.mxu0 %vm179_vm0, %v3766_v23 }
0x12b9   :  { %v2010_v38 = vpop.f32.mrf.mxu3 }
0x12c1   :  { %v2012_v39 = vpop.f32.mrf.mxu3  ;;  %v2029_v40 = vpop.f32.mrf.mxu0 }
0x12c2   :  { %v2033_v43 = vpack.c.bf16 %v2029_v40, %v2010_v38  ;;  %v3044_v38 = vld [vmem:[%s3973_s8 + $0xc] sm:$0xf] }
0x12c3   :  { %v2281_v39 = vsel %vm339_vm2, %v3044_v38, 0 }
0x12c4   :  { %2997 = vmatmul.msk.bf16.vlgmr.msra.gmra.mxu1 %vm273_vm1, %v2033_v43 }
0x12c9   :  { %v2031_v45 = vpop.f32.mrf.mxu0  ;;  %v2127_v46 = vpop.f32.mrf.mxu3 }
0x12ca   :  { %v2128_v47 = vadd.f32 %v3224_v34, %v2127_v46  ;;  %v3226_v45 = vld [vmem:[%s3974_s14] ss:$0 sm:$0xff] }
0x12cc   :  { %v2170_v48 = vpack.c.bf16 %v2128_v47, %v2128_v47 }
0x12ce   :  { %v2178_v23 = vsel %vm273_vm1, %v2170_v48, 0 }
0x12cf   :  { %2187 = vmatpush.bf16.xpose.msrb.mxu1 %v2178_v23 }
0x12d1   :  { %v2129_v52 = vpop.f32.mrf.mxu3  ;;  %v2163_v55 = vpop.f32.mrf.mxu0 }
0x12d2   :  { %v2130_v33 = vadd.f32 %v3224_v34, %v2129_v52  ;;  %v2164_v56 = vadd.f32 %v3225_v49, %v2163_v55 }
0x12d4   :  { %v2171_v59 = vpack.c.bf16 %v2130_v33, %v2130_v33  ;;  %v2172_v6 = vpack.c.bf16 %v2164_v56, %v2164_v56 }
0x12d6   :  { %v2197_v60 = vsel %vm273_vm1, %v2171_v59, 0  ;;  %v2240_v61 = vsel %vm339_vm2, %v2172_v6, 0  ;;  %3040 = vmatmul.msk.bf16.vlgmr.msrb.gmra.mxu1 %vm273_vm1, %v2168_v57 }
0x12d7   :  { %2206 = vmatpush.bf16.xpose.msrb.mxu2 %v2197_v60  ;;  %2249 = vmatpush.bf16.msrb.mxu3 %v2240_v61 }
0x12d8   :  { %2290 = vmatpush.bf16.msra.mxu1 %v2281_v39 }
0x12d9   :  { %v2165_v63 = vpop.f32.mrf.mxu0 }
0x12da   :  { %v2166_v0 = vadd.f32 %v3225_v49, %v2165_v63 }
0x12dc   :  { %v2173_v2 = vpack.c.bf16 %v2166_v0, %v2166_v0 }
0x12de   :  { %v2259_v3 = vsel %vm339_vm2, %v2173_v2, 0  ;;  %3041 = vmatmul.msk.bf16.vlgmr.msrb.gmra.mxu2 %vm273_vm1, %v2169_v1  ;;  %v3145_v1 = vld [vmem:[%s3975_s19 + $0x8] sm:$0xff] }
0x12df   :  { %2268 = vmatpush.bf16.msra.mxu0 %v2259_v3  ;;  %2413 = vmatpush.bf16.msra.mxu2 %v3145_v1 }
0x1341   :  { %v2051_v8 = vpop.f32.mrf.mxu1 }
0x1342   :  { %v2056_v9 = vadd.f32 %v2051_v8, %v1813_v7  ;;  %v3144_v7 = vld [vmem:[%s3975_s19] sm:$0xff] }
0x1343   :  { %2414 = vmatpush.bf16.msra.mxu2 %v3144_v7 }
0x1349   :  { %v2053_v10 = vpop.f32.mrf.mxu1 }
0x134a   :  { %v2057_v11 = vadd.f32 %v2053_v10, %v3848_v41 }
0x1353   :  { %v2189_v12 = vpop.f32.mrf.mxu1 }
0x1354   :  { %v2212_v13 = vsel %vm273_vm1, %v2189_v12, -inf }
0x1355   :  { %2213 = vmax.xlane.f32.xlu0 %v2212_v13 }
0x135b   :  { %v2191_v14 = vpop.f32.mrf.mxu1 }
0x135c   :  { %v3148_v14 = vld [vmem:[%s3976_s24 + $0x10] sm:$0xff] }
0x1361   :  { %v2208_v15 = vpop.f32.mrf.mxu2 }
0x1362   :  { %v2215_v16 = vsel %vm273_vm1, %v2208_v15, -inf }
0x1363   :  { %2216 = vmax.xlane.f32.xlu1 %v2215_v16 }
0x1369   :  { %v2210_v17 = vpop.f32.mrf.mxu2 }
0x13c8   :  { %v2214_v18 = vpop.xlane.xlu0 %2213 }
0x13c9   :  { %v2218_v19 = vsub.f32 %v2189_v12, %v2214_v18  ;;  %v3149_v12 = vld [vmem:[%s3976_s24 + $0x18] sm:$0xff] }
0x13ca   :  { %2456 = vmatpush.bf16.msra.mxu3 %v3149_v12 }
0x13cb   :  { %v2220_v20 = vmul.f32 1.442695, %v2218_v19 }
0x13cd   :  { %3301 = vpow2.f32 %v2220_v20 }
0x13ce   :  { %2457 = vmatpush.bf16.msra.mxu3 %v3148_v14 }
0x13d3   :  { %v3302_v53 = vpop.eup %3301 }
0x13d4   :  { %v2224_v54 = vsel %vm273_vm1, %v3302_v53, 0.0 }
0x13d5   :  { %2225 = vadd.xlane.f32.xlu2 %v2224_v54  ;;  %v3227_v54 = vld [vmem:[%s3977_s30] ss:$0 sm:$0xff] }
0x13d6   :  { %v2217_v24 = vpop.xlane.xlu1 %2216 }
0x13d7   :  { %v2219_v41 = vsub.f32 %v2208_v15, %v2217_v24 }
0x13d9   :  { %v2222_v25 = vmul.f32 1.442695, %v2219_v41 }
0x13db   :  { %3303 = vpow2.f32 %v2222_v25 }
0x13e1   :  { %v3304_v26 = vpop.eup %3303 }
0x13e2   :  { %v2227_v27 = vsel %vm273_vm1, %v3304_v26, 0.0 }
0x13e3   :  { %2228 = vadd.xlane.f32.xlu0 %v2227_v27 }
0x1448   :  { %v2226_v28 = vpop.xlane.xlu2 %2225 }
0x1449   :  { %3305 = vrcp.f32 %v2226_v28 }
0x144f   :  { %v3306_v29 = vpop.eup %3305 }
0x1450   :  { %v2232_v30 = vmul.f32 %v3306_v29, %v3302_v53 }
0x1452   :  { %v2234_v31 = vpack.c.bf16 %v2232_v30, %v2232_v30 }
0x1454   :  { %3042 = vmatmul.msk.bf16.vlgmr.msrb.gmra.mxu3 %vm273_vm1, %v2234_v31 }
0x1456   :  { %v2229_v32 = vpop.xlane.xlu0 %2228 }
0x1457   :  { %3307 = vrcp.f32 %v2229_v32 }
0x145d   :  { %v3308_v35 = vpop.eup %3307 }
0x145e   :  { %v2233_v36 = vmul.f32 %v3308_v35, %v3304_v26  ;;  %v3228_v26 = vld [vmem:[%s3978_s6] ss:$0 sm:$0xff] }
0x1460   :  { %v2235_v37 = vpack.c.bf16 %v2233_v36, %v2233_v36 }
0x1462   :  { %3043 = vmatmul.msk.bf16.vlgmr.msra.gmra.mxu0 %vm273_vm1, %v2235_v37 }
0x14d7   :  { %v2251_v40 = vpop.f32.mrf.mxu3 }
0x14df   :  { %v2253_v43 = vpop.f32.mrf.mxu3  ;;  %v2270_v44 = vpop.f32.mrf.mxu0 }
0x14e0   :  { %v2274_v34 = vpack.c.bf16 %v2270_v44, %v2251_v40  ;;  %v3147_v44 = vld [vmem:[%s3976_s24 + $0x8] sm:$0xff] }
0x14e1   :  { %2458 = vmatpush.bf16.msra.mxu3 %v3147_v44  ;;  %v3234_v44 = vld [vmem:[%s3570_s27] ss:$0 sm:$0xff] }
0x14e2   :  { %3045 = vmatmul.msk.bf16.vlgmr.msra.gmra.mxu1 %vm273_vm1, %v2274_v34  ;;  %v3146_v34 = vld [vmem:[%s3976_s24] sm:$0xff] }
0x14e5   :  { %2459 = vmatpush.bf16.msra.mxu3 %v3146_v34 }
0x14e7   :  { %v2272_v4 = vpop.f32.mrf.mxu0 }
0x14e8   :  { %v3229_v4 = vld [vmem:[%s3979_s7] ss:$0 sm:$0xff] }
0x155f   :  { %v2292_v46 = vpop.f32.mrf.mxu1 }
0x1560   :  { %v2297_v47 = vadd.f32 %v2292_v46, %v2056_v9 }
0x1562   :  { %v2303_v5 = vadd.f32 %v3226_v45, %v2297_v47 }
0x1564   :  { %v2305_v48 = vadd.f32 %v2303_v5, %v3760_v21 }
0x1566   :  { %v2309_v23 = vsel %vm179_vm0, %v2305_v48, 0.0 }
0x1567   :  { %2310 = vadd.xlane.f32.xlu2 %v2309_v23  ;;  %v2294_v49 = vpop.f32.mrf.mxu1  ;;  %v3230_v23 = vld [vmem:[%s3980_s10] ss:$0 sm:$0xff] }
0x1568   :  { %v2298_v50 = vadd.f32 %v2294_v49, %v2057_v11 }
0x156a   :  { %v2304_v51 = vadd.f32 %v3226_v45, %v2298_v50 }
0x156c   :  { %v2306_v52 = vadd.f32 %v2304_v51, %v3762_v22 }
0x156e   :  { %v2312_v55 = vsel %vm179_vm0, %v2306_v52, 0.0 }
0x156f   :  { %2313 = vadd.xlane.f32.xlu1 %v2312_v55 }
0x15da   :  { %v2311_v33 = vpop.xlane.xlu2 %2310 }
0x15db   :  { %v2315_v56 = vmul.f32 %v2311_v33, %v3724_v42 }
0x15dd   :  { %v2317_v57 = vsub.f32 %v2305_v48, %v2315_v56 }
0x15df   :  { %v2319_v58 = vmul.f32 %v2317_v57, %v2317_v57 }
0x15e1   :  { %v2321_v59 = vsel %vm179_vm0, %v2319_v58, 0.0 }
0x15e2   :  { %2322 = vadd.xlane.f32.xlu1 %v2321_v59  ;;  %v2314_v21 = vpop.xlane.xlu1 %2313 }
0x15e3   :  { %v2316_v6 = vmul.f32 %v2314_v21, %v3724_v42 }
0x15e5   :  { %v2318_v60 = vsub.f32 %v2306_v52, %v2316_v6 }
0x15e7   :  { %v2320_v61 = vmul.f32 %v2318_v60, %v2318_v60 }
0x15e9   :  { %v2324_v22 = vsel %vm179_vm0, %v2320_v61, 0.0 }
0x15ea   :  { %2325 = vadd.xlane.f32.xlu0 %v2324_v22 }
0x1655   :  { %v2323_v62 = vpop.xlane.xlu1 %2322 }
0x1656   :  { %v2327_v63 = vmul.f32 %v2323_v62, %v3724_v42 }
0x1658   :  { %v2329_v0 = vadd.f32 1e-05, %v2327_v63 }
0x165a   :  { %3309 = vrsqrt.f32 %v2329_v0  ;;  %vm2337_vm2 = vweird.f32 %v2329_v0 }
0x165d   :  { %v2326_v2 = vpop.xlane.xlu0 %2325 }
0x165e   :  { %v2328_v3 = vmul.f32 %v2326_v2, %v3724_v42 }
0x1660   :  { %v3310_v8 = vpop.eup %3309  ;;  %v2330_v9 = vadd.f32 1e-05, %v2328_v3  ;;  %v3151_v3 = vld [vmem:[%s3981_s11 + $0x8] sm:$0xff] }
0x1661   :  { %v2332_v10 = vmul.f32 %v3310_v8, %v2329_v0  ;;  %vm2338_vm1 = vweird.f32 %v3310_v8  ;;  %2563 = vmatpush.bf16.msrb.mxu0 %v3151_v3 }
0x1662   :  { %3311 = vrsqrt.f32 %v2330_v9  ;;  %vm2339_vm4 = vmor %vm2337_vm2, %vm2338_vm1  ;;  %vm2347_vm6 = vweird.f32 %v2330_v9 }
0x1663   :  { %v2333_v11 = vmul.f32 %v3310_v8, %v2332_v10 }
0x1665   :  { %v2334_v13 = vmul.f32 0.5, %v2333_v11 }
0x1667   :  { %v2335_v15 = vsub.f32 1.5, %v2334_v13 }
0x1668   :  { %v3312_v16 = vpop.eup %3311 }
0x1669   :  { %v2336_v17 = vmul.f32 %v3310_v8, %v2335_v15  ;;  %v2342_v18 = vmul.f32 %v3312_v16, %v2330_v9  ;;  %vm2348_vm5 = vweird.f32 %v3312_v16  ;;  %v3150_v9 = vld [vmem:[%s3981_s11] sm:$0xff] }
0x166a   :  { %vm2349_vm7 = vmor %vm2347_vm6, %vm2348_vm5  ;;  %2564 = vmatpush.bf16.msrb.mxu0 %v3150_v9 }
0x166b   :  { %v2340_v19 = vsel %vm2339_vm4, %v3310_v8, %v2336_v17  ;;  %v2343_v20 = vmul.f32 %v3312_v16, %v2342_v18  ;;  %v3232_v18 = vld [vmem:[%s3983_s16] ss:$0 sm:$0xff] }
0x166c   :  { %v2351_v24 = vmul.f32 %v2340_v19, %v2317_v57 }
0x166d   :  { %v2344_v53 = vmul.f32 0.5, %v2343_v20 }
0x166e   :  { %v2356_v27 = vmul.f32 %v3227_v54, %v2351_v24 }
0x166f   :  { %v2345_v41 = vsub.f32 1.5, %v2344_v53 }
0x1670   :  { %v2361_v30 = vadd.f32 %v3228_v26, %v2356_v27 }
0x1671   :  { %v2346_v25 = vmul.f32 %v3312_v16, %v2345_v41 }
0x1672   :  { %v2379_v35 = vpack.c.bf16 %v2361_v30, %v2361_v30 }
0x1673   :  { %v2350_v28 = vsel %vm2349_vm7, %v3312_v16, %v2346_v25  ;;  %v3231_v16 = vld [vmem:[%s3982_s15] ss:$0 sm:$0xff] }
0x1674   :  { %v2352_v29 = vmul.f32 %v2350_v28, %v2318_v60  ;;  %v2386_v38 = vunpack.c.l.b16 %v2379_v35  ;;  %v3152_v35 = vld [vmem:[%s3565_s20] sm:$0xff] }
0x1676   :  { %v2357_v31 = vmul.f32 %v3227_v54, %v2352_v29 }
0x1678   :  { %v2362_v32 = vadd.f32 %v3228_v26, %v2357_v31 }
0x167a   :  { %v2380_v36 = vpack.c.bf16 %v2362_v32, %v2362_v32 }
0x167c   :  { %v2387_v37 = vunpack.c.l.b16 %v2380_v36  ;;  %v3233_v36 = vld [vmem:[%s3560_s12] ss:$0 sm:$0xff]  ;;  %s3327_s12 = sshra.s32 %s2620_s23, 4  ;;  %s3328_s12 = int_to_ptr.hbm [resolvable:$true] %s3327_s12 }
0x167d   :  { %p3332_p1 = scmp.lt.s32.totalorder %s3328_s12, %s3575_s4 }
0x167e   :  { %v2388_v39 = vrot.slane %v2387_v37, 7 }
0x1680   :  { %v2390_v40 = vsel %vm2389_vm8, %v2388_v39, %v2386_v38 }
0x1681   :  { %v2391_v43 = vpack.c.b16 %v2390_v40, %v2390_v40 }
0x1683   :  { %3054 = vmatmul.msk.bf16.vlgmr.msra.gmra.mxu2 %vm179_vm0, %v2391_v43 }
0x1706   :  { %v2416_v45 = vpop.f32.mrf.mxu2 }
0x1707   :  { %v2417_v46 = vadd.f32 %v3229_v4, %v2416_v45 }
0x1709   :  { %v2420_v47 = vmax.f32 %v2417_v46, 0.0 }
0x170b   :  { %v2421_v5 = vpack.c.bf16 %v2420_v47, %v2420_v47 }
0x170d   :  { %3071 = vmatmul.msk.bf16.vlgmr.msra.gmra.mxu3 %vm1268_vm10, %v2421_v5 }
0x170e   :  { %v2418_v48 = vpop.f32.mrf.mxu2 }
0x1790   :  { %v2461_v49 = vpop.f32.mrf.mxu3 }
0x1791   :  { %v2462_v50 = vadd.f32 %v3230_v23, %v2461_v49 }
0x1793   :  { %v2466_v51 = vrot.slane %v2462_v50, 1  ;;  %v2469_v55 = vadd.f32 %v2462_v50, %v2361_v30 }
0x1795   :  { %v2470_v52 = vadd.f32 %v2466_v51, %v2362_v32  ;;  %v3153_v32 = vld [vmem:[%s3565_s20 + $0x8] sm:$0xff]  ;;  %s3329_s20 = scalar_lea.hbm %s3328_s12, 2 }
0x1796   :  { %2601 = vmatpush.bf16.msrb.mxu1 %v3153_v32  ;;  %p3330_p0 = scmp.ne.s32.totalorder %s3328_s12, %s3329_s20  ;;  %p3333_p2 = scmp.lt.s32.totalorder %s3331_s26, %s3329_s20 }
0x1797   :  { %v2473_v33 = vrot.slane %v2470_v52, 7 }
0x1798   :  { %v2463_v56 = vpop.f32.mrf.mxu3  ;;  %p3334_p3 = por %p3333_p2, %p3332_p1 }
0x1799   :  { %v2474_v57 = vsel %vm2389_vm8, %v2473_v33, %v2469_v55 }
0x179a   :  { %v2477_v58 = vsel %vm2476_vm9, %v2474_v57, 0.0  ;;  %2602 = vmatpush.bf16.msrb.mxu1 %v3152_v35  ;;  %p3335_p4 = pnand %p3334_p3, %p3330_p0 }
0x179b   :  { %2478 = vadd.xlane.f32.xlu2 %v2477_v58 }
0x180e   :  { %v2479_v59 = vpop.xlane.xlu2 %2478 }
0x180f   :  { %v2480_v21 = vmul.f32 %v2479_v59, %v3724_v42 }
0x1811   :  { %v2482_v6 = vrot.slane %v2480_v21, 1  ;;  %v2485_v60 = vsub.f32 %v2469_v55, %v2480_v21 }
0x1813   :  { %v2486_v61 = vsub.f32 %v2470_v52, %v2482_v6  ;;  %v2487_v62 = vmul.f32 %v2485_v60, %v2485_v60 }
0x1815   :  { %v2488_v22 = vmul.f32 %v2486_v61, %v2486_v61 }
0x1817   :  { %v2491_v63 = vrot.slane %v2488_v22, 7 }
0x1819   :  { %v2492_v0 = vsel %vm2389_vm8, %v2491_v63, %v2487_v62 }
0x181a   :  { %v2494_v1 = vsel %vm2476_vm9, %v2492_v0, 0.0 }
0x181b   :  { %2495 = vadd.xlane.f32.xlu0 %v2494_v1 }
0x188e   :  { %v2496_v2 = vpop.xlane.xlu0 %2495 }
0x188f   :  { %v2497_v7 = vmul.f32 %v2496_v2, %v3724_v42 }
0x1891   :  { %v2498_v8 = vadd.f32 1e-05, %v2497_v7 }
0x1893   :  { %3313 = vrsqrt.f32 %v2498_v8  ;;  %vm2505_vm11 = vweird.f32 %v2498_v8 }
0x1899   :  { %v3314_v10 = vpop.eup %3313 }
0x189a   :  { %v2500_v11 = vmul.f32 %v3314_v10, %v2498_v8  ;;  %vm2506_vm10 = vweird.f32 %v3314_v10 }
0x189b   :  { %vm2507_vm12 = vmor %vm2505_vm11, %vm2506_vm10 }
0x189c   :  { %v2501_v12 = vmul.f32 %v3314_v10, %v2500_v11 }
0x189e   :  { %v2502_v13 = vmul.f32 0.5, %v2501_v12 }
0x18a0   :  { %v2503_v14 = vsub.f32 1.5, %v2502_v13 }
0x18a2   :  { %v2504_v15 = vmul.f32 %v3314_v10, %v2503_v14 }
0x18a4   :  { %v2508_v17 = vsel %vm2507_vm12, %v3314_v10, %v2504_v15 }
0x18a5   :  { %v2510_v42 = vrot.slane %v2508_v17, 1  ;;  %v2513_v19 = vmul.f32 %v2508_v17, %v2485_v60 }
0x18a7   :  { %v2514_v20 = vmul.f32 %v2510_v42, %v2486_v61  ;;  %v2518_v53 = vmul.f32 %v3231_v16, %v2513_v19 }
0x18a9   :  { %v2519_v54 = vmul.f32 %v3231_v16, %v2514_v20  ;;  %v2523_v24 = vadd.f32 %v3232_v18, %v2518_v53 }
0x18ab   :  { %v2524_v41 = vadd.f32 %v3232_v18, %v2519_v54  ;;  %v2530_v25 = vpack.c.bf16 %v2523_v24, %v2523_v24 }
0x18ad   :  { %v2531_v26 = vpack.c.bf16 %v2524_v41, %v2524_v41  ;;  %v2537_v28 = vunpack.c.l.b16 %v2530_v25 }
0x18af   :  { %v2538_v27 = vunpack.c.l.b16 %v2531_v26 }
0x18b1   :  { %v2539_v29 = vrot.slane %v2538_v27, 7 }
0x18b3   :  { %v2540_v30 = vsel %vm2389_vm8, %v2539_v29, %v2537_v28 }
0x18b4   :  { %v2541_v31 = vpack.c.b16 %v2540_v30, %v2540_v30 }
0x18b6   :  { %3080 = vmatmul.msk.bf16.vlgmr.msrb.gmra.mxu0 %vm179_vm0, %v2541_v31 }
0x1933   :  { %v2566_v37 = vpop.f32.mrf.mxu0 }
0x1934   :  { %v2567_v38 = vadd.f32 %v3233_v36, %v2566_v37 }
0x1936   :  { %v2570_v39 = vmax.f32 %v2567_v38, 0.0 }
0x1938   :  { %v2576_v40 = vpack.c.bf16 %v2570_v39, %v2570_v39 }
0x193a   :  { %3089 = vmatmul.msk.bf16.vlgmr.msrb.gmra.mxu1 %vm179_vm0, %v2576_v40 }
0x193b   :  { %v2568_v43 = vpop.f32.mrf.mxu0 }
0x19b7   :  { %v2604_v34 = vpop.f32.mrf.mxu1 }
0x19b8   :  { %v2605_v4 = vadd.f32 %v3234_v44, %v2604_v34 }
0x19ba   :  { %v2609_v45 = vrot.slane %v2605_v4, 1  ;;  %2611 = vst [vmem:[#allocation2] sm:$0x1] %v2605_v4 }
0x19bc   :  { %2612 = vst [vmem:[#allocation2 + $0x1] sm:$0x1] %v2609_v45 }
0x19bd   :  { %3338 = shalt.err (!%p3335_p4)
}
0x19be   :  { %s3380_s27 = smov 16   ;;  %s3381_s28 = smov 1  }
0x19bf   :  { %2625 = dma.vmem_to_hbm [thread:$0]  %s2618_s22, 32, %s2620_s23, [#allocation3], %s3380_s27, %s3380_s27, %s3381_s28   ;;  %v2606_v46 = vpop.f32.mrf.mxu1 }
0x19c0   :  { %3339 = dma.done.wait [#allocation3], 32  }
0x19c1   :  { %3340 = vsyncadd [#allocation3], 4294967264 }
0x19c2   :  { %2630 = vsyncpa [#allocation3], 1 }

</bundles_post_ra>
